<compile_context>
chip_gen: v5e
topology: v5e:2x2
jax: 0.10.0
libtpu: 0.0.40
codegen_flags: <defaults>
</compile_context>

<pallas_src>
import functools
import math

import jax
import jax.numpy as jnp
from jax.experimental import pallas as pl
from jax.experimental.pallas import tpu as pltpu


def _time2vec_kernel(tau_ref, expand_ref, wpm_ref, out_ref, *,
                     clip_min, clip_max, function):
    # tau_ref    : (TR, P) f32   P consecutive tokens per row
    # expand_ref : (P, L)  f32   0/1 block-diagonal replication matrix
    # wpm_ref    : (3, L)  f32   row0 = w*init_scale, row1 = phi, row2 = lane-0 mask
    # out_ref    : (TR, L) out_dtype, L = P*D (multiple of 128 -> lane-dense)

    # Replicate each token across its D output lanes on the (otherwise idle)
    # MXU. 0/1 matrix + HIGHEST precision keeps f32 tau values exact.
    rep = jnp.dot(tau_ref[...], expand_ref[...],
                  precision=jax.lax.Precision.HIGHEST,
                  preferred_element_type=jnp.float32)            # (TR, L)

    # z = tau * (init_scale*w) + phi   -- pure VPU, f32, fully lane-dense.
    z = rep * wpm_ref[0:1, :] + wpm_ref[1:2, :]

    periodic = function(z)                                       # EUP (cos)
    linear = z
    if clip_min is not None or clip_max is not None:
        linear = jnp.clip(z, clip_min, clip_max)

    is_linear = wpm_ref[2:3, :] > 0.5                            # lane d==0 slots
    out_ref[...] = jnp.where(is_linear, linear, periodic).astype(out_ref.dtype)


def time2vec(tau, w0, phi0, w, phi, *, init_scale=1.0, clip_min=None,
             clip_max=None, function=jnp.cos, out_dtype=jnp.float32,
             block_rows=None):
    """tau: (B, S) -> (B, S, D) with D = w.shape[-1] + 1."""
    B, S = tau.shape
    D = w.shape[-1] + 1
    N = B * S

    # ---- token packing: P tokens per lane-dense output row-group ----------
    P = math.lcm(D, 128) // D                 # minimal P with P*D % 128 == 0
    # Grow P (stays a multiple of the minimal P) to amortize tau's 128-lane
    # padded VMEM rows; cap the 0/1 expansion matrix at ~512 KiB.
    while P * 2 <= 128 and (2 * P) * (2 * P) * D * 4 <= (512 << 10):
        P *= 2
    L = P * D                                 # lane width of output rows

    # ---- fused parameters (wrapper-side, tiny) -----------------------------
    scale = jnp.float32(1.0 if init_scale is None else init_scale)
    w_full = jnp.concatenate(
        [jnp.reshape(w0, (1, 1)), jnp.reshape(w, (1, D - 1))], axis=1
    ).astype(jnp.float32) * scale                         # init_scale folded in
    phi_full = jnp.concatenate(
        [jnp.reshape(phi0, (1, 1)), jnp.reshape(phi, (1, D - 1))], axis=1
    ).astype(jnp.float32)
    mask_full = (jnp.arange(L) % D == 0).astype(jnp.float32)[None, :]
    wpm = jnp.concatenate(
        [jnp.tile(w_full, (1, P)), jnp.tile(phi_full, (1, P)), mask_full],
        axis=0)                                           # (3, L)

    # 0/1 block-diagonal expansion: expand[p, p*D + d] = 1
    expand = (jnp.arange(L)[None, :] // D == jnp.arange(P)[:, None]
              ).astype(jnp.float32)                       # (P, L)

    # ---- row-tile sizing (counts tau's real lane-padded cost) --------------
    out_bytes = jnp.dtype(out_dtype).itemsize
    row_bytes = 128 * 4 + L * out_bytes       # padded tau row + output row
    n_groups = pl.cdiv(N, P)
    cap = ((n_groups + 7) // 8) * 8
    if block_rows is None:
        # ~10 MiB of double-buffered pipelined rows (+ <=1 MiB constants):
        # fits v5e's 16 MiB default scoped VMEM and v7x's 32 MiB / 64 MiB.
        block_rows = (10 << 20) // (2 * row_bytes)
    block_rows = int(max(8, (min(int(block_rows), cap) // 8) * 8))
    grid_rows = pl.cdiv(n_groups, block_rows)
    g_pad = grid_rows * block_rows

    tau_grp = jnp.reshape(tau, (N,)).astype(jnp.float32)
    if g_pad * P != N:
        tau_grp = jnp.pad(tau_grp, (0, g_pad * P - N))
    tau_grp = jnp.reshape(tau_grp, (g_pad, P))

    kernel = functools.partial(_time2vec_kernel, clip_min=clip_min,
                               clip_max=clip_max, function=function)

    out = pl.pallas_call(
        kernel,
        out_shape=jax.ShapeDtypeStruct((g_pad, L), out_dtype),
        grid=(grid_rows,),
        in_specs=[
            pl.BlockSpec((block_rows, P), lambda i: (i, 0)),   # tau groups
            pl.BlockSpec((P, L), lambda i: (0, 0)),            # 0/1 expansion
            pl.BlockSpec((3, L), lambda i: (0, 0)),            # w / phi / mask
        ],
        out_specs=pl.BlockSpec((block_rows, L), lambda i: (i, 0)),
        compiler_params=pltpu.CompilerParams(
            dimension_semantics=("parallel",),
            vmem_limit_bytes=32 * 1024 * 1024),
    )(tau_grp, expand, wpm)

    # (g_pad, L) -> (g_pad*P, D) is a free reinterpretation of the same
    # row-major buffer; then drop padding tokens and restore (B, S, D).
    out = jnp.reshape(out, (g_pad * P, D))
    if g_pad * P != N:
        out = out[:N]
    return jnp.reshape(out, (B, S, D))


def _reference(tau, w0, phi0, w, phi, init_scale=1.0, clip_min=None,
               clip_max=None, function=jnp.cos):
    if init_scale is not None:
        tau = tau * init_scale
    tau = tau[:, :, None]
    hp = jax.lax.Precision.HIGHEST   # keep the K=1 matmuls in full f32 on TPU
    lin1 = jnp.matmul(tau, w0, precision=hp) + phi0
    lin2 = jnp.matmul(tau, w, precision=hp)
    if clip_min is not None or clip_max is not None:
        lin1 = jnp.clip(lin1, clip_min, clip_max)
    periodic = function(lin2 + phi)
    return jnp.concatenate([lin1, periodic], axis=-1)


if __name__ == "__main__":
    # Module config (synthetic, deterministic init): input_dim=1, output_dim=32.
    input_dim = 1
    output_dim = 32
    B, S = 2, 8

    key = jax.random.PRNGKey(0)
    k_tau, k_w0, k_phi0, k_w, k_phi = jax.random.split(key, 5)

    tau = jax.random.normal(k_tau, (B, S), dtype=jnp.float32)
    w0 = jax.random.normal(k_w0, (input_dim, 1), dtype=jnp.float32)
    phi0 = jax.random.normal(k_phi0, (1,), dtype=jnp.float32)
    w = jax.random.normal(k_w, (input_dim, output_dim - 1), dtype=jnp.float32)
    phi = jax.random.normal(k_phi, (output_dim - 1,), dtype=jnp.float32)

    # Default config (module defaults: cos, init_scale=1, no clipping).
    out = jax.block_until_ready(time2vec(tau, w0, phi0, w, phi))
    ref = _reference(tau, w0, phi0, w, phi)
    assert out.shape == (B, S, output_dim), out.shape
    assert jnp.allclose(out, ref, atol=1e-5, rtol=1e-5), "mismatch (default cfg)"

    # Scaled + clipped config exercises the folded init_scale and lane-0 clip.
    out2 = jax.block_until_ready(
        time2vec(tau, w0, phi0, w, phi,
                 init_scale=0.5, clip_min=-0.75, clip_max=0.75))
    ref2 = _reference(tau, w0, phi0, w, phi,
                      init_scale=0.5, clip_min=-0.75, clip_max=0.75)
    assert jnp.allclose(out2, ref2, atol=1e-5, rtol=1e-5), "mismatch (clip cfg)"

    print("KERNEL_OK")
</pallas_src>

<mosaic_0001>
module attributes {stable_mosaic.version = 11 : i64} {
  func.func @_time2vec_kernel(%arg0: i32, %arg1: memref<8x64xf32, #tpu.memory_space<vmem>>, %arg2: memref<64x2048xf32, #tpu.memory_space<vmem>>, %arg3: memref<3x2048xf32, #tpu.memory_space<vmem>>, %arg4: memref<8x2048xf32, #tpu.memory_space<vmem>>) attributes {dimension_semantics = [#tpu.dimension_semantics<parallel>], iteration_bounds = array<i64: 1>, scalar_prefetch = 0 : i64, scratch_operands = 0 : i64, tpu.core_type = #tpu.core_type<tc>, window_params = [{transform_indices = @transform_0, window_bounds = array<i64: 8, 64>}, {pipeline_mode = #tpu.pipeline_mode<synchronous>, transform_indices = @transform_1, window_bounds = array<i64: 64, 2048>}, {pipeline_mode = #tpu.pipeline_mode<synchronous>, transform_indices = @transform_2, window_bounds = array<i64: 3, 2048>}, {transform_indices = @transform_3, window_bounds = array<i64: 8, 2048>}]} {
    %c0 = arith.constant 0 : index
    %c0_0 = arith.constant 0 : index
    %0 = vector.load %arg1[%c0, %c0_0] : memref<8x64xf32, #tpu.memory_space<vmem>>, vector<8x64xf32>
    %c0_1 = arith.constant 0 : index
    %c0_2 = arith.constant 0 : index
    %1 = vector.load %arg2[%c0_1, %c0_2] : memref<64x2048xf32, #tpu.memory_space<vmem>>, vector<64x2048xf32>
    %cst = arith.constant dense<0.000000e+00> : vector<8x2048xf32>
    %2 = tpu.matmul %0, %1, %cst {dimension_numbers = #tpu.dot_dimension_numbers<[1], [0], [0], [1], [0, 0, 1, 1], [], []>, precision = #tpu.contract_precision<fp32>} : vector<8x64xf32>, vector<64x2048xf32>, vector<8x2048xf32> -> vector<8x2048xf32>
    %c0_3 = arith.constant 0 : index
    %c0_4 = arith.constant 0 : index
    %3 = vector.load %arg3[%c0_3, %c0_4] : memref<3x2048xf32, #tpu.memory_space<vmem>>, vector<1x2048xf32>
    %4 = vector.broadcast %3 : vector<1x2048xf32> to vector<8x2048xf32>
    %5 = arith.mulf %2, %4 : vector<8x2048xf32>
    %c1 = arith.constant 1 : index
    %c0_5 = arith.constant 0 : index
    %6 = vector.load %arg3[%c1, %c0_5] : memref<3x2048xf32, #tpu.memory_space<vmem>>, vector<1x2048xf32>
    %7 = vector.broadcast %6 : vector<1x2048xf32> to vector<8x2048xf32>
    %8 = arith.addf %5, %7 : vector<8x2048xf32>
    %9 = math.cos %8 : vector<8x2048xf32>
    %c2 = arith.constant 2 : index
    %c0_6 = arith.constant 0 : index
    %10 = vector.load %arg3[%c2, %c0_6] : memref<3x2048xf32, #tpu.memory_space<vmem>>, vector<1x2048xf32>
    %cst_7 = arith.constant 5.000000e-01 : f32
    %11 = vector.broadcast %cst_7 : f32 to vector<1x2048xf32>
    %12 = arith.cmpf ogt, %10, %11 : vector<1x2048xf32>
    %13 = vector.shape_cast %12 : vector<1x2048xi1> to vector<1x2048xi1>
    %14 = vector.broadcast %13 : vector<1x2048xi1> to vector<8x2048xi1>
    %15 = arith.select %14, %8, %9 : vector<8x2048xi1>, vector<8x2048xf32>
    %c0_8 = arith.constant 0 : index
    %c0_9 = arith.constant 0 : index
    %16 = vector.load %arg4[%c0_8, %c0_9] : memref<8x2048xf32, #tpu.memory_space<vmem>>, vector<8x2048xf32>
    tpu.vector_store %arg4[%c0_8, %c0_9], %15 {strides = array<i32>} : memref<8x2048xf32, #tpu.memory_space<vmem>>, vector<8x2048xf32>,
    return
  }
  func.func @transform_0(%arg0: i32) -> (i32, i32) {
    %c0_i32 = arith.constant 0 : i32
    %c0_i32_0 = arith.constant 0 : i32
    return %arg0, %c0_i32 : i32, i32
  }
  func.func @transform_1(%arg0: i32) -> (i32, i32) {
    %c0_i32 = arith.constant 0 : i32
    %c0_i32_0 = arith.constant 0 : i32
    %c0_i32_1 = arith.constant 0 : i32
    return %c0_i32, %c0_i32_0 : i32, i32
  }
  func.func @transform_2(%arg0: i32) -> (i32, i32) {
    %c0_i32 = arith.constant 0 : i32
    %c0_i32_0 = arith.constant 0 : i32
    %c0_i32_1 = arith.constant 0 : i32
    return %c0_i32, %c0_i32_0 : i32, i32
  }
  func.func @transform_3(%arg0: i32) -> (i32, i32) {
    %c0_i32 = arith.constant 0 : i32
    %c0_i32_0 = arith.constant 0 : i32
    return %arg0, %c0_i32 : i32, i32
  }
}

</mosaic_0001>

<bundles_post_ra>
// kernel: tpu_custom_call.1
= control target key start
LH: loop header
LB: loop body
LE: loop exit
PB: predicated region body
PF: predicated region fallthrough
CT: control target
= control target key end

     0   :  { %8 = vsyncpa [#allocation3], 0  ;;  %s10965_s0 = inlined_call_operand.hbm [shape: f32[8,64], index: 0, kind: input, shape index: {}]   ;;  %s10966_s1 = inlined_call_operand.hbm [shape: f32[64,2048], index: 1, kind: input, shape index: {}]   ;;  %s10967_s2 = inlined_call_operand.hbm [shape: f32[3,2048], index: 2, kind: input, shape index: {}]   ;;  %s10968_s3 = inlined_call_operand.hbm [shape: f32[8,2048], index: 3, kind: output, shape index: {}]  }
   0x1   :  { %9 = vsyncpa [#allocation6], 0  ;;  %s26_s14 = sshll.u32 %s10966_s1, 4  ;;  %s27_s14 = int_to_ptr.hbm [resolvable:$true] %s26_s14 }
   0x2   :  { %10 = vsyncpa [#allocation4], 0  ;;  %s6817_s15 = smov [#allocation5]   ;;  %s16_s19 = sshll.u32 %s10965_s0, 4  ;;  %s17_s19 = int_to_ptr.hbm [resolvable:$true] %s16_s19 }
   0x3   :  { %s28_s16 = sshll.u32 %s6817_s15, 4  ;;  %s6818_s20 = smov 2048   ;;  %s29_s16 = int_to_ptr.vmem [resolvable:$true] %s28_s16 }
   0x4   :  { %s6819_s21 = smov 128   ;;  %s6820_s22 = smov [#allocation2]  }
   0x5   :  { %34 = dma.hbm_to_vmem [thread:$0]  %s27_s14, 16384, %s29_s16, [#allocation6], %s6818_s20, %s6818_s20, %s6819_s21  }
   0x6   :  { %s18_s23 = sshll.u32 %s6820_s22, 4  ;;  %s40_s26 = sshll.u32 %s10967_s2, 4  ;;  %s19_s23 = int_to_ptr.vmem [resolvable:$true] %s18_s23  ;;  %s41_s26 = int_to_ptr.hbm [resolvable:$true] %s40_s26 }
   0x7   :  { %21 = dma.hbm_to_vmem [thread:$0]  %s17_s19, 128, %s19_s23, [#allocation3]  }
   0x8   :  { %s6821_s1 = smov [#allocation7]  }
   0x9   :  { %s42_s27 = sshll.u32 %s6821_s1, 4  ;;  %s43_s27 = int_to_ptr.vmem [resolvable:$true] %s42_s27 }
   0xa   :  { %45 = dma.hbm_to_vmem [thread:$0]  %s41_s26, 1024, %s43_s27, [#allocation6]  }
   0xb   :  { %6811 = dma.done.wait [#allocation3], 128  }
   0xc   :  { %6812 = vsyncadd [#allocation3], 4294967168 }
   0xd   :  { %6813 = dma.done.wait [#allocation6], 17408  }
   0xe   :  { %6814 = vsyncadd [#allocation6], 4294949888  ;;  %v171_v0 = vld [vmem:[#allocation5 + $0x380] sm:$0xff]  ;;  %v172_v22 = vld [vmem:[#allocation5 + $0x388] sm:$0xff]  ;;  %vm187_vm0 = vcmask 523264   ;;  %s6829_s0 = smov [#allocation8]  }
   0xf   :  { %v155_v1 = vld [vmem:[#allocation5 + $0x300] sm:$0xff]  ;;  %v6859_v3 = vand.u32 4294901760, %v171_v0  ;;  %v156_v30 = vld [vmem:[#allocation5 + $0x308] sm:$0xff]  ;;  %v6918_v34 = vand.u32 4294901760, %v172_v22  ;;  %v58_v42 = vld [vmem:[#allocation2] sm:$0xff]  ;;  %s6631_s2 = sshll.u32 %s6829_s0, 4  ;;  %s6632_s2 = int_to_ptr.vmem [resolvable:$true] %s6631_s2 }
  0x10   :  { %v139_v2 = vld [vmem:[#allocation5 + $0x280] sm:$0xff]  ;;  %v6861_v4 = vand.u32 4294901760, %v155_v1  ;;  %v140_v37 = vld [vmem:[#allocation5 + $0x288] sm:$0xff]  ;;  %v6929_v40 = vand.u32 4294901760, %v156_v30  ;;  %v189_v54 = vsel %vm187_vm0, %v58_v42, 0  ;;  %s6633_s30 = sshll.u32 %s10968_s3, 4  ;;  %s6634_s30 = int_to_ptr.hbm [resolvable:$true] %s6633_s30 }
  0x11   :  { %v6863_v5 = vand.u32 4294901760, %v139_v2  ;;  %v123_v6 = vld [vmem:[#allocation5 + $0x200] sm:$0xff]  ;;  %200 = vmatpush.msra.mxu0 %v6859_v3  ;;  %v6873_v14 = vsub.f32 %v171_v0, %v6859_v3  ;;  %332 = vmatpush.msra.mxu3 %v6859_v3  ;;  %v124_v41 = vld [vmem:[#allocation5 + $0x208] sm:$0xff]  ;;  %v6941_v48 = vsub.f32 %v172_v22, %v6918_v34  ;;  %v6943_v49 = vand.u32 4294901760, %v140_v37 }
  0x12   :  { %v107_v7 = vld [vmem:[#allocation5 + $0x180] sm:$0xff]  ;;  %v6865_v9 = vand.u32 4294901760, %v123_v6  ;;  %v6876_v15 = vsub.f32 %v155_v1, %v6861_v4  ;;  %v108_v46 = vld [vmem:[#allocation5 + $0x188] sm:$0xff]  ;;  %v6946_v50 = vsub.f32 %v156_v30, %v6929_v40  ;;  %v6951_v53 = vand.u32 4294901760, %v124_v41 }
  0x13   :  { %v91_v8 = vld [vmem:[#allocation5 + $0x100] sm:$0xff]  ;;  %v6867_v10 = vand.u32 4294901760, %v107_v7  ;;  %v6880_v16 = vsub.f32 %v139_v2, %v6863_v5  ;;  %295 = vmatpush.msra.mxu2 %v6873_v14  ;;  %202 = vmatpush.msra.mxu0 %v6861_v4  ;;  %v234_v23 = vand.u32 4294901760, %v6873_v14  ;;  %v92_v55 = vld [vmem:[#allocation5 + $0x108] sm:$0xff]  ;;  %v471_v56 = vand.u32 4294901760, %v6941_v48 }
  0x14   :  { %v6869_v11 = vand.u32 4294901760, %v91_v8  ;;  %v75_v12 = vld [vmem:[#allocation5 + $0x80] sm:$0xff]  ;;  %v6885_v18 = vsub.f32 %v123_v6, %v6865_v9  ;;  %v240_v24 = vand.u32 4294901760, %v6876_v15  ;;  %334 = vmatpush.msra.mxu3 %v6861_v4  ;;  %v477_v57 = vand.u32 4294901760, %v6946_v50  ;;  %v76_v0 = vld [vmem:[#allocation5 + $0x88] sm:$0xff] }
  0x15   :  { %v59_v13 = vld [vmem:[#allocation5] sm:$0xff]  ;;  %v6882_v17 = vand.u32 4294901760, %v75_v12  ;;  %v6888_v19 = vsub.f32 %v107_v7, %v6867_v10  ;;  %v246_v25 = vand.u32 4294901760, %v6880_v16  ;;  %298 = vmatpush.msra.mxu2 %v6876_v15  ;;  %204 = vmatpush.msra.mxu0 %v6863_v5  ;;  %v235_v31 = vsub.f32 %v6873_v14, %v234_v23  ;;  %v60_v30 = vld [vmem:[#allocation5 + $0x8] sm:$0xff] }
  0x16   :  { %v6891_v20 = vsub.f32 %v91_v8, %v6869_v11  ;;  %v6893_v21 = vand.u32 4294901760, %v59_v13  ;;  %v252_v26 = vand.u32 4294901760, %v6885_v18  ;;  %v241_v32 = vsub.f32 %v6876_v15, %v240_v24  ;;  %336 = vmatpush.msra.mxu3 %v6863_v5 }
  0x17   :  { %v258_v27 = vand.u32 4294901760, %v6888_v19  ;;  %v6904_v28 = vsub.f32 %v75_v12, %v6882_v17  ;;  %v247_v33 = vsub.f32 %v6880_v16, %v246_v25  ;;  %v236_v38 = vand.u32 4294901760, %v235_v31  ;;  %301 = vmatpush.msra.mxu2 %v6880_v16  ;;  %206 = vmatpush.msra.mxu0 %v6865_v9 }
  0x18   :  { %v264_v29 = vand.u32 4294901760, %v6891_v20  ;;  %v253_v35 = vsub.f32 %v6885_v18, %v252_v26  ;;  %v6925_v36 = vsub.f32 %v59_v13, %v6893_v21  ;;  %v242_v39 = vand.u32 4294901760, %v241_v32  ;;  %338 = vmatpush.msra.mxu3 %v6865_v9 }
  0x19   :  { %v259_v43 = vsub.f32 %v6888_v19, %v258_v27  ;;  %v270_v45 = vand.u32 4294901760, %v6904_v28  ;;  %237 = vmatpush.msra.mxu1 %v236_v38  ;;  %304 = vmatpush.msra.mxu2 %v6885_v18  ;;  %v248_v47 = vand.u32 4294901760, %v247_v33  ;;  %v6958_v58 = vsub.f32 %v140_v37, %v6943_v49 }
  0x1a   :  { %v265_v44 = vsub.f32 %v6891_v20, %v264_v29  ;;  %208 = vmatpush.msra.mxu0 %v6867_v10  ;;  %v254_v51 = vand.u32 4294901760, %v253_v35  ;;  %340 = vmatpush.msra.mxu3 %v6867_v10  ;;  %v276_v52 = vand.u32 4294901760, %v6925_v36  ;;  %v6960_v59 = vand.u32 4294901760, %v108_v46 }
  0x1b   :  { %243 = vmatpush.msra.mxu1 %v242_v39  ;;  %307 = vmatpush.msra.mxu2 %v6888_v19  ;;  %v260_v60 = vand.u32 4294901760, %v259_v43  ;;  %v271_v61 = vsub.f32 %v6904_v28, %v270_v45  ;;  %v6967_v62 = vand.u32 4294901760, %v189_v54  ;;  %v6970_v63 = vsub.f32 %v124_v41, %v6951_v53 }
  0x1c   :  { %210 = vmatpush.msra.mxu0 %v6869_v11  ;;  %342 = vmatpush.msra.mxu3 %v6869_v11  ;;  %v472_v1 = vsub.f32 %v6941_v48, %v471_v56  ;;  %v478_v2 = vsub.f32 %v6946_v50, %v477_v57  ;;  %v483_v6 = vand.u32 4294901760, %v6958_v58  ;;  %v6980_v7 = vand.u32 4294901760, %v92_v55 }
  0x1d   :  { %249 = vmatpush.msra.mxu1 %v248_v47  ;;  %310 = vmatpush.msra.mxu2 %v6891_v20  ;;  %v266_v8 = vand.u32 4294901760, %v265_v44  ;;  %v277_v12 = vsub.f32 %v6925_v36, %v276_v52  ;;  %v6988_v13 = vsub.f32 %v189_v54, %v6967_v62  ;;  %v489_v22 = vand.u32 4294901760, %v6970_v63 }
  0x1e   :  { %212 = vmatpush.msra.mxu0 %v6882_v17  ;;  %344 = vmatpush.msra.mxu3 %v6882_v17  ;;  %v473_v31 = vand.u32 4294901760, %v472_v1  ;;  %v484_v32 = vsub.f32 %v6958_v58, %v483_v6  ;;  %v6996_v33 = vsub.f32 %v108_v46, %v6960_v59  ;;  %v6998_v35 = vand.u32 4294901760, %v76_v0 }
  0x1f   :  { %255 = vmatpush.msra.mxu1 %v254_v51  ;;  %313 = vmatpush.msra.mxu2 %v6904_v28  ;;  %v272_v37 = vand.u32 4294901760, %v271_v61  ;;  %v7003_v38 = vand.u32 4294901760, %v6988_v13  ;;  %v479_v39 = vand.u32 4294901760, %v478_v2  ;;  %v490_v41 = vsub.f32 %v6970_v63, %v489_v22 }
  0x20   :  { %214 = vmatpush.msra.mxu0 %v6893_v21  ;;  %346 = vmatpush.msra.mxu3 %v6893_v21  ;;  %v7010_v42 = vsub.f32 %v92_v55, %v6980_v7  ;;  %v7012_v43 = vand.u32 4294901760, %v60_v30  ;;  %v278_v44 = vand.u32 4294901760, %v277_v12  ;;  %v485_v46 = vand.u32 4294901760, %v484_v32 }
  0x21   :  { %261 = vmatpush.msra.mxu1 %v260_v60  ;;  %316 = vmatpush.msra.mxu2 %v6925_v36  ;;  %v495_v47 = vand.u32 4294901760, %v6996_v33  ;;  %v7019_v51 = vsub.f32 %v76_v0, %v6998_v35  ;;  %v218_v14 = vsub.f32 %v6988_v13, %v7003_v38 }
  0x22   :  { %365 = vmatpush.msrb.mxu0 %v234_v23  ;;  %474 = vmatpush.msrb.mxu3 %v473_v31  ;;  %v491_v23 = vand.u32 4294901760, %v490_v41  ;;  %v501_v54 = vand.u32 4294901760, %v7010_v42  ;;  %v7028_v55 = vsub.f32 %v60_v30, %v7012_v43  ;;  %v142_v30 = vld [vmem:[#allocation5 + $0x298] sm:$0xff] }
  0x23   :  { %437 = vmatpush.msrb.mxu2 %v6918_v34  ;;  %267 = vmatpush.msra.mxu1 %v266_v8  ;;  %v496_v15 = vsub.f32 %v6996_v33, %v495_v47  ;;  %v7040_v60 = vand.u32 4294901760, %v218_v14 }
  0x24   :  { %369 = vmatpush.msrb.mxu0 %v240_v24  ;;  %480 = vmatpush.msrb.mxu3 %v479_v39  ;;  %v507_v24 = vand.u32 4294901760, %v7019_v51  ;;  %v502_v16 = vsub.f32 %v7010_v42, %v501_v54 }
  0x25   :  { %439 = vmatpush.msrb.mxu2 %v6929_v40  ;;  %273 = vmatpush.msra.mxu1 %v272_v37 }
  0x26   :  { %373 = vmatpush.msrb.mxu0 %v246_v25  ;;  %486 = vmatpush.msrb.mxu3 %v485_v46  ;;  %v513_v25 = vand.u32 4294901760, %v7028_v55  ;;  %v508_v18 = vsub.f32 %v7019_v51, %v507_v24  ;;  %v7194_v46 = vand.u32 4294901760, %v142_v30 }
  0x27   :  { %441 = vmatpush.msrb.mxu2 %v6943_v49  ;;  %279 = vmatpush.msra.mxu1 %v278_v44 }
  0x28   :  { %377 = vmatpush.msrb.mxu0 %v252_v26  ;;  %492 = vmatpush.msrb.mxu3 %v491_v23  ;;  %v514_v19 = vsub.f32 %v7028_v55, %v513_v25  ;;  %v141_v26 = vld [vmem:[#allocation5 + $0x290] sm:$0xff] }
  0x29   :  { %408 = vmatpush.msrb.mxu1 %v6859_v3  ;;  %443 = vmatpush.msrb.mxu2 %v6951_v53  ;;  %v497_v3 = vand.u32 4294901760, %v496_v15  ;;  %v7104_v28 = vand.u32 4294901760, %v141_v26  ;;  %v110_v15 = vld [vmem:[#allocation5 + $0x198] sm:$0xff] }
  0x2a   :  { %319 = vmatmul.f32.vlgmr.msra.gmra.mxu2 %v6988_v13  ;;  %381 = vmatpush.msrb.mxu0 %v258_v27  ;;  %v515_v20 = vand.u32 4294901760, %v514_v19  ;;  %v125_v27 = vld [vmem:[#allocation5 + $0x210] sm:$0xff] }
  0x2b   :  { %410 = vmatpush.msrb.mxu1 %v6861_v4  ;;  %445 = vmatpush.msrb.mxu2 %v6960_v59  ;;  %v503_v4 = vand.u32 4294901760, %v502_v16  ;;  %v7114_v36 = vand.u32 4294901760, %v125_v27 }
  0x2c   :  { %220 = vmatmul.f32.vlgmr.msra.gmra.mxu0 %v7040_v60  ;;  %350 = vmatmul.f32.vlgmr.msra.gmra.mxu3 %v7003_v38 }
  0x2d   :  { %412 = vmatpush.msrb.mxu1 %v6863_v5  ;;  %385 = vmatpush.msrb.mxu0 %v264_v29  ;;  %v509_v5 = vand.u32 4294901760, %v508_v18  ;;  %v94_v18 = vld [vmem:[#allocation5 + $0x118] sm:$0xff] }
  0x2e   :  { %447 = vmatpush.msrb.mxu2 %v6980_v7  ;;  %498 = vmatpush.msrb.mxu3 %v497_v3  ;;  %v7217_v3 = vsub.f32 %v142_v30, %v7194_v46 }
  0x2f   :  { %414 = vmatpush.msrb.mxu1 %v6865_v9  ;;  %389 = vmatpush.msrb.mxu0 %v270_v45  ;;  %v173_v9 = vld [vmem:[#allocation5 + $0x390] sm:$0xff] }
  0x30   :  { %281 = vmatmul.f32.vlgmr.msra.gmra.mxu1 %v6967_v62  ;;  %449 = vmatpush.msrb.mxu2 %v6998_v35  ;;  %v93_v45 = vld [vmem:[#allocation5 + $0x110] sm:$0xff] }
  0x31   :  { %416 = vmatpush.msrb.mxu1 %v6867_v10  ;;  %504 = vmatpush.msrb.mxu3 %v503_v4  ;;  %v157_v10 = vld [vmem:[#allocation5 + $0x310] sm:$0xff] }
  0x32   :  { %393 = vmatpush.msrb.mxu0 %v276_v52  ;;  %451 = vmatpush.msrb.mxu2 %v7012_v43  ;;  %v77_v52 = vld [vmem:[#allocation5 + $0x90] sm:$0xff] }
  0x33   :  { %418 = vmatpush.msrb.mxu1 %v6869_v11  ;;  %510 = vmatpush.msrb.mxu3 %v509_v5  ;;  %v7086_v11 = vand.u32 4294901760, %v173_v9  ;;  %v7150_v0 = vand.u32 4294901760, %v77_v52 }
  0x34   :  { %532 = vmatpush.msra.mxu0 %v6941_v48  ;;  %602 = vmatpush.msra.mxu2 %v471_v56  ;;  %v7123_v48 = vsub.f32 %v141_v26, %v7104_v28  ;;  %v7136_v56 = vand.u32 4294901760, %v93_v45  ;;  %v78_v26 = vld [vmem:[#allocation5 + $0x98] sm:$0xff] }
  0x35   :  { %420 = vmatpush.msrb.mxu1 %v6882_v17  ;;  %516 = vmatpush.msrb.mxu3 %v515_v20  ;;  %v7092_v17 = vand.u32 4294901760, %v157_v10  ;;  %v7226_v20 = vand.u32 4294901760, %v110_v15 }
  0x36   :  { %395 = vmatmul.f32.vlgmr.msrb.gmra.mxu0 %v6967_v62  ;;  %606 = vmatpush.msra.mxu2 %v477_v57  ;;  %v174_v57 = vld [vmem:[#allocation5 + $0x398] sm:$0xff]  ;;  %v720_v61 = vand.u32 4294901760, %v7123_v48  ;;  %v7163_v8 = vsub.f32 %v93_v45, %v7136_v56  ;;  %v957_v45 = vand.u32 4294901760, %v7217_v3 }
  0x37   :  { %535 = vmatpush.msra.mxu0 %v6946_v50  ;;  %645 = vmatpush.msra.mxu3 %v6918_v34  ;;  %v7110_v29 = vsub.f32 %v157_v10, %v7092_v17  ;;  %v7157_v2 = vand.u32 4294901760, %v174_v57 }
  0x38   :  { %422 = vmatpush.msrb.mxu1 %v6893_v21  ;;  %610 = vmatpush.msra.mxu2 %v483_v6  ;;  %v7100_v21 = vsub.f32 %v173_v9, %v7086_v11  ;;  %v158_v6 = vld [vmem:[#allocation5 + $0x318] sm:$0xff]  ;;  %v721_v31 = vsub.f32 %v7123_v48, %v720_v61 }
  0x39   :  { %424 = vmatmul.f32.vlgmr.msrb.gmra.mxu1 %v6967_v62  ;;  %538 = vmatpush.msra.mxu0 %v6958_v58  ;;  %v714_v50 = vand.u32 4294901760, %v7110_v29  ;;  %v7183_v39 = vsub.f32 %v174_v57, %v7157_v2  ;;  %v62_v57 = vld [vmem:[#allocation5 + $0x18] sm:$0xff] }
  0x3a   :  { %569 = vmatpush.msra.mxu1 %v6918_v34  ;;  %647 = vmatpush.msra.mxu3 %v6929_v40  ;;  %v109_v34 = vld [vmem:[#allocation5 + $0x190] sm:$0xff] }
  0x3b   :  { %541 = vmatpush.msra.mxu0 %v6970_v63  ;;  %614 = vmatpush.msra.mxu2 %v489_v22  ;;  %v715_v1 = vsub.f32 %v7110_v29, %v714_v50 }
  0x3c   :  { %571 = vmatpush.msra.mxu1 %v6929_v40  ;;  %649 = vmatpush.msra.mxu3 %v6943_v49  ;;  %v708_v40 = vand.u32 4294901760, %v7100_v21 }
  0x3d   :  { %457 = vmatmul.f32.vlgmr.msrb.gmra.mxu2 %v7040_v60  ;;  %544 = vmatpush.msra.mxu0 %v6996_v33  ;;  %v7176_v33 = vsub.f32 %v77_v52, %v7150_v0  ;;  %v716_v37 = vand.u32 4294901760, %v715_v1  ;;  %v7241_v52 = vand.u32 4294901760, %v94_v18  ;;  %v7250_v1 = vsub.f32 %v110_v15, %v7226_v20 }
  0x3e   :  { %573 = vmatpush.msra.mxu1 %v6943_v49  ;;  %618 = vmatpush.msra.mxu2 %v495_v47  ;;  %v7125_v49 = vand.u32 4294901760, %v109_v34  ;;  %v709_v58 = vsub.f32 %v7100_v21, %v708_v40  ;;  %v126_v47 = vld [vmem:[#allocation5 + $0x218] sm:$0xff] }
  0x3f   :  { %651 = vmatpush.msra.mxu3 %v6951_v53  ;;  %547 = vmatpush.msra.mxu0 %v7010_v42  ;;  %v738_v42 = vand.u32 4294901760, %v7163_v8  ;;  %v744_v14 = vand.u32 4294901760, %v7176_v33 }
  0x40   :  { %518 = vmatmul.f32.vlgmr.msrb.gmra.mxu3 %v6967_v62  ;;  %575 = vmatpush.msra.mxu1 %v6951_v53  ;;  %v7134_v53 = vsub.f32 %v125_v27, %v7114_v36  ;;  %v7148_v63 = vsub.f32 %v109_v34, %v7125_v49  ;;  %v710_v22 = vand.u32 4294901760, %v709_v58 }
  0x41   :  { %622 = vmatpush.msra.mxu2 %v501_v54  ;;  %653 = vmatpush.msra.mxu3 %v6960_v59  ;;  %v945_v54 = vand.u32 4294901760, %v7183_v39  ;;  %v739_v16 = vsub.f32 %v7163_v8, %v738_v42  ;;  %v745_v19 = vsub.f32 %v7176_v33, %v744_v14 }
  0x42   :  { %550 = vmatpush.msra.mxu0 %v7019_v51  ;;  %577 = vmatpush.msra.mxu1 %v6960_v59  ;;  %v61_v59 = vld [vmem:[#allocation5 + $0x10] sm:$0xff]  ;;  %v732_v32 = vand.u32 4294901760, %v7148_v63 }
  0x43   :  { %626 = vmatpush.msra.mxu2 %v507_v24  ;;  %655 = vmatpush.msra.mxu3 %v6980_v7  ;;  %v7165_v12 = vand.u32 4294901760, %v61_v59  ;;  %v946_v9 = vsub.f32 %v7183_v39, %v945_v54  ;;  %v740_v27 = vand.u32 4294901760, %v739_v16  ;;  %v746_v58 = vand.u32 4294901760, %v745_v19  ;;  %v63_v19 = vld [vmem:[#allocation5 + $0x20] sm:$0xff] }
  0x44   :  { %553 = vmatpush.msra.mxu0 %v7028_v55  ;;  %579 = vmatpush.msra.mxu1 %v6980_v7  ;;  %v726_v7 = vand.u32 4294901760, %v7134_v53  ;;  %v733_v51 = vsub.f32 %v7148_v63, %v732_v32  ;;  %v7209_v55 = vand.u32 4294901760, %v126_v47 }
  0x45   :  { %630 = vmatpush.msra.mxu2 %v513_v25  ;;  %657 = vmatpush.msra.mxu3 %v6998_v35  ;;  %v7192_v44 = vsub.f32 %v61_v59, %v7165_v12 }
  0x46   :  { %632 = vmatmul.f32.vlgmr.msra.gmra.mxu2 %v6967_v62  ;;  %674 = vmatpush.msrb.mxu0 %v7086_v11  ;;  %v727_v41 = vsub.f32 %v7134_v53, %v726_v7  ;;  %v734_v4 = vand.u32 4294901760, %v733_v51  ;;  %v7234_v10 = vsub.f32 %v126_v47, %v7209_v55  ;;  %v7264_v47 = vand.u32 4294901760, %v62_v57 }
  0x47   :  { %769 = vmatpush.msrb.mxu2 %v7100_v21  ;;  %581 = vmatpush.msra.mxu1 %v6998_v35  ;;  %v7178_v35 = vand.u32 4294901760, %v158_v6  ;;  %v750_v25 = vand.u32 4294901760, %v7192_v44  ;;  %v969_v51 = vand.u32 4294901760, %v7250_v1 }
  0x48   :  { %659 = vmatpush.msra.mxu3 %v7012_v43  ;;  %556 = vmatmul.f32.vlgmr.msra.gmra.mxu0 %v6988_v13  ;;  %v728_v24 = vand.u32 4294901760, %v727_v41  ;;  %v963_v30 = vand.u32 4294901760, %v7234_v10  ;;  %v7262_v41 = vsub.f32 %v94_v18, %v7241_v52  ;;  %v7282_v16 = vsub.f32 %v62_v57, %v7264_v47 }
  0x49   :  { %661 = vmatmul.f32.vlgmr.msra.gmra.mxu3 %v6967_v62  ;;  %676 = vmatpush.msrb.mxu0 %v7092_v17  ;;  %v7204_v23 = vsub.f32 %v158_v6, %v7178_v35  ;;  %v751_v34 = vsub.f32 %v7192_v44, %v750_v25  ;;  %v7252_v6 = vand.u32 4294901760, %v78_v26 }
  0x4a   :  { %772 = vmatpush.msrb.mxu2 %v7110_v29  ;;  %806 = vmatpush.msrb.mxu3 %v7086_v11  ;;  %v964_v21 = vsub.f32 %v7234_v10, %v963_v30  ;;  %v970_v29 = vsub.f32 %v7250_v1, %v969_v51 }
  0x4b   :  { %583 = vmatpush.msra.mxu1 %v7012_v43  ;;  %678 = vmatpush.msrb.mxu0 %v7104_v28  ;;  %v722_v43 = vand.u32 4294901760, %v721_v31  ;;  %v951_v5 = vand.u32 4294901760, %v7204_v23  ;;  %v752_v31 = vand.u32 4294901760, %v751_v34  ;;  %v7272_v15 = vsub.f32 %v78_v26, %v7252_v6 }
  0x4c   :  { %587 = vmatmul.f32.vlgmr.msra.gmra.mxu1 %v7003_v38  ;;  %775 = vmatpush.msrb.mxu2 %v7123_v48  ;;  %v965_v18 = vand.u32 4294901760, %v964_v21  ;;  %v987_v48 = vand.u32 4294901760, %v7282_v16 }
  0x4d   :  { %711 = vmatpush.msrb.mxu1 %v710_v22  ;;  %808 = vmatpush.msrb.mxu3 %v7092_v17  ;;  %v952_v59 = vsub.f32 %v7204_v23, %v951_v5  ;;  %v947_v22 = vand.u32 4294901760, %v946_v9 }
  0x4e   :  { %680 = vmatpush.msrb.mxu0 %v7114_v36  ;;  %778 = vmatpush.msrb.mxu2 %v7134_v53 }
  0x4f   :  { %717 = vmatpush.msrb.mxu1 %v716_v37  ;;  %810 = vmatpush.msrb.mxu3 %v7104_v28  ;;  %v958_v37 = vsub.f32 %v7217_v3, %v957_v45 }
  0x50   :  { %682 = vmatpush.msrb.mxu0 %v7125_v49  ;;  %781 = vmatpush.msrb.mxu2 %v7148_v63 }
  0x51   :  { %723 = vmatpush.msrb.mxu1 %v722_v43  ;;  %812 = vmatpush.msrb.mxu3 %v7114_v36  ;;  %v953_v43 = vand.u32 4294901760, %v952_v59 }
  0x52   :  { %684 = vmatpush.msrb.mxu0 %v7136_v56  ;;  %784 = vmatpush.msrb.mxu2 %v7163_v8  ;;  %v143_v8 = vld [vmem:[#allocation5 + $0x2a0] sm:$0xff] }
  0x53   :  { %729 = vmatpush.msrb.mxu1 %v728_v24  ;;  %814 = vmatpush.msrb.mxu3 %v7125_v49  ;;  %v975_v24 = vand.u32 4294901760, %v7262_v41 }
  0x54   :  { %686 = vmatpush.msrb.mxu0 %v7150_v0  ;;  %787 = vmatpush.msrb.mxu2 %v7176_v33 }
  0x55   :  { %735 = vmatpush.msrb.mxu1 %v734_v4  ;;  %816 = vmatpush.msrb.mxu3 %v7136_v56 }
  0x56   :  { %688 = vmatpush.msrb.mxu0 %v7165_v12  ;;  %790 = vmatpush.msrb.mxu2 %v7192_v44  ;;  %v95_v44 = vld [vmem:[#allocation5 + $0x120] sm:$0xff] }
  0x57   :  { %741 = vmatpush.msrb.mxu1 %v740_v27  ;;  %818 = vmatpush.msrb.mxu3 %v7150_v0  ;;  %v160_v27 = vld [vmem:[#allocation5 + $0x328] sm:$0xff] }
  0x58   :  { %839 = vmatpush.msra.mxu0 %v708_v40  ;;  %911 = vmatpush.msra.mxu2 %v7157_v2  ;;  %v959_v40 = vand.u32 4294901760, %v958_v37 }
  0x59   :  { %747 = vmatpush.msrb.mxu1 %v746_v58  ;;  %820 = vmatpush.msrb.mxu3 %v7165_v12  ;;  %v144_v58 = vld [vmem:[#allocation5 + $0x2a8] sm:$0xff] }
  0x5a   :  { %843 = vmatpush.msra.mxu0 %v714_v50  ;;  %913 = vmatpush.msra.mxu2 %v7178_v35  ;;  %v981_v50 = vand.u32 4294901760, %v7272_v15 }
  0x5b   :  { %948 = vmatpush.msra.mxu3 %v947_v22  ;;  %753 = vmatpush.msrb.mxu1 %v752_v31  ;;  %v7430_v22 = vand.u32 4294901760, %v160_v27 }
  0x5c   :  { %847 = vmatpush.msra.mxu0 %v720_v61  ;;  %915 = vmatpush.msra.mxu2 %v7194_v46  ;;  %v982_v53 = vsub.f32 %v7272_v15, %v981_v50 }
  0x5d   :  { %882 = vmatpush.msra.mxu1 %v7086_v11  ;;  %954 = vmatpush.msra.mxu3 %v953_v43  ;;  %v976_v11 = vsub.f32 %v7262_v41, %v975_v24 }
  0x5e   :  { %851 = vmatpush.msra.mxu0 %v726_v7  ;;  %917 = vmatpush.msra.mxu2 %v7209_v55  ;;  %v983_v63 = vand.u32 4294901760, %v982_v53  ;;  %v96_v53 = vld [vmem:[#allocation5 + $0x128] sm:$0xff] }
  0x5f   :  { %884 = vmatpush.msra.mxu1 %v7092_v17  ;;  %960 = vmatpush.msra.mxu3 %v959_v40  ;;  %v971_v17 = vand.u32 4294901760, %v970_v29  ;;  %v977_v61 = vand.u32 4294901760, %v976_v11 }
  0x60   :  { %793 = vmatmul.f32.vlgmr.msrb.gmra.mxu2 %v6988_v13  ;;  %855 = vmatpush.msra.mxu0 %v732_v32  ;;  %v127_v32 = vld [vmem:[#allocation5 + $0x220] sm:$0xff] }
  0x61   :  { %886 = vmatpush.msra.mxu1 %v7104_v28  ;;  %919 = vmatpush.msra.mxu2 %v7226_v20  ;;  %v988_v28 = vsub.f32 %v7282_v16, %v987_v48 }
  0x62   :  { %966 = vmatpush.msra.mxu3 %v965_v18  ;;  %694 = vmatmul.f32.vlgmr.msrb.gmra.mxu0 %v7040_v60 }
  0x63   :  { %824 = vmatmul.f32.vlgmr.msrb.gmra.mxu3 %v7003_v38  ;;  %859 = vmatpush.msra.mxu0 %v738_v42  ;;  %v989_v7 = vand.u32 4294901760, %v988_v28 }
  0x64   :  { %888 = vmatpush.msra.mxu1 %v7114_v36  ;;  %921 = vmatpush.msra.mxu2 %v7241_v52  ;;  %v175_v36 = vld [vmem:[#allocation5 + $0x3a0] sm:$0xff] }
  0x65   :  { %972 = vmatpush.msra.mxu3 %v971_v17  ;;  %755 = vmatmul.f32.vlgmr.msrb.gmra.mxu1 %v6967_v62 }
  0x66   :  { %863 = vmatpush.msra.mxu0 %v744_v14  ;;  %890 = vmatpush.msra.mxu1 %v7125_v49  ;;  %v159_v49 = vld [vmem:[#allocation5 + $0x320] sm:$0xff] }
  0x67   :  { %923 = vmatpush.msra.mxu2 %v7252_v6  ;;  %978 = vmatpush.msra.mxu3 %v977_v61 }
  0x68   :  { %867 = vmatpush.msra.mxu0 %v750_v25  ;;  %892 = vmatpush.msra.mxu1 %v7136_v56  ;;  %v7338_v56 = vand.u32 4294901760, %v175_v36  ;;  %v7388_v25 = vand.u32 4294901760, %v95_v44 }
  0x69   :  { %925 = vmatpush.msra.mxu2 %v7264_v47  ;;  %984 = vmatpush.msra.mxu3 %v983_v63 }
  0x6a   :  { %1006 = vmatpush.msrb.mxu0 %v7183_v39  ;;  %894 = vmatpush.msra.mxu1 %v7150_v0  ;;  %v7344_v0 = vand.u32 4294901760, %v159_v49  ;;  %v7366_v39 = vand.u32 4294901760, %v127_v32 }
  0x6b   :  { %1076 = vmatpush.msrb.mxu2 %v945_v54  ;;  %990 = vmatpush.msra.mxu3 %v989_v7  ;;  %v79_v54 = vld [vmem:[#allocation5 + $0xa0] sm:$0xff] }
  0x6c   :  { %869 = vmatmul.f32.vlgmr.msra.gmra.mxu0 %v6967_v62  ;;  %896 = vmatpush.msra.mxu1 %v7165_v12  ;;  %v7352_v12 = vsub.f32 %v175_v36, %v7338_v56  ;;  %v7362_v33 = vsub.f32 %v159_v49, %v7344_v0  ;;  %v7402_v9 = vand.u32 4294901760, %v79_v54 }
  0x6d   :  { %1080 = vmatpush.msrb.mxu2 %v951_v5  ;;  %1009 = vmatpush.msrb.mxu0 %v7204_v23 }
  0x6e   :  { %1119 = vmatpush.msrb.mxu3 %v7157_v2  ;;  %898 = vmatmul.f32.vlgmr.msra.gmra.mxu1 %v6967_v62  ;;  %v1182_v42 = vand.u32 4294901760, %v7352_v12  ;;  %v1188_v23 = vand.u32 4294901760, %v7362_v33 }
  0x6f   :  { %1084 = vmatpush.msrb.mxu2 %v957_v45  ;;  %1012 = vmatpush.msrb.mxu0 %v7217_v3  ;;  %v176_v3 = vld [vmem:[#allocation5 + $0x3a8] sm:$0xff]  ;;  %v7415_v45 = vsub.f32 %v95_v44, %v7388_v25 }
  0x70   :  { %1043 = vmatpush.msrb.mxu1 %v7157_v2  ;;  %1121 = vmatpush.msrb.mxu3 %v7178_v35  ;;  %v7356_v2 = vand.u32 4294901760, %v143_v8  ;;  %v1183_v4 = vsub.f32 %v7352_v12, %v1182_v42  ;;  %v7409_v26 = vand.u32 4294901760, %v176_v3 }
  0x71   :  { %1015 = vmatpush.msrb.mxu0 %v7234_v10  ;;  %1088 = vmatpush.msrb.mxu2 %v963_v30  ;;  %v1189_v10 = vsub.f32 %v7362_v33, %v1188_v23 }
  0x72   :  { %1045 = vmatpush.msrb.mxu1 %v7178_v35  ;;  %1123 = vmatpush.msrb.mxu3 %v7194_v46  ;;  %v111_v35 = vld [vmem:[#allocation5 + $0x1a0] sm:$0xff]  ;;  %v1184_v57 = vand.u32 4294901760, %v1183_v4  ;;  %v7435_v31 = vsub.f32 %v176_v3, %v7409_v26  ;;  %v64_v3 = vld [vmem:[#allocation5 + $0x28] sm:$0xff] }
  0x73   :  { %931 = vmatmul.f32.vlgmr.msra.gmra.mxu2 %v7040_v60  ;;  %1018 = vmatpush.msrb.mxu0 %v7250_v1  ;;  %v7377_v14 = vand.u32 4294901760, %v111_v35  ;;  %v1190_v30 = vand.u32 4294901760, %v1189_v10 }
  0x74   :  { %1047 = vmatpush.msrb.mxu1 %v7194_v46  ;;  %1092 = vmatpush.msrb.mxu2 %v969_v51  ;;  %v7375_v46 = vsub.f32 %v143_v8, %v7356_v2  ;;  %v7446_v51 = vand.u32 4294901760, %v144_v58  ;;  %v80_v8 = vld [vmem:[#allocation5 + $0xa8] sm:$0xff] }
  0x75   :  { %1125 = vmatpush.msrb.mxu3 %v7209_v55  ;;  %1021 = vmatpush.msrb.mxu0 %v7262_v41  ;;  %v1212_v41 = vand.u32 4294901760, %v7415_v45 }
  0x76   :  { %992 = vmatmul.f32.vlgmr.msra.gmra.mxu3 %v6967_v62  ;;  %1049 = vmatpush.msrb.mxu1 %v7209_v55  ;;  %v7386_v55 = vsub.f32 %v127_v32, %v7366_v39  ;;  %v1194_v5 = vand.u32 4294901760, %v7375_v46  ;;  %v7469_v17 = vsub.f32 %v144_v58, %v7446_v51 }
  0x77   :  { %1096 = vmatpush.msrb.mxu2 %v975_v24  ;;  %1127 = vmatpush.msrb.mxu3 %v7226_v20  ;;  %v7456_v24 = vsub.f32 %v160_v27, %v7430_v22  ;;  %v1213_v11 = vsub.f32 %v7415_v45, %v1212_v41  ;;  %v7504_v27 = vand.u32 4294901760, %v80_v8 }
  0x78   :  { %1024 = vmatpush.msrb.mxu0 %v7272_v15  ;;  %1051 = vmatpush.msrb.mxu1 %v7226_v20  ;;  %v7400_v20 = vsub.f32 %v111_v35, %v7377_v14  ;;  %v1200_v34 = vand.u32 4294901760, %v7386_v55  ;;  %v1195_v59 = vsub.f32 %v7375_v46, %v1194_v5  ;;  %v128_v15 = vld [vmem:[#allocation5 + $0x228] sm:$0xff]  ;;  %v1431_v44 = vand.u32 4294901760, %v7469_v17 }
  0x79   :  { %1100 = vmatpush.msrb.mxu2 %v981_v50  ;;  %1129 = vmatpush.msrb.mxu3 %v7241_v52  ;;  %v7461_v29 = vand.u32 4294901760, %v128_v15  ;;  %v112_v50 = vld [vmem:[#allocation5 + $0x1a8] sm:$0xff]  ;;  %v1425_v63 = vand.u32 4294901760, %v7456_v24  ;;  %v1214_v32 = vand.u32 4294901760, %v1213_v11 }
  0x7a   :  { %1027 = vmatpush.msrb.mxu0 %v7282_v16  ;;  %1053 = vmatpush.msrb.mxu1 %v7241_v52  ;;  %v7417_v52 = vand.u32 4294901760, %v63_v19  ;;  %v1206_v1 = vand.u32 4294901760, %v7400_v20  ;;  %v1201_v37 = vsub.f32 %v7386_v55, %v1200_v34  ;;  %v1419_v16 = vand.u32 4294901760, %v7435_v31 }
  0x7b   :  { %1104 = vmatpush.msrb.mxu2 %v987_v48  ;;  %1131 = vmatpush.msrb.mxu3 %v7252_v6  ;;  %v7478_v7 = vand.u32 4294901760, %v112_v50  ;;  %v7486_v49 = vsub.f32 %v128_v15, %v7461_v29  ;;  %v7516_v15 = vand.u32 4294901760, %v64_v3 }
  0x7c   :  { %1106 = vmatmul.f32.vlgmr.msrb.gmra.mxu2 %v6967_v62  ;;  %1148 = vmatpush.msra.mxu0 %v7338_v56  ;;  %v7444_v43 = vsub.f32 %v63_v19, %v7417_v52  ;;  %v1207_v21 = vsub.f32 %v7400_v20, %v1206_v1  ;;  %v1202_v18 = vand.u32 4294901760, %v1201_v37  ;;  %v1420_v36 = vsub.f32 %v7435_v31, %v1419_v16 }
  0x7d   :  { %1243 = vmatpush.msra.mxu2 %v7352_v12  ;;  %1055 = vmatpush.msrb.mxu1 %v7252_v6  ;;  %v7428_v6 = vsub.f32 %v79_v54, %v7402_v9  ;;  %v7493_v54 = vand.u32 4294901760, %v96_v53  ;;  %v1426_v19 = vsub.f32 %v7456_v24, %v1425_v63  ;;  %v7502_v10 = vsub.f32 %v112_v50, %v7478_v7 }
  0x7e   :  { %1133 = vmatpush.msrb.mxu3 %v7264_v47  ;;  %1030 = vmatmul.f32.vlgmr.msrb.gmra.mxu0 %v6988_v13  ;;  %v1224_v48 = vand.u32 4294901760, %v7444_v43  ;;  %v1208_v61 = vand.u32 4294901760, %v1207_v21  ;;  %v1437_v58 = vand.u32 4294901760, %v7486_v49  ;;  %v7524_v50 = vsub.f32 %v80_v8, %v7504_v27  ;;  %v178_v8 = vld [vmem:[#allocation5 + $0x3b8] sm:$0xff] }
  0x7f   :  { %1135 = vmatmul.f32.vlgmr.msrb.gmra.mxu3 %v6967_v62  ;;  %1150 = vmatpush.msra.mxu0 %v7344_v0  ;;  %v1218_v40 = vand.u32 4294901760, %v7428_v6  ;;  %v7514_v37 = vsub.f32 %v96_v53, %v7493_v54  ;;  %v1443_v21 = vand.u32 4294901760, %v7502_v10  ;;  %v7534_v11 = vsub.f32 %v64_v3, %v7516_v15 }
  0x80   :  { %1246 = vmatpush.msra.mxu2 %v7362_v33  ;;  %1280 = vmatpush.msra.mxu3 %v7338_v56  ;;  %v1225_v35 = vsub.f32 %v7444_v43, %v1224_v48  ;;  %v1438_v12 = vsub.f32 %v7486_v49, %v1437_v58 }
  0x81   :  { %1057 = vmatpush.msrb.mxu1 %v7264_v47  ;;  %1152 = vmatpush.msra.mxu0 %v7356_v2  ;;  %v1196_v47 = vand.u32 4294901760, %v1195_v59  ;;  %v1219_v28 = vsub.f32 %v7428_v6, %v1218_v40  ;;  %v1444_v33 = vsub.f32 %v7502_v10, %v1443_v21 }
  0x82   :  { %1061 = vmatmul.f32.vlgmr.msrb.gmra.mxu1 %v7003_v38  ;;  %1249 = vmatpush.msra.mxu2 %v7375_v46  ;;  %v1226_v59 = vand.u32 4294901760, %v1225_v35  ;;  %v1439_v53 = vand.u32 4294901760, %v1438_v12  ;;  %v1461_v46 = vand.u32 4294901760, %v7534_v11  ;;  %v130_v12 = vld [vmem:[#allocation5 + $0x238] sm:$0xff] }
  0x83   :  { %1185 = vmatpush.msra.mxu1 %v1184_v57  ;;  %1282 = vmatpush.msra.mxu3 %v7344_v0  ;;  %v1220_v4 = vand.u32 4294901760, %v1219_v28  ;;  %v1421_v57 = vand.u32 4294901760, %v1420_v36 }
  0x84   :  { %1154 = vmatpush.msra.mxu0 %v7366_v39  ;;  %1252 = vmatpush.msra.mxu2 %v7386_v55 }
  0x85   :  { %1191 = vmatpush.msra.mxu1 %v1190_v30  ;;  %1284 = vmatpush.msra.mxu3 %v7356_v2  ;;  %v1432_v30 = vsub.f32 %v7469_v17, %v1431_v44 }
  0x86   :  { %1156 = vmatpush.msra.mxu0 %v7377_v14  ;;  %1255 = vmatpush.msra.mxu2 %v7400_v20 }
  0x87   :  { %1197 = vmatpush.msra.mxu1 %v1196_v47  ;;  %1286 = vmatpush.msra.mxu3 %v7366_v39  ;;  %v1427_v47 = vand.u32 4294901760, %v1426_v19 }
  0x88   :  { %1158 = vmatpush.msra.mxu0 %v7388_v25  ;;  %1258 = vmatpush.msra.mxu2 %v7415_v45 }
  0x89   :  { %1203 = vmatpush.msra.mxu1 %v1202_v18  ;;  %1288 = vmatpush.msra.mxu3 %v7377_v14  ;;  %v1449_v18 = vand.u32 4294901760, %v7514_v37 }
  0x8a   :  { %1160 = vmatpush.msra.mxu0 %v7402_v9  ;;  %1261 = vmatpush.msra.mxu2 %v7428_v6 }
  0x8b   :  { %1209 = vmatpush.msra.mxu1 %v1208_v61  ;;  %1290 = vmatpush.msra.mxu3 %v7388_v25 }
  0x8c   :  { %1162 = vmatpush.msra.mxu0 %v7417_v52  ;;  %1264 = vmatpush.msra.mxu2 %v7444_v43 }
  0x8d   :  { %1215 = vmatpush.msra.mxu1 %v1214_v32  ;;  %1292 = vmatpush.msra.mxu3 %v7402_v9  ;;  %v162_v32 = vld [vmem:[#allocation5 + $0x338] sm:$0xff] }
  0x8e   :  { %1313 = vmatpush.msrb.mxu0 %v1182_v42  ;;  %1385 = vmatpush.msrb.mxu2 %v7409_v26  ;;  %v1433_v42 = vand.u32 4294901760, %v1432_v30  ;;  %v7671_v30 = vand.u32 4294901760, %v178_v8 }
  0x8f   :  { %1221 = vmatpush.msra.mxu1 %v1220_v4  ;;  %1294 = vmatpush.msra.mxu3 %v7417_v52  ;;  %v146_v4 = vld [vmem:[#allocation5 + $0x2b8] sm:$0xff] }
  0x90   :  { %1317 = vmatpush.msrb.mxu0 %v1188_v23  ;;  %1387 = vmatpush.msrb.mxu2 %v7430_v22  ;;  %v1455_v23 = vand.u32 4294901760, %v7524_v50 }
  0x91   :  { %1422 = vmatpush.msrb.mxu3 %v1421_v57  ;;  %1227 = vmatpush.msra.mxu1 %v1226_v59 }
  0x92   :  { %1321 = vmatpush.msrb.mxu0 %v1194_v5  ;;  %1389 = vmatpush.msrb.mxu2 %v7446_v51  ;;  %v1456_v55 = vsub.f32 %v7524_v50, %v1455_v23 }
  0x93   :  { %1356 = vmatpush.msrb.mxu1 %v7338_v56  ;;  %1428 = vmatpush.msrb.mxu3 %v1427_v47  ;;  %v1450_v56 = vsub.f32 %v7514_v37, %v1449_v18  ;;  %v7675_v47 = vld [vmem:[#allocation7] ss:$4 sm:$0xff] }
  0x94   :  { %1325 = vmatpush.msrb.mxu0 %v1200_v34  ;;  %1391 = vmatpush.msrb.mxu2 %v7461_v29  ;;  %v1457_v20 = vand.u32 4294901760, %v1456_v55  ;;  %v3988_v55 = vperm.slane %v7675_v47, 0 }
  0x95   :  { %1358 = vmatpush.msrb.mxu1 %v7344_v0  ;;  %1434 = vmatpush.msrb.mxu3 %v1433_v42  ;;  %v1445_v0 = vand.u32 4294901760, %v1444_v33  ;;  %v1451_v5 = vand.u32 4294901760, %v1450_v56 }
  0x96   :  { %1267 = vmatmul.f32.vlgmr.msra.gmra.mxu2 %v6988_v13  ;;  %1329 = vmatpush.msrb.mxu0 %v1206_v1  ;;  %v129_v1 = vld [vmem:[#allocation5 + $0x230] sm:$0xff] }
  0x97   :  { %1360 = vmatpush.msrb.mxu1 %v7356_v2  ;;  %1393 = vmatpush.msrb.mxu2 %v7478_v7  ;;  %v1462_v2 = vsub.f32 %v7534_v11, %v1461_v46 }
  0x98   :  { %1440 = vmatpush.msrb.mxu3 %v1439_v53  ;;  %1168 = vmatmul.f32.vlgmr.msra.gmra.mxu0 %v7040_v60  ;;  %v7689_v53 = vld [vmem:[#allocation7 + $0x1] ss:$4 sm:$0xff] }
  0x99   :  { %1298 = vmatmul.f32.vlgmr.msra.gmra.mxu3 %v7003_v38  ;;  %1333 = vmatpush.msrb.mxu0 %v1212_v41  ;;  %v1463_v34 = vand.u32 4294901760, %v1462_v2  ;;  %v113_v41 = vld [vmem:[#allocation5 + $0x1b0] sm:$0xff]  ;;  %v82_v2 = vld [vmem:[#allocation5 + $0xb8] sm:$0xff] }
  0x9a   :  { %1362 = vmatpush.msrb.mxu1 %v7366_v39  ;;  %1395 = vmatpush.msrb.mxu2 %v7493_v54  ;;  %v177_v39 = vld [vmem:[#allocation5 + $0x3b0] sm:$0xff] }
  0x9b   :  { %1446 = vmatpush.msrb.mxu3 %v1445_v0  ;;  %1229 = vmatmul.f32.vlgmr.msra.gmra.mxu1 %v6967_v62 }
  0x9c   :  { %1337 = vmatpush.msrb.mxu0 %v1218_v40  ;;  %1364 = vmatpush.msrb.mxu1 %v7377_v14  ;;  %v161_v14 = vld [vmem:[#allocation5 + $0x330] sm:$0xff] }
  0x9d   :  { %1397 = vmatpush.msrb.mxu2 %v7504_v27  ;;  %1452 = vmatpush.msrb.mxu3 %v1451_v5  ;;  %v7592_v45 = vand.u32 4294901760, %v161_v14  ;;  %v98_v5 = vld [vmem:[#allocation5 + $0x138] sm:$0xff] }
  0x9e   :  { %1341 = vmatpush.msrb.mxu0 %v1224_v48  ;;  %1366 = vmatpush.msrb.mxu1 %v7388_v25  ;;  %v7587_v25 = vand.u32 4294901760, %v177_v39 }
  0x9f   :  { %1399 = vmatpush.msrb.mxu2 %v7516_v15  ;;  %1458 = vmatpush.msrb.mxu3 %v1457_v20  ;;  %v7607_v6 = vsub.f32 %v161_v14, %v7592_v45  ;;  %v66_v20 = vld [vmem:[#allocation5 + $0x38] sm:$0xff] }
  0xa0   :  { %1480 = vmatpush.msra.mxu0 %v7435_v31  ;;  %1368 = vmatpush.msrb.mxu1 %v7402_v9  ;;  %v145_v9 = vld [vmem:[#allocation5 + $0x2b0] sm:$0xff] }
  0xa1   :  { %1550 = vmatpush.msra.mxu2 %v1419_v16  ;;  %1464 = vmatpush.msrb.mxu3 %v1463_v34  ;;  %v7609_v31 = vand.u32 4294901760, %v145_v9  ;;  %v1662_v16 = vand.u32 4294901760, %v7607_v6 }
  0xa2   :  { %1343 = vmatmul.f32.vlgmr.msrb.gmra.mxu0 %v6967_v62  ;;  %1370 = vmatpush.msrb.mxu1 %v7417_v52  ;;  %v7602_v52 = vsub.f32 %v177_v39, %v7587_v25  ;;  %v7707_v39 = vsub.f32 %v178_v8, %v7671_v30 }
  0xa3   :  { %1554 = vmatpush.msra.mxu2 %v1425_v63  ;;  %1483 = vmatpush.msra.mxu0 %v7456_v24  ;;  %v7624_v24 = vsub.f32 %v145_v9, %v7609_v31  ;;  %v81_v63 = vld [vmem:[#allocation5 + $0xb0] sm:$0xff]  ;;  %v7712_v9 = vand.u32 4294901760, %v130_v12 }
  0xa4   :  { %1593 = vmatpush.msra.mxu3 %v7409_v26  ;;  %1372 = vmatmul.f32.vlgmr.msrb.gmra.mxu1 %v6967_v62  ;;  %v1656_v40 = vand.u32 4294901760, %v7602_v52  ;;  %v7665_v57 = vand.u32 4294901760, %v81_v63 }
  0xa5   :  { %1558 = vmatpush.msra.mxu2 %v1431_v44  ;;  %1486 = vmatpush.msra.mxu0 %v7469_v17  ;;  %v1668_v44 = vand.u32 4294901760, %v7624_v24 }
  0xa6   :  { %1517 = vmatpush.msra.mxu1 %v7409_v26  ;;  %1595 = vmatpush.msra.mxu3 %v7430_v22  ;;  %v7613_v26 = vand.u32 4294901760, %v129_v1  ;;  %v7645_v36 = vsub.f32 %v7602_v52, %v1656_v40 }
  0xa7   :  { %1489 = vmatpush.msra.mxu0 %v7486_v49  ;;  %1562 = vmatpush.msra.mxu2 %v1437_v58  ;;  %v65_v49 = vld [vmem:[#allocation5 + $0x30] sm:$0xff] }
  0xa8   :  { %1519 = vmatpush.msra.mxu1 %v7430_v22  ;;  %1597 = vmatpush.msra.mxu3 %v7446_v51  ;;  %v97_v22 = vld [vmem:[#allocation5 + $0x130] sm:$0xff]  ;;  %v7633_v17 = vsub.f32 %v129_v1, %v7613_v26  ;;  %v7669_v59 = vand.u32 4294901760, %v65_v49 }
  0xa9   :  { %1405 = vmatmul.f32.vlgmr.msrb.gmra.mxu2 %v7040_v60  ;;  %1492 = vmatpush.msra.mxu0 %v7502_v10  ;;  %v221_v43 = vpop.f32.mrf.mxu0  ;;  %v7635_v61 = vand.u32 4294901760, %v97_v22 }
  0xaa   :  { %1521 = vmatpush.msra.mxu1 %v7446_v51  ;;  %1566 = vmatpush.msra.mxu2 %v1443_v21  ;;  %v7627_v51 = vand.u32 4294901760, %v113_v41  ;;  %v1674_v10 = vand.u32 4294901760, %v7633_v17  ;;  %v1658_v21 = vand.u32 4294901760, %v7645_v36  ;;  %v7704_v34 = vsub.f32 %v65_v49, %v7669_v59 }
  0xab   :  { %1599 = vmatpush.msra.mxu3 %v7461_v29  ;;  %1495 = vmatpush.msra.mxu0 %v7514_v37  ;;  %v7673_v37 = vand.u32 4294901760, %v162_v32 }
  0xac   :  { %1466 = vmatmul.f32.vlgmr.msrb.gmra.mxu3 %v6967_v62  ;;  %1523 = vmatpush.msra.mxu1 %v7461_v29  ;;  %v7656_v3 = vsub.f32 %v113_v41, %v7627_v51  ;;  %v1675_v56 = vsub.f32 %v7633_v17, %v1674_v10 }
  0xad   :  { %v282_v48 = vpop.f32.mrf.mxu1  ;;  %1570 = vmatpush.msra.mxu2 %v1449_v18  ;;  %1601 = vmatpush.msra.mxu3 %v7478_v7  ;;  %v320_v29 = vpop.f32.mrf.mxu2  ;;  %v7710_v14 = vsub.f32 %v162_v32, %v7673_v37 }
  0xae   :  { %v283_v28 = vadd.f32 %v282_v48, %v221_v43  ;;  %1498 = vmatpush.msra.mxu0 %v7524_v50  ;;  %1525 = vmatpush.msra.mxu1 %v7478_v7  ;;  %v7652_v7 = vsub.f32 %v7607_v6, %v1662_v16  ;;  %v7680_v50 = vand.u32 4294901760, %v146_v4  ;;  %v10976_v33 = vand.u32 4294901760, %v7656_v3 }
  0xaf   :  { %1574 = vmatpush.msra.mxu2 %v1455_v23  ;;  %1603 = vmatpush.msra.mxu3 %v7493_v54  ;;  %v351_v19 = vpop.f32.mrf.mxu3  ;;  %v4042_v48 = vperm.slane %v7689_v53, 0 }
  0xb0   :  { %v321_v35 = vadd.f32 %v320_v29, %v283_v28  ;;  %1501 = vmatpush.msra.mxu0 %v7534_v11  ;;  %1527 = vmatpush.msra.mxu1 %v7493_v54  ;;  %v7663_v54 = vsub.f32 %v97_v22, %v7635_v61  ;;  %v1664_v18 = vand.u32 4294901760, %v7652_v7  ;;  %v1669_v11 = vsub.f32 %v7624_v24, %v1668_v44 }
  0xb1   :  { %1578 = vmatpush.msra.mxu2 %v1461_v46  ;;  %1605 = vmatpush.msra.mxu3 %v7504_v27  ;;  %v7697_v46 = vsub.f32 %v81_v63, %v7665_v57  ;;  %v7717_v41 = vsub.f32 %v146_v4, %v7680_v50  ;;  %v1681_v28 = vsub.f32 %v7656_v3, %v10976_v33  ;;  %v7727_v29 = vand.u32 4294901760, %v98_v5 }
  0xb2   :  { %v352_v58 = vadd.f32 %v351_v19, %v321_v35  ;;  %1580 = vmatmul.f32.vlgmr.msra.gmra.mxu2 %v6967_v62  ;;  %1622 = vmatpush.msrb.mxu0 %v7587_v25  ;;  %v10975_v0 = vand.u32 4294901760, %v7663_v54  ;;  %v7731_v63 = vand.u32 4294901760, %v66_v20  ;;  %v1670_v36 = vand.u32 4294901760, %v1669_v11 }
  0xb3   :  { %1717 = vmatpush.msrb.mxu2 %v7602_v52  ;;  %1529 = vmatpush.msra.mxu1 %v7504_v27  ;;  %v396_v42 = vpop.f32.mrf.mxu0  ;;  %v114_v27 = vld [vmem:[#allocation5 + $0x1b8] sm:$0xff]  ;;  %v10974_v8 = vand.u32 4294901760, %v7697_v46  ;;  %v10970_v35 = vand.u32 4294901760, %v7707_v39  ;;  %v10973_v7 = vand.u32 4294901760, %v7704_v34  ;;  %v10969_v4 = vand.u32 4294901760, %v7710_v14 }
  0xb4   :  { %1607 = vmatpush.msra.mxu3 %v7516_v15  ;;  %1504 = vmatmul.f32.vlgmr.msra.gmra.mxu0 %v6988_v13  ;;  %v397_v23 = vadd.f32 %v396_v42, %v352_v58  ;;  %v7719_v43 = vand.u32 4294901760, %v114_v27  ;;  %v1687_v49 = vsub.f32 %v7663_v54, %v10975_v0  ;;  %v7744_v19 = vsub.f32 %v130_v12, %v7712_v9 }
  0xb5   :  { %1609 = vmatmul.f32.vlgmr.msra.gmra.mxu3 %v6967_v62  ;;  %1624 = vmatpush.msrb.mxu0 %v7592_v45  ;;  %v1676_v58 = vand.u32 4294901760, %v1675_v56 }
  0xb6   :  { %1720 = vmatpush.msrb.mxu2 %v7607_v6  ;;  %1754 = vmatpush.msrb.mxu3 %v7587_v25  ;;  %v425_v1 = vpop.f32.mrf.mxu1  ;;  %v7751_v11 = vsub.f32 %v114_v27, %v7719_v43  ;;  %v1688_v56 = vand.u32 4294901760, %v1687_v49  ;;  %v1693_v27 = vsub.f32 %v7697_v46, %v10974_v8 }
  0xb7   :  { %1531 = vmatpush.msra.mxu1 %v7516_v15  ;;  %1626 = vmatpush.msrb.mxu0 %v7609_v31  ;;  %v426_v22 = vadd.f32 %v425_v1, %v397_v23  ;;  %v7729_v15 = vand.u32 4294901760, %v82_v2  ;;  %v1682_v23 = vand.u32 4294901760, %v1681_v28 }
  0xb8   :  { %1535 = vmatmul.f32.vlgmr.msra.gmra.mxu1 %v7003_v38  ;;  %1723 = vmatpush.msrb.mxu2 %v7624_v24 }
  0xb9   :  { %1659 = vmatpush.msrb.mxu1 %v1658_v21  ;;  %1756 = vmatpush.msrb.mxu3 %v7592_v45  ;;  %v4020_v32 = vmul.f32 %v3988_v55, %v426_v22  ;;  %v10971_v21 = vand.u32 4294901760, %v7717_v41  ;;  %v7756_v55 = vsub.f32 %v98_v5, %v7727_v29  ;;  %v7759_v12 = vsub.f32 %v82_v2, %v7729_v15 }
  0xba   :  { %1628 = vmatpush.msrb.mxu0 %v7613_v26  ;;  %1726 = vmatpush.msrb.mxu2 %v7633_v17  ;;  %v1894_v5 = vsub.f32 %v7707_v39, %v10970_v35  ;;  %v1699_v2 = vsub.f32 %v7704_v34, %v10973_v7 }
  0xbb   :  { %1665 = vmatpush.msrb.mxu1 %v1664_v18  ;;  %1758 = vmatpush.msrb.mxu3 %v7609_v31  ;;  %v7748_v42 = vadd.f32 %v4042_v48, %v4020_v32  ;;  %v7762_v18 = vsub.f32 %v66_v20, %v7731_v63  ;;  %v1900_v20 = vsub.f32 %v7710_v14, %v10969_v4  ;;  %v10981_v48 = vand.u32 4294901760, %v7744_v19 }
  0xbc   :  { %1630 = vmatpush.msrb.mxu0 %v7627_v51  ;;  %1729 = vmatpush.msrb.mxu2 %v7656_v3  ;;  %v7786_v28 = vsub.f32 %v7717_v41, %v10971_v21  ;;  %v10980_v32 = vand.u32 4294901760, %v7751_v11  ;;  %v10979_v4 = vand.u32 4294901760, %v7756_v55  ;;  %v1694_v21 = vand.u32 4294901760, %v1693_v27 }
  0xbd   :  { %1671 = vmatpush.msrb.mxu1 %v1670_v36  ;;  %1760 = vmatpush.msrb.mxu3 %v7613_v26  ;;  %v10972_v1 = vand.u32 2147483647, %v7748_v42  ;;  %v4093_v22 = vand.u32 2139095040, %v7748_v42  ;;  %v10978_v35 = vand.u32 4294901760, %v7762_v18  ;;  %v1700_v7 = vand.u32 4294901760, %v1699_v2 }
  0xbe   :  { %1632 = vmatpush.msrb.mxu0 %v7635_v61  ;;  %1732 = vmatpush.msrb.mxu2 %v7663_v54  ;;  %v1901_v8 = vand.u32 4294901760, %v1900_v20  ;;  %v7802_v0 = vsub.f32 %v7744_v19, %v10981_v48  ;;  %vm4092_vm12 = vcmp.lt.s32.totalorder %v7748_v42, 0 }
  0xbf   :  { %1677 = vmatpush.msrb.mxu1 %v1676_v58  ;;  %1762 = vmatpush.msrb.mxu3 %v7627_v51  ;;  %v4094_v36 = vshrl.u32 %v4093_v22, 23  ;;  %v4097_v49 = vand.u32 8388607, %v10972_v1  ;;  %v10977_v58 = vand.u32 4294901760, %v7759_v12  ;;  %v1895_v1 = vand.u32 4294901760, %v1894_v5 }
  0xc0   :  { %1634 = vmatpush.msrb.mxu0 %v7665_v57  ;;  %1735 = vmatpush.msrb.mxu2 %v7697_v46  ;;  %v7827_v20 = vsub.f32 %v7762_v18, %v10978_v35 }
  0xc1   :  { %1683 = vmatpush.msrb.mxu1 %v1682_v23  ;;  %1764 = vmatpush.msrb.mxu3 %v7635_v61  ;;  %v6644_v22 = vadd.s32 4294967169, %v4094_v36  ;;  %v1907_v23 = vand.u32 4294901760, %v7786_v28  ;;  %v4098_v33 = vor.u32 8388608, %v4097_v49  ;;  %v7809_v36 = vsub.f32 %v7751_v11, %v10980_v32  ;;  %v458_v28 = vpop.f32.mrf.mxu2 }
  0xc2   :  { %1636 = vmatpush.msrb.mxu0 %v7669_v59  ;;  %1738 = vmatpush.msrb.mxu2 %v7704_v34  ;;  %v7822_v2 = vsub.f32 %v7759_v12, %v10977_v58 }
  0xc3   :  { %1689 = vmatpush.msrb.mxu1 %v1688_v56  ;;  %1766 = vmatpush.msrb.mxu3 %v7665_v57  ;;  %v4100_v27 = vadd.s32 1, %v6644_v22  ;;  %v519_v5 = vpop.f32.mrf.mxu3  ;;  %v7817_v56 = vsub.f32 %v7756_v55, %v10979_v4  ;;  %v7834_v35 = vshll.u32 %v4098_v33, 8  ;;  %v179_v4 = vld [vmem:[#allocation5 + $0x3c0] sm:$0xff] }
  0xc4   :  { %1787 = vmatpush.msra.mxu0 %v1656_v40  ;;  %1859 = vmatpush.msra.mxu2 %v7671_v30  ;;  %v520_v52 = vadd.f32 %v519_v5, %v458_v28  ;;  %v1913_v40 = vand.u32 4294901760, %v7802_v0  ;;  %v10984_v5 = vmov 2475754826   ;;  %v7854_v0 = vand.u32 4294901760, %v179_v4 }
  0xc5   :  { %1695 = vmatpush.msrb.mxu1 %v1694_v21  ;;  %1768 = vmatpush.msrb.mxu3 %v7669_v59  ;;  %vm4101_vm1 = vcmp.gt.s32.totalorder %v4100_v27, 0  ;;  %v557_v22 = vpop.f32.mrf.mxu0  ;;  %v10990_v21 = vmov 1326507024  }
  0xc6   :  { %1791 = vmatpush.msra.mxu0 %v1662_v16  ;;  %1861 = vmatpush.msra.mxu2 %v7673_v37  ;;  %v4102_v49 = vsel %vm4101_vm1, %v4100_v27, 0 }
  0xc7   :  { %1896 = vmatpush.msra.mxu3 %v1895_v1  ;;  %1701 = vmatpush.msrb.mxu1 %v1700_v7  ;;  %v4104_v58 = vand.u32 31, %v4102_v49  ;;  %v7840_v6 = vshrl.u32 %v4102_v49, 5  ;;  %v10986_v7 = vmov 683565275   ;;  %v10988_v49 = vmov 2102212464  }
  0xc8   :  { %1795 = vmatpush.msra.mxu0 %v1668_v44  ;;  %1863 = vmatpush.msra.mxu2 %v7680_v50  ;;  %v558_v44 = vadd.f32 %v557_v22, %v520_v52  ;;  %v7861_v52 = vand.u32 65535, %v7834_v35  ;;  %v11013_v22 = vand.u32 4294901760, %v7656_v3 }
  0xc9   :  { %1830 = vmatpush.msra.mxu1 %v7587_v25  ;;  %1902 = vmatpush.msra.mxu3 %v1901_v8  ;;  %v4105_v33 = vsub.s32 32, %v4104_v58  ;;  %v4107_v27 = vshll.u32 %v10986_v7, %v4104_v58  ;;  %v4110_v24 = vshll.u32 %v10984_v5, %v4104_v58  ;;  %v10982_v25 = vmov 2131351028   ;;  %v588_v1 = vpop.f32.mrf.mxu1 }
  0xca   :  { %1799 = vmatpush.msra.mxu0 %v1674_v10  ;;  %v4113_v28 = vshll.u32 %v10982_v25, %v4104_v58  ;;  %v4116_v32 = vshll.u32 %v10988_v49, %v4104_v58  ;;  %v10998_v8 = vmov 920167782   ;;  %1865 = vmatpush.msra.mxu2 %v7712_v9  ;;  %vm4122_vm2 = vcmp.lt.s32.totalorder %v7840_v6, 1 }
  0xcb   :  { %1832 = vmatpush.msra.mxu1 %v7592_v45  ;;  %v4119_v48 = vshll.u32 %v10998_v8, %v4104_v58  ;;  %1908 = vmatpush.msra.mxu3 %v1907_v23  ;;  %v4106_v17 = vshrl.u32 %v10986_v7, %v4105_v33  ;;  %v4108_v10 = vshrl.u32 %v10984_v5, %v4105_v33  ;;  %vm4125_vm3 = vcmp.lt.s32.totalorder %v7840_v6, 4 }
  0xcc   :  { %v4111_v45 = vshrl.u32 %v10982_v25, %v4105_v33  ;;  %1741 = vmatmul.f32.vlgmr.msrb.gmra.mxu2 %v6988_v13  ;;  %1803 = vmatpush.msra.mxu0 %v11013_v22  ;;  %v4114_v58 = vshrl.u32 %v10988_v49, %v4105_v33  ;;  %v4117_v16 = vshrl.u32 %v10998_v8, %v4105_v33  ;;  %vm4124_vm4 = vcmp.lt.s32.totalorder %v7840_v6, 3 }
  0xcd   :  { %v4120_v23 = vshrl.u32 %v10990_v21, %v4105_v33  ;;  %1834 = vmatpush.msra.mxu1 %v7609_v31  ;;  %1867 = vmatpush.msra.mxu2 %v7719_v43  ;;  %v4109_v25 = vor.u32 %v4108_v10, %v4107_v27  ;;  %v589_v7 = vadd.f32 %v588_v1, %v558_v44  ;;  %v633_v33 = vpop.f32.mrf.mxu2  ;;  %v4140_v27 = vshrl.u32 %v7834_v35, 16 }
  0xce   :  { %v4112_v5 = vor.u32 %v4111_v45, %v4110_v24  ;;  %1914 = vmatpush.msra.mxu3 %v1913_v40  ;;  %v4115_v3 = vor.u32 %v4114_v58, %v4113_v28  ;;  %v4118_v22 = vor.u32 %v4117_v16, %v4116_v32  ;;  %1642 = vmatmul.f32.vlgmr.msrb.gmra.mxu0 %v7040_v60  ;;  %v11014_v40 = vand.u32 4294901760, %v7663_v54  ;;  %v163_v32 = vld [vmem:[#allocation5 + $0x340] sm:$0xff] }
  0xcf   :  { %v4121_v49 = vor.u32 %v4120_v23, %v4119_v48  ;;  %v4126_v21 = vsel %vm4122_vm2, %v4106_v17, %v4109_v25  ;;  %1772 = vmatmul.f32.vlgmr.msrb.gmra.mxu3 %v7003_v38  ;;  %v7884_v48 = vsub.f32 %v179_v4, %v7854_v0  ;;  %1836 = vmatpush.msra.mxu1 %v7613_v26  ;;  %vm4123_vm5 = vcmp.lt.s32.totalorder %v7840_v6, 2  ;;  %v7904_v17 = vld [vmem:[#allocation5 + $0x2c0] sm:$0xff] }
  0xd0   :  { %v4130_v31 = vsel %vm4122_vm2, %v4109_v25, %v4112_v5  ;;  %1807 = vmatpush.msra.mxu0 %v11014_v40  ;;  %v4127_v16 = vsel %vm4125_vm3, %v4115_v3, 2102212464  ;;  %v4131_v1 = vsel %vm4125_vm3, %v4118_v22, 920167782  ;;  %v4134_v24 = vsel %vm4122_vm2, %v4112_v5, %v4115_v3  ;;  %1869 = vmatpush.msra.mxu2 %v7727_v29 }
  0xd1   :  { %v4135_v44 = vsel %vm4125_vm3, %v4121_v49, 1326507024  ;;  %v4132_v54 = vsel %vm4124_vm4, %v4115_v3, %v4131_v1  ;;  %v11015_v25 = vand.u32 4294901760, %v7809_v36  ;;  %1703 = vmatmul.f32.vlgmr.msrb.gmra.mxu1 %v6967_v62  ;;  %v634_v28 = vadd.f32 %v633_v33, %v589_v7  ;;  %v662_v36 = vpop.f32.mrf.mxu3  ;;  %v7920_v33 = vld [vmem:[#allocation5 + $0x240] sm:$0xff] }
  0xd2   :  { %v4136_v4 = vsel %vm4124_vm4, %v4118_v22, %v4135_v44  ;;  %v4128_v26 = vsel %vm4124_vm4, %v4112_v5, %v4127_v16  ;;  %v4133_v49 = vsel %vm4123_vm5, %v4130_v31, %v4132_v54  ;;  %v11016_v45 = vand.u32 4294901760, %v7697_v46  ;;  %1838 = vmatpush.msra.mxu1 %v7627_v51  ;;  %1871 = vmatpush.msra.mxu2 %v7729_v15  ;;  %v7930_v16 = vld [vmem:[#allocation5 + $0x1c0] sm:$0xff] }
  0xd3   :  { %1920 = vmatpush.msra.mxu3 %v11015_v25  ;;  %v4137_v10 = vsel %vm4123_vm5, %v4134_v24, %v4136_v4  ;;  %v7915_v58 = vand.u32 4294901760, %v163_v32  ;;  %v4163_v3 = vand.u32 65535, %v4133_v49  ;;  %v4164_v22 = vshrl.u32 %v4133_v49, 16 }
  0xd4   :  { %1811 = vmatpush.msra.mxu0 %v11016_v45  ;;  %v4141_v7 = vand.u32 65535, %v4137_v10  ;;  %v4142_v23 = vshrl.u32 %v4137_v10, 16  ;;  %v11017_v5 = vand.u32 4294901760, %v7817_v56  ;;  %v11018_v31 = vand.u32 4294901760, %v7704_v34  ;;  %1840 = vmatpush.msra.mxu1 %v7635_v61 }
  0xd5   :  { %v3989_v51 = vperm.slane %v7675_v47, 1  ;;  %v4043_v46 = vperm.slane %v7689_v53, 1  ;;  %v7928_v40 = vand.u32 4294901760, %v7904_v17  ;;  %1873 = vmatpush.msra.mxu2 %v7731_v63  ;;  %v663_v24 = vadd.f32 %v662_v36, %v634_v28 }
  0xd6   :  { %1926 = vmatpush.msra.mxu3 %v11017_v5  ;;  %1815 = vmatpush.msra.mxu0 %v11018_v31  ;;  %v4144_v1 = vmul.u32 %v4142_v23, %v7861_v52  ;;  %v7933_v56 = vmul.u32 %v4141_v7, %v4140_v27  ;;  %v2130_v34 = vand.u32 4294901760, %v7884_v48  ;;  %v7939_v61 = vsel %vm4123_vm5, %v4126_v21, %v4128_v26 }
  0xd7   :  { %v4166_v47 = vmul.u32 %v4164_v22, %v7861_v52  ;;  %v7942_v53 = vmul.u32 %v4163_v3, %v4140_v27  ;;  %v11019_v44 = vand.u32 4294901760, %v7822_v2  ;;  %v7947_v54 = vand.u32 4294901760, %v7920_v33  ;;  %1842 = vmatpush.msra.mxu1 %v7665_v57  ;;  %1817 = vmatmul.f32.vlgmr.msra.gmra.mxu0 %v6967_v62 }
  0xd8   :  { %v4143_v4 = vmul.u32 %v4141_v7, %v7861_v52  ;;  %v4147_v25 = vshll.u32 %v4144_v1, 16  ;;  %1954 = vmatpush.msrb.mxu0 %v7707_v39  ;;  %v11020_v28 = vand.u32 4294901760, %v7707_v39  ;;  %v7954_v21 = vsub.f32 %v163_v32, %v7915_v58  ;;  %1879 = vmatmul.f32.vlgmr.msra.gmra.mxu2 %v7040_v60 }
  0xd9   :  { %1932 = vmatpush.msra.mxu3 %v11019_v44  ;;  %v7957_v6 = vand.u32 4294901760, %v7930_v16  ;;  %v4146_v26 = vmul.u32 %v4142_v23, %v4140_v27  ;;  %v4165_v2 = vmul.u32 %v4163_v3, %v7861_v52  ;;  %v4168_v49 = vmul.u32 %v4164_v22, %v4140_v27  ;;  %1844 = vmatpush.msra.mxu1 %v7669_v59 }
  0xda   :  { %2024 = vmatpush.msrb.mxu2 %v11020_v28  ;;  %v4169_v10 = vshll.u32 %v4166_v47, 16  ;;  %v11021_v45 = vand.u32 4294901760, %v7827_v20  ;;  %v4149_v36 = vshll.u32 %v7933_v56, 16  ;;  %vm4151_vm6 = vc.u32 %v4143_v4, %v4147_v25  ;;  %1957 = vmatpush.msrb.mxu0 %v7710_v14 }
  0xdb   :  { %v4153_v39 = vadd.s32 %v4147_v25, %v4143_v4  ;;  %v11022_v32 = vand.u32 4294901760, %v7710_v14  ;;  %v4021_v7 = vmul.f32 %v3989_v51, %v663_v24  ;;  %v10996_v23 = vmov 0   ;;  %1846 = vmatmul.f32.vlgmr.msra.gmra.mxu1 %v6967_v62 }
  0xdc   :  { %1938 = vmatpush.msra.mxu3 %v11021_v45  ;;  %v4152_v52 = vsel %vm4151_vm6, 1, %v10996_v23  ;;  %v4171_v27 = vshll.u32 %v7942_v53, 16  ;;  %vm4173_vm7 = vc.u32 %v4165_v2, %v4169_v10  ;;  %v4175_v57 = vadd.s32 %v4169_v10, %v4165_v2  ;;  %1960 = vmatpush.msrb.mxu0 %v7717_v41 }
  0xdd   :  { %2028 = vmatpush.msrb.mxu2 %v11022_v32  ;;  %v4154_v20 = vadd.s32 %v4152_v52, %v4146_v26  ;;  %vm4155_vm8 = vc.u32 %v4153_v39, %v4149_v36  ;;  %v4174_v3 = vsel %vm4173_vm7, 1, %v10996_v23  ;;  %v11023_v22 = vand.u32 4294901760, %v7717_v41  ;;  %1991 = vmatpush.msrb.mxu1 %v7671_v30  ;;  %v99_v39 = vld [vmem:[#allocation5 + $0x140] sm:$0xff] }
  0xde   :  { %2067 = vmatpush.msrb.mxu3 %v7671_v30  ;;  %v7975_v5 = vadd.f32 %v4043_v46, %v4021_v7  ;;  %v4148_v31 = vshrl.u32 %v4144_v1, 16  ;;  %v4156_v51 = vsel %vm4155_vm8, 1, %v10996_v23  ;;  %v4176_v24 = vadd.s32 %v4174_v3, %v4168_v49  ;;  %1963 = vmatpush.msrb.mxu0 %v7744_v19 }
  0xdf   :  { %2032 = vmatpush.msrb.mxu2 %v11023_v22  ;;  %vm4177_vm9 = vc.u32 %v4175_v57, %v4171_v27  ;;  %v4150_v14 = vshrl.u32 %v7933_v56, 16  ;;  %v4158_v44 = vadd.s32 %v4156_v51, %v4154_v20  ;;  %v4170_v46 = vshrl.u32 %v4166_v47, 16  ;;  %1993 = vmatpush.msrb.mxu1 %v7673_v37  ;;  %v83_v22 = vld [vmem:[#allocation5 + $0xc0] sm:$0xff] }
  0xe0   :  { %v4178_v4 = vsel %vm4177_vm9, 1, %v10996_v23  ;;  %2069 = vmatpush.msrb.mxu3 %v7673_v37  ;;  %v10992_v59 = vand.u32 2147483647, %v7975_v5  ;;  %v11024_v25 = vand.u32 4294901760, %v7744_v19  ;;  %v4247_v41 = vand.u32 2139095040, %v7975_v5  ;;  %1966 = vmatpush.msrb.mxu0 %v7751_v11 }
  0xe1   :  { %v4180_v1 = vadd.s32 %v4178_v4, %v4176_v24  ;;  %v10995_v56 = vand.u32 4294901760, %v7954_v21  ;;  %v4159_v28 = vadd.s32 %v4158_v44, %v4148_v31  ;;  %v4172_v26 = vshrl.u32 %v7942_v53, 16  ;;  %1995 = vmatpush.msrb.mxu1 %v7680_v50  ;;  %1940 = vmatmul.f32.vlgmr.msra.gmra.mxu3 %v6967_v62 }
  0xe2   :  { %2036 = vmatpush.msrb.mxu2 %v11024_v25  ;;  %2071 = vmatpush.msrb.mxu3 %v7680_v50  ;;  %v4251_v30 = vand.u32 8388607, %v10992_v59  ;;  %v7997_v47 = vsub.f32 %v7904_v17, %v7928_v40  ;;  %v4248_v2 = vshrl.u32 %v4247_v41, 23  ;;  %v8004_v53 = vsub.f32 %v7884_v48, %v2130_v34 }
  0xe3   :  { %v4181_v19 = vadd.s32 %v4180_v1, %v4170_v46  ;;  %v8008_v37 = vsub.f32 %v7920_v33, %v7947_v54  ;;  %v4160_v49 = vadd.s32 %v4159_v28, %v4150_v14  ;;  %v4179_v10 = vadd.s32 %v4175_v57, %v4171_v27  ;;  %1969 = vmatpush.msrb.mxu0 %v7756_v55 }
  0xe4   :  { %v11025_v17 = vand.u32 4294901760, %v7751_v11  ;;  %v4252_v45 = vor.u32 8388608, %v4251_v30  ;;  %v10994_v36 = vand.u32 4294901760, %v7997_v47  ;;  %2073 = vmatpush.msrb.mxu3 %v7712_v9  ;;  %v6647_v7 = vadd.s32 4294967169, %v4248_v2  ;;  %1997 = vmatpush.msrb.mxu1 %v7712_v9 }
  0xe5   :  { %v4182_v32 = vadd.s32 %v4181_v19, %v4172_v26  ;;  %v8019_v33 = vsub.f32 %v7954_v21, %v10995_v56  ;;  %v10993_v50 = vand.u32 4294901760, %v8008_v37  ;;  %v4183_v11 = vmul.u32 %v7834_v35, %v7939_v61  ;;  %1972 = vmatpush.msrb.mxu0 %v7759_v12 }
  0xe6   :  { %2040 = vmatpush.msrb.mxu2 %v11025_v17  ;;  %vm4185_vm10 = vc.u32 %v4160_v49, %v4179_v10  ;;  %v11026_v27 = vand.u32 4294901760, %v7756_v55  ;;  %2075 = vmatpush.msrb.mxu3 %v7719_v43  ;;  %v4254_v57 = vadd.s32 1, %v6647_v7  ;;  %v8029_v20 = vshll.u32 %v4252_v45, 8 }
  0xe7   :  { %v4186_v52 = vadd.s32 1, %v4182_v32  ;;  %v8031_v3 = vand.u32 4294901760, %v99_v39  ;;  %1999 = vmatpush.msrb.mxu1 %v7719_v43  ;;  %v8038_v9 = vsub.f32 %v7997_v47, %v10994_v36  ;;  %v8042_v35 = vsub.f32 %v7930_v16, %v7957_v6  ;;  %1975 = vmatpush.msrb.mxu0 %v7762_v18 }
  0xe8   :  { %2044 = vmatpush.msrb.mxu2 %v11026_v27  ;;  %v8047_v55 = vsub.f32 %v8008_v37, %v10993_v50  ;;  %v11027_v31 = vand.u32 4294901760, %v7759_v12  ;;  %2077 = vmatpush.msrb.mxu3 %v7727_v29  ;;  %vm4255_vm11 = vcmp.gt.s32.totalorder %v4254_v57, 0  ;;  %v2132_v43 = vand.u32 4294901760, %v8004_v53 }
  0xe9   :  { %v4187_v61 = vsel %vm4185_vm10, %v4186_v52, %v4182_v32  ;;  %v2138_v51 = vand.u32 4294901760, %v8019_v33  ;;  %v8054_v24 = vadd.s32 %v4179_v10, %v4160_v49  ;;  %v4256_v14 = vsel %vm4255_vm11, %v4254_v57, 0  ;;  %2001 = vmatpush.msrb.mxu1 %v7727_v29  ;;  %2096 = vmatpush.msra.mxu0 %v7854_v0 }
  0xea   :  { %2048 = vmatpush.msrb.mxu2 %v11027_v31  ;;  %v4188_v16 = vadd.s32 %v4187_v61, %v4183_v11  ;;  %v8058_v44 = vand.u32 4294901760, %v83_v22  ;;  %v4258_v4 = vand.u32 31, %v4256_v14  ;;  %v8061_v12 = vand.u32 65535, %v8029_v20  ;;  %2079 = vmatpush.msrb.mxu3 %v7729_v15  ;;  %v8102_v31 = vld [vmem:[#allocation5 + $0x40] sm:$0xff] }
  0xeb   :  { %v8064_v46 = vshrl.u32 %v8029_v20, 16  ;;  %v11028_v1 = vand.u32 4294901760, %v7762_v18  ;;  %v8070_v25 = vsub.f32 %v99_v39, %v8031_v3  ;;  %v2144_v41 = vand.u32 4294901760, %v8038_v9  ;;  %2003 = vmatpush.msrb.mxu1 %v7729_v15  ;;  %1978 = vmatmul.f32.vlgmr.msrb.gmra.mxu0 %v6988_v13 }
  0xec   :  { %v4189_v29 = vadd.s32 536870912, %v4188_v16  ;;  %v2150_v28 = vand.u32 4294901760, %v8047_v55  ;;  %v2154_v26 = vand.u32 4294901760, %v8042_v35  ;;  %v4259_v18 = vsub.s32 32, %v4258_v4  ;;  %2081 = vmatpush.msrb.mxu3 %v7731_v63  ;;  %2098 = vmatpush.msra.mxu0 %v7915_v58 }
  0xed   :  { %2052 = vmatpush.msrb.mxu2 %v11028_v1  ;;  %v11029_v30 = vmov 683565275   ;;  %v11030_v2 = vmov 2475754826   ;;  %v11031_v49 = vmov 2131351028   ;;  %v8089_v7 = vsub.f32 %v83_v22, %v8058_v44  ;;  %2083 = vmatmul.f32.vlgmr.msrb.gmra.mxu3 %v6967_v62 }
  0xee   :  { %2054 = vmatmul.f32.vlgmr.msrb.gmra.mxu2 %v6967_v62  ;;  %v4261_v19 = vshll.u32 %v11029_v30, %v4258_v4  ;;  %v4264_v53 = vshll.u32 %v11030_v2, %v4258_v4  ;;  %v4267_v10 = vshll.u32 %v11031_v49, %v4258_v4  ;;  %v4190_v17 = vshrl.u32 %v4189_v29, 30  ;;  %2228 = vmatpush.msra.mxu3 %v7854_v0 }
  0xef   :  { %2191 = vmatpush.msra.mxu2 %v7884_v48  ;;  %v8083_v45 = vshrl.u32 %v4256_v14, 5  ;;  %v11032_v39 = vmov 2102212464   ;;  %v11033_v11 = vand.u32 2147483647, %v7748_v42  ;;  %v4262_v15 = vshrl.u32 %v11030_v2, %v4259_v18  ;;  %2005 = vmatpush.msrb.mxu1 %v7731_v63 }
  0xf0   :  { %v4270_v32 = vshll.u32 %v11032_v39, %v4258_v4  ;;  %v4265_v27 = vshrl.u32 %v11031_v49, %v4259_v18  ;;  %v4268_v57 = vshrl.u32 %v11032_v39, %v4259_v18  ;;  %v4273_v61 = vshll.u32 %v10998_v8, %v4258_v4  ;;  %2009 = vmatmul.f32.vlgmr.msrb.gmra.mxu1 %v7003_v38 }
  0xf1   :  { %vm8093_vm13 = vcmp.le.f32.partialorder %v11033_v11, 0.7853982  ;;  %v4191_v22 = vshll.u32 %v4190_v17, 30  ;;  %v4260_v14 = vshrl.u32 %v11029_v30, %v4259_v18  ;;  %v4271_v1 = vshrl.u32 %v10998_v8, %v4259_v18  ;;  %2194 = vmatpush.msra.mxu2 %v7954_v21  ;;  %2100 = vmatpush.msra.mxu0 %v7928_v40 }
  0xf2   :  { %v11036_v29 = vmov 1326507024   ;;  %v4214_v59 = vsub.s32 4, %v4190_v17  ;;  %v4263_v50 = vor.u32 %v4262_v15, %v4261_v19  ;;  %v4266_v36 = vor.u32 %v4265_v27, %v4264_v53  ;;  %2133 = vmatpush.msra.mxu1 %v2132_v43  ;;  %2230 = vmatpush.msra.mxu3 %v7915_v58 }
  0xf3   :  { %v4274_v11 = vshrl.u32 %v11036_v29, %v4259_v18  ;;  %v4269_v56 = vor.u32 %v4268_v57, %v4267_v10  ;;  %v8111_v4 = vsub.s32 %v4188_v16, %v4191_v22  ;;  %v4272_v23 = vor.u32 %v4271_v1, %v4270_v32  ;;  %v180_v16 = vld [vmem:[#allocation5 + $0x3c8] sm:$0xff]  ;;  %2197 = vmatpush.msra.mxu2 %v7997_v47  ;;  %v756_v1 = vpop.f32.mrf.mxu1 }
  0xf4   :  { %vm4276_vm14 = vcmp.lt.s32.totalorder %v8083_v45, 1  ;;  %v8116_v18 = vand.u32 4294901760, %v8102_v31  ;;  %vm4278_vm15 = vcmp.lt.s32.totalorder %v8083_v45, 3  ;;  %vm4279_vm0 = vcmp.lt.s32.totalorder %v8083_v45, 4  ;;  %2102 = vmatpush.msra.mxu0 %v7947_v54  ;;  %2139 = vmatpush.msra.mxu1 %v2138_v51 }
  0xf5   :  { %v4275_v8 = vor.u32 %v4274_v11, %v4273_v61  ;;  %v2155_v63 = vsub.f32 %v8042_v35, %v2154_v26  ;;  %vm4193_vm1 = vcmp.lt.s32.totalorder %v8111_v4, 0  ;;  %v4194_v19 = vsub.s32 0, %v8111_v4  ;;  %2200 = vmatpush.msra.mxu2 %v8008_v37  ;;  %2232 = vmatpush.msra.mxu3 %v7928_v40 }
  0xf6   :  { %v4281_v53 = vsel %vm4279_vm0, %v4269_v56, 2102212464  ;;  %v2160_v10 = vand.u32 4294901760, %v8070_v25  ;;  %v4215_v43 = vsel %vm4092_vm12, %v4214_v59, %v4190_v17  ;;  %v4280_v32 = vsel %vm4276_vm14, %v4260_v14, %v4263_v50  ;;  %2104 = vmatpush.msra.mxu0 %v7957_v6  ;;  %2145 = vmatpush.msra.mxu1 %v2144_v41 }
  0xf7   :  { %v4284_v15 = vsel %vm4276_vm14, %v4263_v50, %v4266_v36  ;;  %v4285_v27 = vsel %vm4279_vm0, %v4272_v23, 920167782  ;;  %v4195_v57 = vsel %vm4193_vm1, %v4194_v19, %v8111_v4  ;;  %v4282_v61 = vsel %vm4278_vm15, %v4266_v36, %v4281_v53  ;;  %2203 = vmatpush.msra.mxu2 %v8042_v35  ;;  %2234 = vmatpush.msra.mxu3 %v7947_v54  ;;  %v825_v35 = vpop.f32.mrf.mxu3 }
  0xf8   :  { %v4288_v59 = vsel %vm4276_vm14, %v4266_v36, %v4269_v56  ;;  %v8149_v50 = vand.u32 4294901760, %v180_v16  ;;  %v4196_v17 = vclz %v4195_v57  ;;  %vm4277_vm2 = vcmp.lt.s32.totalorder %v8083_v45, 2  ;;  %2106 = vmatpush.msra.mxu0 %v8031_v3  ;;  %2151 = vmatpush.msra.mxu1 %v2150_v28 }
  0xf9   :  { %v4286_v33 = vsel %vm4278_vm15, %v4269_v56, %v4285_v27  ;;  %v4289_v51 = vsel %vm4279_vm0, %v4275_v8, 1326507024  ;;  %v4217_v36 = vsel %vm8093_vm13, 0, %v4215_v43  ;;  %v2156_v56 = vand.u32 4294901760, %v2155_v63  ;;  %2206 = vmatpush.msra.mxu2 %v8070_v25  ;;  %2236 = vmatpush.msra.mxu3 %v7957_v6  ;;  %v695_v63 = vpop.f32.mrf.mxu0 }
  0xfa   :  { %v8161_v22 = vsel %vm4277_vm2, %v4284_v15, %v4286_v33  ;;  %v4290_v14 = vsel %vm4278_vm15, %v4272_v23, %v4289_v51  ;;  %v6645_v8 = vadd.s32 4294967294, %v4196_v17  ;;  %v8167_v11 = vsel %vm4277_vm2, %v4280_v32, %v4282_v61  ;;  %2108 = vmatpush.msra.mxu0 %v8058_v44 }
  0xfb   :  { %v4291_v19 = vsel %vm4277_vm2, %v4288_v59, %v4290_v14  ;;  %v4318_v9 = vshrl.u32 %v8161_v22, 16  ;;  %v4317_v23 = vand.u32 65535, %v8161_v22  ;;  %v8178_v53 = vsub.f32 %v8102_v31, %v8116_v18  ;;  %2157 = vmatpush.msra.mxu1 %v2156_v56  ;;  %2209 = vmatpush.msra.mxu2 %v8089_v7 }
  0xfc   :  { %v4295_v41 = vand.u32 65535, %v4291_v19  ;;  %v4296_v45 = vshrl.u32 %v4291_v19, 16  ;;  %vm6646_vm3 = vcmp.lt.s32.totalorder %v6645_v8, 0  ;;  %v8180_v43 = vand.u32 3, %v4217_v36  ;;  %2238 = vmatpush.msra.mxu3 %v8031_v3  ;;  %2110 = vmatpush.msra.mxu0 %v8116_v18 }
  0xfd   :  { %v8183_v32 = vmul.u32 %v4318_v9, %v8061_v12  ;;  %v8186_v55 = vadd.f32 %v756_v1, %v695_v63  ;;  %v4199_v28 = vsel %vm6646_vm3, 0, %v6645_v8  ;;  %v4337_v31 = vmul.u32 %v8029_v20, %v8167_v11  ;;  %2212 = vmatpush.msra.mxu2 %v8178_v53  ;;  %2116 = vmatmul.f32.vlgmr.msra.gmra.mxu0 %v7040_v60  ;;  %v8325_v11 = vld [vmem:[#allocation5 + $0xc8] sm:$0xff] }
  0xfe   :  { %v4298_v15 = vmul.u32 %v4296_v45, %v8061_v12  ;;  %v8190_v27 = vmul.u32 %v4295_v41, %v8064_v46  ;;  %v4200_v57 = vsub.s32 32, %v4199_v28  ;;  %v4204_v61 = vsub.s32 4294967266, %v4199_v28  ;;  %2240 = vmatpush.msra.mxu3 %v8058_v44  ;;  %2261 = vmatpush.msrb.mxu0 %v2130_v34 }
  0xff   :  { %v2161_v59 = vsub.f32 %v8070_v25, %v2160_v10  ;;  %v8201_v17 = vsub.f32 %v180_v16, %v8149_v50  ;;  %v4297_v33 = vmul.u32 %v4295_v41, %v8061_v12  ;;  %v4319_v36 = vmul.u32 %v4317_v23, %v8061_v12  ;;  %2333 = vmatpush.msrb.mxu2 %v8149_v50 }
 0x100   :  { %v4301_v51 = vshll.u32 %v4298_v15, 16  ;;  %v8206_v22 = vmul.u32 %v4317_v23, %v8064_v46  ;;  %v4201_v14 = vshll.u32 %v8111_v4, %v4199_v28  ;;  %v4202_v56 = vshrl.u32 %v8054_v24, %v4200_v57  ;;  %2242 = vmatpush.msra.mxu3 %v8116_v18  ;;  %2215 = vmatmul.f32.vlgmr.msra.gmra.mxu2 %v6988_v13 }
 0x101   :  { %v4205_v1 = vadd.s32 127, %v4204_v61  ;;  %v4323_v16 = vshll.u32 %v8183_v32, 16  ;;  %v4300_v12 = vmul.u32 %v4296_v45, %v8064_v46  ;;  %v4303_v8 = vshll.u32 %v8190_v27, 16  ;;  %2246 = vmatmul.f32.vlgmr.msra.gmra.mxu3 %v7003_v38 }
 0x102   :  { %vm4305_vm4 = vc.u32 %v4297_v33, %v4301_v51  ;;  %v4307_v19 = vadd.s32 %v4301_v51, %v4297_v33  ;;  %v4203_v4 = vor.u32 %v4202_v56, %v4201_v14  ;;  %v4302_v41 = vshrl.u32 %v4298_v15, 16  ;;  %v164_v56 = vld [vmem:[#allocation5 + $0x348] sm:$0xff] }
 0x103   :  { %v4206_v24 = vshll.u32 %v4205_v1, 23  ;;  %v11037_v23 = vmov 0   ;;  %v11038_v48 = vand.u32 4294901760, %v7954_v21  ;;  %v4304_v34 = vshrl.u32 %v8190_v27, 16 }
 0x104   :  { %v4306_v63 = vsel %vm4305_vm4, 1, %v11037_v23  ;;  %vm4309_vm5 = vc.u32 %v4307_v19, %v4303_v8  ;;  %vm4327_vm6 = vc.u32 %v4319_v36, %v4323_v16  ;;  %v4322_v61 = vmul.u32 %v4318_v9, %v8064_v46 }
 0x105   :  { %2265 = vmatpush.msrb.mxu0 %v11038_v48  ;;  %v4308_v45 = vadd.s32 %v4306_v63, %v4300_v12  ;;  %v4207_v28 = vor.u32 4788187, %v4206_v24  ;;  %v4310_v57 = vsel %vm4309_vm5, 1, %v11037_v23  ;;  %v4325_v15 = vshll.u32 %v8206_v22, 16  ;;  %v794_v24 = vpop.f32.mrf.mxu2 }
 0x106   :  { %v11039_v33 = vand.u32 4294901760, %v7997_v47  ;;  %v4210_v21 = vcvt.s32.f32 %v4203_v4  ;;  %v4328_v14 = vsel %vm4327_vm6, 1, %v11037_v23  ;;  %v4329_v27 = vadd.s32 %v4323_v16, %v4319_v36  ;;  %v148_v4 = vld [vmem:[#allocation5 + $0x2c8] sm:$0xff] }
 0x107   :  { %v4312_v51 = vadd.s32 %v4310_v57, %v4308_v45  ;;  %v4208_v1 = vand.u32 2147483647, %v4207_v28  ;;  %v4330_v12 = vadd.s32 %v4328_v14, %v4322_v61  ;;  %v2162_v8 = vand.u32 4294901760, %v2161_v59  ;;  %v132_v57 = vld [vmem:[#allocation5 + $0x248] sm:$0xff] }
 0x108   :  { %2269 = vmatpush.msrb.mxu0 %v11039_v33  ;;  %v2166_v19 = vand.u32 4294901760, %v8089_v7  ;;  %v11040_v63 = vand.u32 4294901760, %v8008_v37  ;;  %v4324_v9 = vshrl.u32 %v8183_v32, 16  ;;  %vm4331_vm7 = vc.u32 %v4329_v27, %v4325_v15  ;;  %v8244_v37 = vld [vmem:[#allocation7 + $0x2] ss:$4 sm:$0xff] }
 0x109   :  { %v4313_v46 = vadd.s32 %v4312_v51, %v4302_v41  ;;  %v8236_v47 = vadd.s32 %v4329_v27, %v4325_v15  ;;  %v4211_v48 = vmul.f32 %v4210_v21, %v4208_v1  ;;  %v4332_v36 = vsel %vm4331_vm7, 1, %v11037_v23  ;;  %2163 = vmatpush.msra.mxu1 %v2162_v8  ;;  %v116_v14 = vld [vmem:[#allocation5 + $0x1c8] sm:$0xff] }
 0x10a   :  { %2273 = vmatpush.msrb.mxu0 %v11040_v63  ;;  %v2167_v16 = vsub.f32 %v8089_v7, %v2166_v19  ;;  %v8240_v59 = vand.u32 4294901760, %v164_v56  ;;  %v4334_v32 = vadd.s32 %v4332_v36, %v4330_v12  ;;  %v2367_v45 = vand.u32 4294901760, %v8201_v17 }
 0x10b   :  { %v8246_v41 = vadd.s32 %v4313_v46, %v4304_v34  ;;  %v795_v28 = vadd.f32 %v794_v24, %v8186_v55  ;;  %v4212_v61 = vxor.u32 2147483648, %v4211_v48  ;;  %v2172_v7 = vand.u32 4294901760, %v8178_v53  ;;  %v899_v46 = vpop.f32.mrf.mxu1 }
 0x10c   :  { %2277 = vmatpush.msrb.mxu0 %v2154_v26  ;;  %v2168_v15 = vand.u32 4294901760, %v2167_v16  ;;  %2335 = vmatpush.msrb.mxu2 %v8240_v59  ;;  %v8252_v33 = vand.u32 4294901760, %v148_v4  ;;  %v4326_v26 = vshrl.u32 %v8206_v22, 16  ;;  %v4335_v34 = vadd.s32 %v4334_v32, %v4324_v9  ;;  %v870_v22 = vpop.f32.mrf.mxu0 }
 0x10d   :  { %vm4339_vm8 = vc.u32 %v8246_v41, %v8236_v47  ;;  %v2368_v55 = vsub.f32 %v8201_v17, %v2367_v45  ;;  %v4213_v21 = vsel %vm4092_vm12, %v4212_v61, %v4211_v48  ;;  %vm6558_vm9 = vcmp.gt.f32.partialorder %v8244_v37, 0.5 }
 0x10e   :  { %2281 = vmatpush.msrb.mxu0 %v2160_v10  ;;  %2169 = vmatpush.msra.mxu1 %v2168_v15  ;;  %v2173_v51 = vsub.f32 %v8178_v53, %v2172_v7  ;;  %v8268_v25 = vsub.f32 %v164_v56, %v8240_v59  ;;  %v8270_v10 = vand.u32 4294901760, %v132_v57  ;;  %v8275_v27 = vsel %vm8093_vm13, %v7748_v42, %v4213_v21  ;;  %v8305_v15 = vld [vmem:[#allocation7] ss:$4 sm:$0xff] }
 0x10f   :  { %2337 = vmatpush.msrb.mxu2 %v8252_v33  ;;  %v4336_v1 = vadd.s32 %v4335_v34, %v4326_v26  ;;  %v2369_v12 = vand.u32 4294901760, %v2368_v55  ;;  %v826_v8 = vadd.f32 %v825_v35, %v795_v28  ;;  %v8279_v53 = vmul.f32 %v8275_v27, %v8275_v27  ;;  %v8308_v35 = vld [vmem:[#allocation5 + $0x148] sm:$0xff] }
 0x110   :  { %2285 = vmatpush.msrb.mxu0 %v2166_v19  ;;  %v2174_v24 = vand.u32 4294901760, %v2173_v51  ;;  %v2373_v56 = vand.u32 4294901760, %v8268_v25  ;;  %v8284_v63 = vsub.f32 %v148_v4, %v8252_v33  ;;  %v8286_v48 = vand.u32 4294901760, %v116_v14 }
 0x111   :  { %2339 = vmatpush.msrb.mxu2 %v8270_v10  ;;  %v4340_v52 = vadd.s32 1, %v4336_v1  ;;  %2370 = vmatpush.msrb.mxu3 %v2369_v12  ;;  %v871_v9 = vadd.f32 %v870_v22, %v826_v8  ;;  %v8289_v19 = vsub.f32 %v132_v57, %v8270_v10  ;;  %v4219_v36 = vmul.f32 -0.001358992, %v8279_v53 }
 0x112   :  { %2289 = vmatpush.msrb.mxu0 %v2172_v7  ;;  %v4226_v16 = vmul.f32 -0.00019511016, %v8279_v53  ;;  %2175 = vmatpush.msra.mxu1 %v2174_v24  ;;  %v2374_v4 = vsub.f32 %v8268_v25, %v2373_v56  ;;  %v2379_v32 = vand.u32 4294901760, %v8284_v63  ;;  %vm4246_vm10 = vcmp.lt.s32.totalorder %v7975_v5, 0 }
 0x113   :  { %v4341_v28 = vsel %vm4339_vm8, %v4340_v52, %v4336_v1  ;;  %2341 = vmatpush.msrb.mxu2 %v8286_v48  ;;  %v2385_v57 = vand.u32 4294901760, %v8289_v19  ;;  %v900_v61 = vadd.f32 %v899_v46, %v871_v9  ;;  %v3990_v7 = vperm.slane %v8305_v15, 2  ;;  %2177 = vmatmul.f32.vlgmr.msra.gmra.mxu1 %v6967_v62  ;;  %v8322_v1 = vld [vmem:[#allocation7 + $0x1] ss:$4 sm:$0xff] }
 0x114   :  { %2428 = vmatpush.msra.mxu0 %v8201_v17  ;;  %2304 = vmatpush.msrb.mxu1 %v7854_v0  ;;  %v4220_v26 = vadd.f32 0.041655596, %v4219_v36  ;;  %v4227_v34 = vadd.f32 0.008332121, %v4226_v16  ;;  %v4342_v55 = vadd.s32 %v4341_v28, %v4337_v31  ;;  %v2375_v21 = vand.u32 4294901760, %v2374_v4 }
 0x115   :  { %2291 = vmatmul.f32.vlgmr.msrb.gmra.mxu0 %v6967_v62  ;;  %v2380_v0 = vsub.f32 %v8284_v63, %v2379_v32  ;;  %v2386_v51 = vsub.f32 %v8289_v19, %v2385_v57  ;;  %v4022_v22 = vmul.f32 %v3990_v7, %v900_v61  ;;  %v4044_v20 = vperm.slane %v8322_v1, 2 }
 0x116   :  { %2306 = vmatpush.msrb.mxu1 %v7915_v58  ;;  %2431 = vmatpush.msra.mxu0 %v8268_v25  ;;  %v4221_v31 = vmul.f32 %v4220_v26, %v8279_v53  ;;  %v4228_v58 = vmul.f32 %v4227_v34, %v8279_v53  ;;  %v4343_v12 = vadd.s32 536870912, %v4342_v55  ;;  %v8331_v8 = vand.u32 4294901760, %v8308_v35 }
 0x117   :  { %2376 = vmatpush.msrb.mxu3 %v2375_v21  ;;  %v2381_v24 = vand.u32 4294901760, %v2380_v0  ;;  %v2387_v46 = vand.u32 4294901760, %v2386_v51  ;;  %v8334_v52 = vadd.f32 %v4044_v20, %v4022_v22  ;;  %v8337_v9 = vsub.f32 %v116_v14, %v8286_v48 }
 0x118   :  { %2308 = vmatpush.msrb.mxu1 %v7928_v40  ;;  %2434 = vmatpush.msra.mxu0 %v8284_v63  ;;  %v4222_v36 = vadd.f32 -0.4999988, %v4221_v31  ;;  %v4229_v16 = vadd.f32 -0.16666654, %v4228_v58  ;;  %v4344_v4 = vshrl.u32 %v4343_v12, 30  ;;  %v8342_v28 = vand.u32 4294901760, %v8325_v11 }
 0x119   :  { %2343 = vmatpush.msrb.mxu2 %v8331_v8  ;;  %v8347_v40 = vsel %vm6558_vm9, 1, %v11037_v23  ;;  %v11041_v61 = vand.u32 2147483647, %v7975_v5  ;;  %2382 = vmatpush.msrb.mxu3 %v2381_v24  ;;  %v11000_v7 = vand.u32 2147483647, %v8334_v52  ;;  %v4401_v26 = vand.u32 2139095040, %v8334_v52 }
 0x11a   :  { %2310 = vmatpush.msrb.mxu1 %v7947_v54  ;;  %v4223_v34 = vmul.f32 %v4222_v36, %v8279_v53  ;;  %v4230_v21 = vmul.f32 %v4229_v16, %v8279_v53  ;;  %v4345_v37 = vshll.u32 %v4344_v4, 30  ;;  %v4368_v0 = vsub.s32 4, %v4344_v4  ;;  %2437 = vmatpush.msra.mxu0 %v8289_v19 }
 0x11b   :  { %vm8351_vm11 = vcmp.le.f32.partialorder %v11041_v61, 0.7853982  ;;  %2345 = vmatpush.msrb.mxu2 %v8342_v28  ;;  %vm4233_vm12 = vweird.f32 %v7748_v42  ;;  %vm4235_vm13 = vcmp.lt.s32.totalorder %v8180_v43, 2  ;;  %2388 = vmatpush.msrb.mxu3 %v2387_v46  ;;  %v4402_v51 = vshrl.u32 %v4401_v26, 23 }
 0x11c   :  { %v4405_v22 = vand.u32 8388607, %v11000_v7  ;;  %v2391_v54 = vand.u32 4294901760, %v8337_v9  ;;  %2312 = vmatpush.msrb.mxu1 %v7957_v6  ;;  %v4224_v53 = vadd.f32 1.0, %v4223_v34  ;;  %v4231_v20 = vadd.f32 1.0, %v4230_v21  ;;  %2440 = vmatpush.msra.mxu0 %v8337_v9 }
 0x11d   :  { %v8368_v31 = vsub.s32 %v4342_v55, %v4345_v37  ;;  %v4369_v58 = vsel %vm4246_vm10, %v4368_v0, %v4344_v4  ;;  %v6562_v12 = vperm.slane %v8347_v40, 0  ;;  %v6650_v24 = vadd.s32 4294967169, %v4402_v51 }
 0x11e   :  { %v4406_v46 = vor.u32 8388608, %v4405_v22  ;;  %v2392_v36 = vsub.f32 %v8337_v9, %v2391_v54  ;;  %2314 = vmatpush.msrb.mxu1 %v8031_v3  ;;  %v4232_v6 = vmul.f32 %v4231_v20, %v8275_v27  ;;  %v4240_v16 = vxor.u32 2147483648, %v4224_v53 }
 0x11f   :  { %vm4347_vm14 = vcmp.lt.s32.totalorder %v8368_v31, 0  ;;  %v4348_v55 = vsub.s32 0, %v8368_v31  ;;  %v4371_v4 = vsel %vm8351_vm11, 0, %v4369_v58  ;;  %v4408_v61 = vadd.s32 1, %v6650_v24 }
 0x120   :  { %v8383_v26 = vshll.u32 %v4406_v46, 8  ;;  %v2393_v34 = vand.u32 4294901760, %v2392_v36  ;;  %2316 = vmatpush.msrb.mxu1 %v8058_v44  ;;  %vm4236_vm15 = vcmp.eq.s32.totalorder %v8180_v43, 0  ;;  %v4237_v21 = vxor.u32 2147483648, %v4232_v6  ;;  %v8399_v44 = vld [vmem:[#allocation5 + $0x48] sm:$0xff] }
 0x121   :  { %v4349_v3 = vsel %vm4347_vm14, %v4348_v55, %v8368_v31  ;;  %v8390_v27 = vsub.f32 %v8308_v35, %v8331_v8  ;;  %vm4239_vm0 = vcmp.eq.s32.totalorder %v8180_v43, 2  ;;  %vm8393_vm1 = vcmp.eq.s32.totalorder %v6562_v12, 1 }
 0x122   :  { %v4338_v0 = vadd.s32 %v8236_v47, %v8246_v41  ;;  %v4350_v51 = vclz %v4349_v3  ;;  %2394 = vmatpush.msrb.mxu3 %v2393_v34  ;;  %2318 = vmatpush.msrb.mxu1 %v8116_v18  ;;  %v4238_v22 = vsel %vm4236_vm15, %v4224_v53, %v4237_v21  ;;  %v4241_v20 = vsel %vm4239_vm0, %v4240_v16, %v4232_v6 }
 0x123   :  { %v8402_v58 = vand.u32 3, %v4371_v4  ;;  %vm4409_vm2 = vcmp.gt.s32.totalorder %v4408_v61, 0  ;;  %2320 = vmatmul.f32.vlgmr.msrb.gmra.mxu1 %v6967_v62  ;;  %2443 = vmatpush.msra.mxu0 %v8390_v27  ;;  %v4242_v35 = vsel %vm4235_vm13, %v4238_v22, %v4241_v20  ;;  %v8409_v41 = vand.u32 65535, %v8383_v26 }
 0x124   :  { %v6648_v12 = vadd.s32 4294967294, %v4350_v51  ;;  %v4410_v47 = vsel %vm4409_vm2, %v4408_v61, 0  ;;  %2465 = vmatpush.msra.mxu1 %v8149_v50  ;;  %v4243_v18 = vsel %vm4233_vm12, nan, %v4242_v35  ;;  %v2397_v24 = vand.u32 4294901760, %v8390_v27 }
 0x125   :  { %v4412_v53 = vand.u32 31, %v4410_v47  ;;  %v8416_v46 = vand.u32 4294901760, %v8399_v44  ;;  %v6594_v43 = vsel %vm8393_vm1, %v7748_v42, %v4243_v18  ;;  %v8421_v36 = vshrl.u32 %v4410_v47, 5 }
 0x126   :  { %vm6649_vm3 = vcmp.lt.s32.totalorder %v6648_v12, 0  ;;  %v8425_v6 = vsub.f32 %v8325_v11, %v8342_v28  ;;  %2467 = vmatpush.msra.mxu1 %v8240_v59  ;;  %6610 = vst [vmem:[#allocation8] sm:$0xff] %v6594_v43  ;;  %vm4393_vm12 = vcmp.eq.s32.totalorder %v8402_v58, 2  ;;  %vm4390_vm13 = vcmp.eq.s32.totalorder %v8402_v58, 0 }
 0x127   :  { %v4353_v16 = vsel %vm6649_vm3, 0, %v6648_v12  ;;  %v4413_v55 = vsub.s32 32, %v4412_v53  ;;  %v4415_v4 = vshll.u32 %v11029_v30, %v4412_v53  ;;  %v4418_v61 = vshll.u32 %v11030_v2, %v4412_v53  ;;  %2347 = vmatpush.msrb.mxu2 %v8416_v46 }
 0x128   :  { %v4354_v34 = vsub.s32 32, %v4353_v16  ;;  %v4355_v42 = vshll.u32 %v8368_v31, %v4353_v16  ;;  %v4358_v21 = vsub.s32 4294967266, %v4353_v16  ;;  %v4421_v3 = vshll.u32 %v11031_v49, %v4412_v53  ;;  %2469 = vmatpush.msra.mxu1 %v8252_v33  ;;  %2353 = vmatmul.f32.vlgmr.msrb.gmra.mxu2 %v7040_v60 }
 0x129   :  { %2498 = vmatpush.msra.mxu2 %v2367_v45  ;;  %v4414_v11 = vshrl.u32 %v11029_v30, %v4413_v55  ;;  %v4416_v37 = vshrl.u32 %v11030_v2, %v4413_v55  ;;  %v4419_v51 = vshrl.u32 %v11031_v49, %v4413_v55  ;;  %v4422_v22 = vshrl.u32 %v11032_v39, %v4413_v55 }
 0x12a   :  { %v4356_v20 = vshrl.u32 %v4338_v0, %v4354_v34  ;;  %v4359_v31 = vadd.s32 127, %v4358_v21  ;;  %v4424_v35 = vshll.u32 %v11032_v39, %v4412_v53  ;;  %v11046_v12 = vmov 920167782   ;;  %2471 = vmatpush.msra.mxu1 %v8270_v10  ;;  %2446 = vmatpush.msra.mxu0 %v8425_v6 }
 0x12b   :  { %v4425_v47 = vshrl.u32 %v11046_v12, %v4413_v55  ;;  %2502 = vmatpush.msra.mxu2 %v2373_v56  ;;  %v4417_v17 = vor.u32 %v4416_v37, %v4415_v4  ;;  %v4420_v45 = vor.u32 %v4419_v51, %v4418_v61  ;;  %v4423_v18 = vor.u32 %v4422_v22, %v4421_v3 }
 0x12c   :  { %v4427_v43 = vshll.u32 %v11046_v12, %v4412_v53  ;;  %v4357_v16 = vor.u32 %v4356_v20, %v4355_v42  ;;  %v4360_v7 = vshll.u32 %v4359_v31, 23  ;;  %v4448_v34 = vshrl.u32 %v8383_v26, 16  ;;  %2473 = vmatpush.msra.mxu1 %v8286_v48 }
 0x12d   :  { %v4426_v0 = vor.u32 %v4425_v47, %v4424_v35  ;;  %2506 = vmatpush.msra.mxu2 %v2379_v32  ;;  %v4428_v25 = vshrl.u32 %v11036_v29, %v4413_v55  ;;  %vm4430_vm4 = vcmp.lt.s32.totalorder %v8421_v36, 1  ;;  %vm4432_vm5 = vcmp.lt.s32.totalorder %v8421_v36, 3 }
 0x12e   :  { %v2398_v56 = vsub.f32 %v8390_v27, %v2397_v24  ;;  %v4361_v53 = vor.u32 4788187, %v4360_v7  ;;  %v4364_v4 = vcvt.s32.f32 %v4357_v16  ;;  %v6563_v61 = vperm.slane %v8347_v40, 1  ;;  %2475 = vmatpush.msra.mxu1 %v8331_v8 }
 0x12f   :  { %vm4433_vm6 = vcmp.lt.s32.totalorder %v8421_v36, 4  ;;  %2510 = vmatpush.msra.mxu2 %v2385_v57  ;;  %v4429_v63 = vor.u32 %v4428_v25, %v4427_v43  ;;  %v4434_v32 = vsel %vm4430_vm4, %v4414_v11, %v4417_v17  ;;  %v4438_v42 = vsel %vm4430_vm4, %v4417_v17, %v4420_v45 }
 0x130   :  { %v4435_v55 = vsel %vm4433_vm6, %v4423_v18, 2102212464  ;;  %v4362_v21 = vand.u32 2147483647, %v4361_v53  ;;  %v4439_v3 = vsel %vm4433_vm6, %v4426_v0, 920167782  ;;  %v4442_v37 = vsel %vm4430_vm4, %v4420_v45, %v4423_v18  ;;  %2477 = vmatpush.msra.mxu1 %v8342_v28 }
 0x131   :  { %v4436_v7 = vsel %vm4432_vm5, %v4420_v45, %v4435_v55  ;;  %2514 = vmatpush.msra.mxu2 %v2391_v54  ;;  %vm4431_vm7 = vcmp.lt.s32.totalorder %v8421_v36, 2  ;;  %v4440_v19 = vsel %vm4432_vm5, %v4423_v18, %v4439_v3  ;;  %v4443_v57 = vsel %vm4433_vm6, %v4429_v63, 1326507024  ;;  %v932_v3 = vpop.f32.mrf.mxu2 }
 0x132   :  { %v2399_v11 = vand.u32 4294901760, %v2398_v56  ;;  %v4365_v51 = vmul.f32 %v4364_v4, %v4362_v21  ;;  %v8477_v22 = vsel %vm4431_vm7, %v4434_v32, %v4436_v7  ;;  %v4441_v20 = vsel %vm4431_vm7, %v4438_v42, %v4440_v19  ;;  %2479 = vmatpush.msra.mxu1 %v8416_v46 }
 0x133   :  { %v4444_v31 = vsel %vm4432_vm5, %v4426_v0, %v4443_v57  ;;  %2518 = vmatpush.msra.mxu2 %v2397_v24  ;;  %v4471_v54 = vand.u32 65535, %v4441_v20  ;;  %v4472_v35 = vshrl.u32 %v4441_v20, 16  ;;  %v2403_v47 = vand.u32 4294901760, %v8425_v6  ;;  %2483 = vmatmul.f32.vlgmr.msra.gmra.mxu1 %v7003_v38 }
 0x134   :  { %v4445_v9 = vsel %vm4431_vm7, %v4442_v37, %v4444_v31  ;;  %2400 = vmatpush.msrb.mxu3 %v2399_v11  ;;  %v4366_v17 = vxor.u32 2147483648, %v4365_v51  ;;  %v8487_v43 = vsub.f32 %v8399_v44, %v8416_v46  ;;  %v4491_v16 = vmul.u32 %v8383_v26, %v8477_v22  ;;  %v993_v11 = vpop.f32.mrf.mxu3 }
 0x135   :  { %v4449_v45 = vand.u32 65535, %v4445_v9  ;;  %v4450_v18 = vshrl.u32 %v4445_v9, 16  ;;  %v4473_v27 = vmul.u32 %v4471_v54, %v8409_v41  ;;  %v4474_v24 = vmul.u32 %v4472_v35, %v8409_v41  ;;  %2522 = vmatpush.msra.mxu2 %v2403_v47 }
 0x136   :  { %v8492_v36 = vmul.u32 %v4471_v54, %v4448_v34  ;;  %v4367_v0 = vsel %vm4246_vm10, %v4366_v17, %v4365_v51  ;;  %v4476_v44 = vmul.u32 %v4472_v35, %v4448_v34  ;;  %2449 = vmatpush.msra.mxu0 %v8487_v43  ;;  %v2404_v9 = vsub.f32 %v8425_v6, %v2403_v47 }
 0x137   :  { %v4452_v25 = vmul.u32 %v4450_v18, %v8409_v41  ;;  %v8499_v56 = vmul.u32 %v4449_v45, %v4448_v34  ;;  %v8505_v53 = vsel %vm8351_vm11, %v7975_v5, %v4367_v0  ;;  %v4451_v4 = vmul.u32 %v4449_v45, %v8409_v41  ;;  %2452 = vmatmul.f32.vlgmr.msra.gmra.mxu0 %v6988_v13 }
 0x138   :  { %v4454_v63 = vmul.u32 %v4450_v18, %v4448_v34  ;;  %v4477_v32 = vshll.u32 %v4474_v24, 16  ;;  %v4372_v55 = vmul.f32 %v8505_v53, %v8505_v53  ;;  %v4478_v7 = vshrl.u32 %v4474_v24, 16 }
 0x139   :  { %v4455_v42 = vshll.u32 %v4452_v25, 16  ;;  %v4456_v21 = vshrl.u32 %v4452_v25, 16  ;;  %v4457_v37 = vshll.u32 %v8499_v56, 16  ;;  %v4458_v19 = vshrl.u32 %v8499_v56, 16 }
 0x13a   :  { %v4479_v14 = vshll.u32 %v8492_v36, 16  ;;  %vm4481_vm8 = vc.u32 %v4473_v27, %v4477_v32  ;;  %v4373_v57 = vmul.f32 -0.001358992, %v4372_v55  ;;  %v4380_v41 = vmul.f32 -0.00019511016, %v4372_v55 }
 0x13b   :  { %vm4459_vm9 = vc.u32 %v4451_v4, %v4455_v42  ;;  %v4461_v34 = vadd.s32 %v4455_v42, %v4451_v4  ;;  %v4482_v20 = vsel %vm4481_vm8, 1, %v11037_v23  ;;  %v4483_v31 = vadd.s32 %v4477_v32, %v4473_v27  ;;  %v1031_v42 = vpop.f32.mrf.mxu0  ;;  %v181_v32 = vld [vmem:[#allocation5 + $0x3d0] sm:$0xff] }
 0x13c   :  { %v4460_v51 = vsel %vm4459_vm9, 1, %v11037_v23  ;;  %v4374_v54 = vadd.f32 0.041655596, %v4373_v57  ;;  %v4381_v35 = vadd.f32 0.008332121, %v4380_v41  ;;  %v4480_v18 = vshrl.u32 %v8492_v36, 16 }
 0x13d   :  { %v4462_v17 = vadd.s32 %v4460_v51, %v4454_v63  ;;  %vm4463_vm10 = vc.u32 %v4461_v34, %v4457_v37  ;;  %v4484_v24 = vadd.s32 %v4482_v20, %v4476_v44  ;;  %vm4485_vm11 = vc.u32 %v4483_v31, %v4479_v14  ;;  %v1062_v44 = vpop.f32.mrf.mxu1  ;;  %v165_v34 = vld [vmem:[#allocation5 + $0x350] sm:$0xff] }
 0x13e   :  { %v4464_v45 = vsel %vm4463_vm10, 1, %v11037_v23  ;;  %v4375_v0 = vmul.f32 %v4374_v54, %v4372_v55  ;;  %v4382_v25 = vmul.f32 %v4381_v35, %v4372_v55  ;;  %v4486_v4 = vsel %vm4485_vm11, 1, %v11037_v23 }
 0x13f   :  { %v4466_v56 = vadd.s32 %v4464_v45, %v4462_v17  ;;  %v4488_v27 = vadd.s32 %v4486_v4, %v4484_v24  ;;  %v2405_v6 = vand.u32 4294901760, %v2404_v9  ;;  %v2409_v47 = vand.u32 4294901760, %v8487_v43  ;;  %v149_v17 = vld [vmem:[#allocation5 + $0x2d0] sm:$0xff] }
 0x140   :  { %v994_v63 = vadd.f32 %v993_v11, %v932_v3  ;;  %v4376_v37 = vadd.f32 -0.4999988, %v4375_v0  ;;  %v4383_v57 = vadd.f32 -0.16666654, %v4382_v25  ;;  %v8522_v36 = vadd.s32 %v4483_v31, %v4479_v14  ;;  %v133_v45 = vld [vmem:[#allocation5 + $0x250] sm:$0xff] }
 0x141   :  { %v4467_v41 = vadd.s32 %v4466_v56, %v4456_v21  ;;  %v4489_v51 = vadd.s32 %v4488_v27, %v4478_v7  ;;  %2406 = vmatpush.msrb.mxu3 %v2405_v6  ;;  %v2410_v20 = vsub.f32 %v8487_v43, %v2409_v47  ;;  %v3991_v9 = vperm.slane %v8305_v15, 3  ;;  %2526 = vmatpush.msra.mxu2 %v2409_v47  ;;  %v1107_v7 = vpop.f32.mrf.mxu2 }
 0x142   :  { %v1032_v54 = vadd.f32 %v1031_v42, %v994_v63  ;;  %v4377_v35 = vmul.f32 %v4376_v37, %v4372_v55  ;;  %v4384_v3 = vmul.f32 %v4383_v57, %v4372_v55  ;;  %vm4389_vm14 = vcmp.lt.s32.totalorder %v8402_v58, 2  ;;  %2528 = vmatmul.f32.vlgmr.msra.gmra.mxu2 %v6967_v62  ;;  %v101_v58 = vld [vmem:[#allocation5 + $0x150] sm:$0xff] }
 0x143   :  { %vm8530_vm15 = vcmp.eq.s32.totalorder %v6563_v61, 1  ;;  %v8534_v14 = vadd.s32 %v4467_v41, %v4458_v19  ;;  %v8537_v43 = vand.u32 4294901760, %v181_v32  ;;  %vm4387_vm0 = vweird.f32 %v7975_v5  ;;  %v1136_v19 = vpop.f32.mrf.mxu3 }
 0x144   :  { %v4490_v15 = vadd.s32 %v4489_v51, %v4480_v18  ;;  %v2411_v11 = vand.u32 4294901760, %v2410_v20  ;;  %v1063_v55 = vadd.f32 %v1062_v44, %v1032_v54  ;;  %v8540_v31 = vand.u32 4294901760, %v165_v34 }
 0x145   :  { %v4378_v61 = vadd.f32 1.0, %v4377_v35  ;;  %v4385_v24 = vadd.f32 1.0, %v4384_v3  ;;  %vm4493_vm1 = vc.u32 %v8534_v14, %v8522_v36  ;;  %v4045_v0 = vperm.slane %v8322_v1, 3  ;;  %2570 = vmatpush.msrb.mxu0 %v8537_v43 }
 0x146   :  { %v4494_v25 = vadd.s32 1, %v4490_v15  ;;  %2412 = vmatpush.msrb.mxu3 %v2411_v11  ;;  %v1108_v56 = vadd.f32 %v1107_v7, %v1063_v55  ;;  %v8547_v18 = vsub.f32 %v181_v32, %v8537_v43  ;;  %v8550_v4 = vsub.f32 %v165_v34, %v8540_v31 }
 0x147   :  { %v4386_v42 = vmul.f32 %v4385_v24, %v8505_v53  ;;  %v4394_v27 = vxor.u32 2147483648, %v4378_v61  ;;  %2572 = vmatpush.msrb.mxu0 %v8540_v31  ;;  %v8555_v6 = vand.u32 4294901760, %v149_v17  ;;  %v8557_v1 = vand.u32 4294901760, %v133_v45  ;;  %2414 = vmatmul.f32.vlgmr.msrb.gmra.mxu3 %v6967_v62  ;;  %v117_v53 = vld [vmem:[#allocation5 + $0x1d0] sm:$0xff] }
 0x148   :  { %2541 = vmatpush.msra.mxu3 %v8149_v50  ;;  %v4495_v47 = vsel %vm4493_vm1, %v4494_v25, %v4490_v15  ;;  %v1137_v63 = vadd.f32 %v1136_v19, %v1108_v56  ;;  %2665 = vmatpush.msrb.mxu2 %v8547_v18  ;;  %v2604_v32 = vand.u32 4294901760, %v8547_v18  ;;  %v2610_v37 = vand.u32 4294901760, %v8550_v4 }
 0x149   :  { %v4391_v57 = vxor.u32 2147483648, %v4386_v42  ;;  %v4395_v50 = vsel %vm4393_vm12, %v4394_v27, %v4386_v42  ;;  %v4496_v41 = vadd.s32 %v4495_v47, %v4491_v16  ;;  %2574 = vmatpush.msrb.mxu0 %v8555_v6  ;;  %v8571_v44 = vsub.f32 %v149_v17, %v8555_v6 }
 0x14a   :  { %2543 = vmatpush.msra.mxu3 %v8240_v59  ;;  %v4023_v34 = vmul.f32 %v3991_v9, %v1137_v63  ;;  %2668 = vmatpush.msrb.mxu2 %v8550_v4  ;;  %v2605_v51 = vsub.f32 %v8547_v18, %v2604_v32  ;;  %v2611_v20 = vsub.f32 %v8550_v4, %v2610_v37  ;;  %v8587_v16 = vand.u32 4294901760, %v117_v53  ;;  %v1230_v18 = vpop.f32.mrf.mxu1 }
 0x14b   :  { %v8581_v26 = vsub.f32 %v133_v45, %v8557_v1  ;;  %v4392_v59 = vsel %vm4390_vm13, %v4378_v61, %v4391_v57  ;;  %v4497_v22 = vadd.s32 536870912, %v4496_v41  ;;  %2576 = vmatpush.msrb.mxu0 %v8557_v1  ;;  %v2616_v54 = vand.u32 4294901760, %v8571_v44  ;;  %v85_v61 = vld [vmem:[#allocation5 + $0xd0] sm:$0xff] }
 0x14c   :  { %2545 = vmatpush.msra.mxu3 %v8252_v33  ;;  %v4396_v9 = vsel %vm4389_vm14, %v4392_v59, %v4395_v50  ;;  %v8592_v35 = vadd.f32 %v4045_v0, %v4023_v34  ;;  %v2606_v3 = vand.u32 4294901760, %v2605_v51  ;;  %2671 = vmatpush.msrb.mxu2 %v8571_v44  ;;  %v2612_v7 = vand.u32 4294901760, %v2611_v20 }
 0x14d   :  { %v4397_v15 = vsel %vm4387_vm0, nan, %v4396_v9  ;;  %v4498_v11 = vshrl.u32 %v4497_v22, 30  ;;  %2578 = vmatpush.msrb.mxu0 %v8587_v16  ;;  %v2617_v33 = vsub.f32 %v8571_v44, %v2616_v54  ;;  %vm4400_vm2 = vcmp.lt.s32.totalorder %v8334_v52, 0  ;;  %v69_v9 = vld [vmem:[#allocation5 + $0x50] sm:$0xff] }
 0x14e   :  { %2547 = vmatpush.msra.mxu3 %v8270_v10  ;;  %v6595_v55 = vsel %vm8530_vm15, %v7975_v5, %v4397_v15  ;;  %v11001_v17 = vand.u32 2147483647, %v8592_v35  ;;  %v4555_v45 = vand.u32 2139095040, %v8592_v35  ;;  %2607 = vmatpush.msrb.mxu1 %v2606_v3  ;;  %v8609_v10 = vsub.f32 %v117_v53, %v8587_v16 }
 0x14f   :  { %2674 = vmatpush.msrb.mxu2 %v8581_v26  ;;  %6611 = vst [vmem:[#allocation8 + $0x8] sm:$0xff] %v6595_v55  ;;  %v4499_v24 = vshll.u32 %v4498_v11, 30  ;;  %v4522_v19 = vsub.s32 4, %v4498_v11  ;;  %v2618_v0 = vand.u32 4294901760, %v2617_v33  ;;  %v8616_v25 = vand.u32 4294901760, %v101_v58 }
 0x150   :  { %2549 = vmatpush.msra.mxu3 %v8286_v48  ;;  %v4556_v5 = vshrl.u32 %v4555_v45, 23  ;;  %v4559_v21 = vand.u32 8388607, %v11001_v17  ;;  %2613 = vmatpush.msrb.mxu1 %v2612_v7  ;;  %v11003_v48 = vand.u32 4294901760, %v8581_v26  ;;  %v8624_v27 = vand.u32 4294901760, %v85_v61 }
 0x151   :  { %2677 = vmatpush.msrb.mxu2 %v8609_v10  ;;  %v8618_v56 = vsub.s32 %v4496_v41, %v4499_v24  ;;  %v4523_v42 = vsel %vm4400_vm2, %v4522_v19, %v4498_v11  ;;  %v11049_v47 = vand.u32 2147483647, %v8334_v52  ;;  %2580 = vmatpush.msrb.mxu0 %v8616_v25  ;;  %v8634_v50 = vsub.f32 %v101_v58, %v8616_v25  ;;  %v8660_v11 = vld [vmem:[#allocation5 + $0x3d8] sm:$0xff] }
 0x152   :  { %2551 = vmatpush.msra.mxu3 %v8331_v8  ;;  %v6653_v53 = vadd.s32 4294967169, %v4556_v5  ;;  %v4560_v57 = vor.u32 8388608, %v4559_v21  ;;  %2619 = vmatpush.msrb.mxu1 %v2618_v0  ;;  %v2623_v34 = vsub.f32 %v8581_v26, %v11003_v48  ;;  %v11002_v59 = vand.u32 4294901760, %v8609_v10 }
 0x153   :  { %vm8628_vm3 = vcmp.le.f32.partialorder %v11049_v47, 0.7853982  ;;  %vm4501_vm4 = vcmp.lt.s32.totalorder %v8618_v56, 0  ;;  %v4502_v8 = vsub.s32 0, %v8618_v56  ;;  %2680 = vmatpush.msrb.mxu2 %v8634_v50  ;;  %2582 = vmatpush.msrb.mxu0 %v8624_v27  ;;  %v8650_v22 = vsub.f32 %v85_v61, %v8624_v27 }
 0x154   :  { %v4525_v41 = vsel %vm8628_vm3, 0, %v4523_v42  ;;  %2553 = vmatpush.msra.mxu3 %v8342_v28  ;;  %v4562_v51 = vadd.s32 1, %v6653_v53  ;;  %v8644_v20 = vshll.u32 %v4560_v57, 8  ;;  %v4492_v28 = vadd.s32 %v8522_v36, %v8534_v14 }
 0x155   :  { %v4503_v3 = vsel %vm4501_vm4, %v4502_v8, %v8618_v56  ;;  %v8656_v15 = vand.u32 3, %v4525_v41  ;;  %2683 = vmatpush.msrb.mxu2 %v8650_v22  ;;  %v2624_v58 = vand.u32 4294901760, %v2623_v34  ;;  %v8666_v55 = vand.u32 4294901760, %v69_v9 }
 0x156   :  { %2555 = vmatpush.msra.mxu3 %v8416_v46  ;;  %v4504_v7 = vclz %v4503_v3  ;;  %vm4563_vm5 = vcmp.gt.s32.totalorder %v4562_v51, 0  ;;  %v2629_v46 = vsub.f32 %v8609_v10, %v11002_v59  ;;  %v8669_v45 = vand.u32 65535, %v8644_v20 }
 0x157   :  { %2557 = vmatmul.f32.vlgmr.msra.gmra.mxu3 %v6967_v62  ;;  %v4564_v33 = vsel %vm4563_vm5, %v4562_v51, 0  ;;  %v8672_v61 = vshrl.u32 %v8644_v20, 16  ;;  %2625 = vmatpush.msrb.mxu1 %v2624_v58  ;;  %v8678_v0 = vsub.f32 %v69_v9, %v8666_v55  ;;  %v8681_v5 = vand.u32 4294901760, %v8660_v11 }
 0x158   :  { %2702 = vmatpush.msrb.mxu3 %v8537_v43  ;;  %v6651_v36 = vadd.s32 4294967294, %v4504_v7  ;;  %v4566_v14 = vand.u32 31, %v4564_v33  ;;  %v8674_v24 = vshrl.u32 %v4564_v33, 5  ;;  %v2630_v19 = vand.u32 4294901760, %v2629_v46  ;;  %2584 = vmatpush.msrb.mxu0 %v8666_v55 }
 0x159   :  { %2686 = vmatpush.msrb.mxu2 %v8678_v0  ;;  %v6564_v4 = vperm.slane %v8347_v40, 2  ;;  %2590 = vmatmul.f32.vlgmr.msrb.gmra.mxu0 %v7040_v60  ;;  %vm4547_vm15 = vcmp.eq.s32.totalorder %v8656_v15, 2  ;;  %vm4544_vm0 = vcmp.eq.s32.totalorder %v8656_v15, 0  ;;  %vm4543_vm1 = vcmp.lt.s32.totalorder %v8656_v15, 2 }
 0x15a   :  { %2704 = vmatpush.msrb.mxu3 %v8540_v31  ;;  %vm6652_vm6 = vcmp.lt.s32.totalorder %v6651_v36, 0  ;;  %v4567_v21 = vsub.s32 32, %v4566_v14  ;;  %v4569_v42 = vshll.u32 %v11029_v30, %v4566_v14  ;;  %v4572_v47 = vshll.u32 %v11030_v2, %v4566_v14  ;;  %2631 = vmatpush.msrb.mxu1 %v2630_v19 }
 0x15b   :  { %v4507_v53 = vsel %vm6652_vm6, 0, %v6651_v36  ;;  %v4575_v57 = vshll.u32 %v11031_v49, %v4566_v14  ;;  %v4578_v8 = vshll.u32 %v11032_v39, %v4566_v14  ;;  %v4581_v41 = vshll.u32 %v11046_v12, %v4566_v14  ;;  %2735 = vmatpush.msra.mxu0 %v2604_v32  ;;  %2807 = vmatpush.msra.mxu2 %v8681_v5 }
 0x15c   :  { %2706 = vmatpush.msrb.mxu3 %v8555_v6  ;;  %v4508_v34 = vsub.s32 32, %v4507_v53  ;;  %v4509_v51 = vshll.u32 %v8618_v56, %v4507_v53  ;;  %v4512_v9 = vsub.s32 4294967266, %v4507_v53  ;;  %v4568_v3 = vshrl.u32 %v11029_v30, %v4567_v21  ;;  %2689 = vmatmul.f32.vlgmr.msrb.gmra.mxu2 %v6988_v13 }
 0x15d   :  { %v4570_v7 = vshrl.u32 %v11030_v2, %v4567_v21  ;;  %v4573_v33 = vshrl.u32 %v11031_v49, %v4567_v21  ;;  %v4576_v58 = vshrl.u32 %v11032_v39, %v4567_v21  ;;  %v4579_v46 = vshrl.u32 %v11046_v12, %v4567_v21  ;;  %2739 = vmatpush.msra.mxu0 %v2610_v37 }
 0x15e   :  { %2708 = vmatpush.msrb.mxu3 %v8557_v1  ;;  %v4510_v36 = vshrl.u32 %v4492_v28, %v4508_v34  ;;  %v4513_v56 = vadd.s32 127, %v4512_v9  ;;  %v4582_v14 = vshrl.u32 %v11036_v29, %v4567_v21  ;;  %vm4584_vm7 = vcmp.lt.s32.totalorder %v8674_v24, 1  ;;  %v1169_v34 = vpop.f32.mrf.mxu0 }
 0x15f   :  { %v4571_v32 = vor.u32 %v4570_v7, %v4569_v42  ;;  %v4574_v19 = vor.u32 %v4573_v33, %v4572_v47  ;;  %v4577_v53 = vor.u32 %v4576_v58, %v4575_v57  ;;  %v4580_v17 = vor.u32 %v4579_v46, %v4578_v8  ;;  %2743 = vmatpush.msra.mxu0 %v2616_v54 }
 0x160   :  { %2710 = vmatpush.msrb.mxu3 %v8587_v16  ;;  %v4511_v59 = vor.u32 %v4510_v36, %v4509_v51  ;;  %v4514_v48 = vshll.u32 %v4513_v56, 23  ;;  %v4583_v28 = vor.u32 %v4582_v14, %v4581_v41  ;;  %v2634_v21 = vand.u32 4294901760, %v8634_v50 }
 0x161   :  { %vm4586_vm8 = vcmp.lt.s32.totalorder %v8674_v24, 3  ;;  %vm4587_vm9 = vcmp.lt.s32.totalorder %v8674_v24, 4  ;;  %v8714_v37 = vadd.f32 %v1230_v18, %v1169_v34  ;;  %vm4585_vm10 = vcmp.lt.s32.totalorder %v8674_v24, 2 }
 0x162   :  { %2712 = vmatpush.msrb.mxu3 %v8616_v25  ;;  %v4515_v42 = vor.u32 4788187, %v4514_v48  ;;  %v4588_v44 = vsel %vm4584_vm7, %v4568_v3, %v4571_v32  ;;  %v4589_v54 = vsel %vm4587_vm9, %v4577_v53, 2102212464  ;;  %v11052_v47 = vand.u32 4294901760, %v8581_v26 }
 0x163   :  { %v4590_v57 = vsel %vm4586_vm8, %v4574_v19, %v4589_v54  ;;  %v4592_v8 = vsel %vm4584_vm7, %v4571_v32, %v4574_v19  ;;  %v4593_v48 = vsel %vm4587_vm9, %v4580_v17, 920167782  ;;  %v4596_v41 = vsel %vm4584_vm7, %v4574_v19, %v4577_v53 }
 0x164   :  { %2747 = vmatpush.msra.mxu0 %v11052_v47  ;;  %2714 = vmatpush.msrb.mxu3 %v8624_v27  ;;  %v4516_v51 = vand.u32 2147483647, %v4515_v42  ;;  %v4518_v9 = vcvt.s32.f32 %v4511_v59  ;;  %v4594_v26 = vsel %vm4586_vm8, %v4577_v53, %v4593_v48  ;;  %v4597_v3 = vsel %vm4587_vm9, %v4583_v28, 1326507024 }
 0x165   :  { %v11053_v7 = vand.u32 4294901760, %v8609_v10  ;;  %v8741_v33 = vsel %vm4585_vm10, %v4588_v44, %v4590_v57  ;;  %v4595_v58 = vsel %vm4585_vm10, %v4592_v8, %v4594_v26  ;;  %v4598_v46 = vsel %vm4586_vm8, %v4580_v17, %v4597_v3 }
 0x166   :  { %v2635_v59 = vsub.f32 %v8634_v50, %v2634_v21  ;;  %2716 = vmatpush.msrb.mxu3 %v8666_v55  ;;  %v4519_v36 = vmul.f32 %v4518_v9, %v4516_v51  ;;  %v4599_v56 = vsel %vm4585_vm10, %v4596_v41, %v4598_v46  ;;  %v4625_v10 = vand.u32 65535, %v4595_v58 }
 0x167   :  { %2751 = vmatpush.msra.mxu0 %v11053_v7  ;;  %v4626_v14 = vshrl.u32 %v4595_v58, 16  ;;  %2720 = vmatmul.f32.vlgmr.msrb.gmra.mxu3 %v7003_v38  ;;  %v4603_v18 = vand.u32 65535, %v4599_v56  ;;  %v4604_v32 = vshrl.u32 %v4599_v56, 16  ;;  %v8754_v53 = vsub.f32 %v8660_v11, %v8681_v5 }
 0x168   :  { %v2636_v19 = vand.u32 4294901760, %v2635_v59  ;;  %v4520_v17 = vxor.u32 2147483648, %v4519_v36  ;;  %v4627_v50 = vmul.u32 %v4625_v10, %v8669_v45  ;;  %v4629_v24 = vmul.u32 %v4625_v10, %v8672_v61  ;;  %v166_v10 = vld [vmem:[#allocation5 + $0x358] sm:$0xff] }
 0x169   :  { %2755 = vmatpush.msra.mxu0 %v2634_v21  ;;  %v4628_v28 = vmul.u32 %v4626_v14, %v8669_v45  ;;  %v4605_v34 = vmul.u32 %v4603_v18, %v8669_v45  ;;  %v4606_v42 = vmul.u32 %v4604_v32, %v8669_v45  ;;  %v4607_v21 = vmul.u32 %v4603_v18, %v8672_v61 }
 0x16a   :  { %v4608_v44 = vmul.u32 %v4604_v32, %v8672_v61  ;;  %2637 = vmatpush.msrb.mxu1 %v2636_v19  ;;  %v4521_v11 = vsel %vm4400_vm2, %v4520_v17, %v4519_v36  ;;  %v4630_v54 = vmul.u32 %v4626_v14, %v8672_v61  ;;  %v4633_v26 = vshll.u32 %v4629_v24, 16  ;;  %v1268_v17 = vpop.f32.mrf.mxu2 }
 0x16b   :  { %v4631_v47 = vshll.u32 %v4628_v28, 16  ;;  %v4632_v57 = vshrl.u32 %v4628_v28, 16  ;;  %v8769_v8 = vsel %vm8628_vm3, %v8334_v52, %v4521_v11  ;;  %v4609_v48 = vshll.u32 %v4606_v42, 16 }
 0x16c   :  { %v4610_v41 = vshrl.u32 %v4606_v42, 16  ;;  %v4611_v45 = vshll.u32 %v4607_v21, 16  ;;  %v4526_v51 = vmul.f32 %v8769_v8, %v8769_v8  ;;  %v4612_v9 = vshrl.u32 %v4607_v21, 16 }
 0x16d   :  { %v4634_v3 = vshrl.u32 %v4629_v24, 16  ;;  %vm4613_vm11 = vc.u32 %v4605_v34, %v4609_v48  ;;  %v4615_v7 = vadd.s32 %v4609_v48, %v4605_v34  ;;  %vm4635_vm12 = vc.u32 %v4627_v50, %v4631_v47 }
 0x16e   :  { %v4637_v61 = vadd.s32 %v4631_v47, %v4627_v50  ;;  %v4527_v58 = vmul.f32 -0.001358992, %v4526_v51  ;;  %v4534_v46 = vmul.f32 -0.00019511016, %v4526_v51  ;;  %v4614_v59 = vsel %vm4613_vm11, 1, %v11037_v23 }
 0x16f   :  { %v4636_v63 = vsel %vm4635_vm12, 1, %v11037_v23  ;;  %v4616_v36 = vadd.s32 %v4614_v59, %v4608_v44  ;;  %vm4617_vm13 = vc.u32 %v4615_v7, %v4611_v45  ;;  %v2640_v34 = vand.u32 4294901760, %v8650_v22 }
 0x170   :  { %v4638_v56 = vadd.s32 %v4636_v63, %v4630_v54  ;;  %vm4639_vm14 = vc.u32 %v4637_v61, %v4633_v26  ;;  %v4528_v14 = vadd.f32 0.041655596, %v4527_v58  ;;  %v4535_v18 = vadd.f32 0.008332121, %v4534_v46  ;;  %v150_v54 = vld [vmem:[#allocation5 + $0x2d8] sm:$0xff] }
 0x171   :  { %v4618_v32 = vsel %vm4617_vm13, 1, %v11037_v23  ;;  %v4640_v19 = vsel %vm4639_vm14, 1, %v11037_v23  ;;  %v8777_v50 = vadd.s32 %v4637_v61, %v4633_v26  ;;  %v8780_v44 = vand.u32 4294901760, %v166_v10  ;;  %2759 = vmatpush.msra.mxu0 %v2640_v34 }
 0x172   :  { %v4620_v28 = vadd.s32 %v4618_v32, %v4616_v36  ;;  %v4642_v24 = vadd.s32 %v4640_v19, %v4638_v56  ;;  %v4529_v42 = vmul.f32 %v4528_v14, %v4526_v51  ;;  %v4536_v21 = vmul.f32 %v4535_v18, %v4526_v51  ;;  %v1344_v32 = vpop.f32.mrf.mxu0 }
 0x173   :  { %v2841_v11 = vand.u32 4294901760, %v8754_v53  ;;  %v2641_v45 = vsub.f32 %v8650_v22, %v2640_v34  ;;  %v1269_v7 = vadd.f32 %v1268_v17, %v8714_v37  ;;  %2809 = vmatpush.msra.mxu2 %v8780_v44  ;;  %v2646_v46 = vand.u32 4294901760, %v8678_v0  ;;  %v1299_v37 = vpop.f32.mrf.mxu3 }
 0x174   :  { %v4621_v47 = vadd.s32 %v4620_v28, %v4610_v41  ;;  %v4643_v48 = vadd.s32 %v4642_v24, %v4632_v57  ;;  %v4530_v26 = vadd.f32 -0.4999988, %v4529_v42  ;;  %v4537_v61 = vadd.f32 -0.16666654, %v4536_v21  ;;  %v118_v24 = vld [vmem:[#allocation5 + $0x1d8] sm:$0xff]  ;;  %v1373_v21 = vpop.f32.mrf.mxu1 }
 0x175   :  { %v2842_v58 = vsub.f32 %v8754_v53, %v2841_v11  ;;  %v2642_v41 = vand.u32 4294901760, %v2641_v45  ;;  %v8794_v22 = vand.u32 4294901760, %v150_v54  ;;  %vm8799_vm2 = vcmp.eq.s32.totalorder %v6564_v4, 1  ;;  %2763 = vmatpush.msra.mxu0 %v2646_v46 }
 0x176   :  { %v8792_v59 = vadd.s32 %v4621_v47, %v4612_v9  ;;  %v4644_v57 = vadd.s32 %v4643_v48, %v4634_v3  ;;  %v4531_v63 = vmul.f32 %v4530_v26, %v4526_v51  ;;  %v4538_v36 = vmul.f32 %v4537_v61, %v4526_v51  ;;  %v134_v9 = vld [vmem:[#allocation5 + $0x258] sm:$0xff]  ;;  %2765 = vmatmul.f32.vlgmr.msra.gmra.mxu0 %v6967_v62 }
 0x177   :  { %v2843_v14 = vand.u32 4294901760, %v2842_v58  ;;  %v2647_v18 = vsub.f32 %v8678_v0, %v2646_v46  ;;  %vm4541_vm3 = vweird.f32 %v8334_v52  ;;  %v4645_v3 = vmul.u32 %v8644_v20, %v8741_v33  ;;  %2643 = vmatpush.msrb.mxu1 %v2642_v41  ;;  %2811 = vmatpush.msra.mxu2 %v8794_v22  ;;  %v102_v61 = vld [vmem:[#allocation5 + $0x158] sm:$0xff] }
 0x178   :  { %vm4647_vm4 = vc.u32 %v8792_v59, %v8777_v50  ;;  %v4648_v51 = vadd.s32 1, %v4644_v57  ;;  %v8811_v4 = vsub.f32 %v166_v10, %v8780_v44  ;;  %v4532_v19 = vadd.f32 1.0, %v4531_v63  ;;  %2902 = vmatpush.msrb.mxu0 %v8754_v53 }
 0x179   :  { %v4539_v0 = vadd.f32 1.0, %v4538_v36  ;;  %2844 = vmatpush.msra.mxu3 %v2843_v14  ;;  %v2648_v17 = vand.u32 4294901760, %v2647_v18  ;;  %v1300_v28 = vadd.f32 %v1299_v37, %v1269_v7  ;;  %v8815_v34 = vand.u32 4294901760, %v134_v9  ;;  %v8844_v36 = vld [vmem:[#allocation7] ss:$4 sm:$0xff] }
 0x17a   :  { %v4649_v20 = vsel %vm4647_vm4, %v4648_v51, %v4644_v57  ;;  %v2847_v33 = vand.u32 4294901760, %v8811_v4  ;;  %v8818_v42 = vsub.f32 %v150_v54, %v8794_v22  ;;  %v4548_v47 = vxor.u32 2147483648, %v4532_v19  ;;  %2905 = vmatpush.msrb.mxu0 %v8811_v4 }
 0x17b   :  { %v4540_v10 = vmul.f32 %v4539_v0, %v8769_v8  ;;  %v4650_v48 = vadd.s32 %v4649_v20, %v4645_v3  ;;  %2649 = vmatpush.msrb.mxu1 %v2648_v17  ;;  %v1345_v45 = vadd.f32 %v1344_v32, %v1300_v28  ;;  %2813 = vmatpush.msra.mxu2 %v8815_v34  ;;  %v8829_v26 = vand.u32 4294901760, %v118_v24  ;;  %v8849_v3 = vld [vmem:[#allocation7 + $0x1] ss:$4 sm:$0xff] }
 0x17c   :  { %v2848_v7 = vsub.f32 %v8811_v4, %v2847_v33  ;;  %v2853_v54 = vand.u32 4294901760, %v8818_v42  ;;  %v8832_v8 = vsub.f32 %v134_v9, %v8815_v34  ;;  %2651 = vmatmul.f32.vlgmr.msrb.gmra.mxu1 %v6967_v62  ;;  %2908 = vmatpush.msrb.mxu0 %v8818_v42  ;;  %v3992_v14 = vperm.slane %v8844_v36, 4  ;;  %v86_v28 = vld [vmem:[#allocation5 + $0xd8] sm:$0xff] }
 0x17d   :  { %2778 = vmatpush.msra.mxu1 %v8537_v43  ;;  %v4545_v58 = vxor.u32 2147483648, %v4540_v10  ;;  %v4549_v46 = vsel %vm4547_vm15, %v4548_v47, %v4540_v10  ;;  %v4651_v57 = vadd.s32 536870912, %v4650_v48  ;;  %v1374_v43 = vadd.f32 %v1373_v21, %v1345_v45  ;;  %2815 = vmatpush.msra.mxu2 %v8829_v26 }
 0x17e   :  { %v2849_v41 = vand.u32 4294901760, %v2848_v7  ;;  %v2854_v37 = vsub.f32 %v8818_v42, %v2853_v54  ;;  %v2859_v63 = vand.u32 4294901760, %v8832_v8  ;;  %v8852_v51 = vand.u32 4294901760, %v102_v61  ;;  %2911 = vmatpush.msrb.mxu0 %v8832_v8 }
 0x17f   :  { %2780 = vmatpush.msra.mxu1 %v8540_v31  ;;  %v4546_v18 = vsel %vm4544_vm0, %v4532_v19, %v4545_v58  ;;  %v4652_v9 = vshrl.u32 %v4651_v57, 30  ;;  %v4046_v31 = vperm.slane %v8849_v3, 4  ;;  %v4024_v17 = vmul.f32 %v3992_v14, %v1374_v43  ;;  %v1467_v14 = vpop.f32.mrf.mxu3 }
 0x180   :  { %v4550_v32 = vsel %vm4543_vm1, %v4546_v18, %v4549_v46  ;;  %2850 = vmatpush.msra.mxu3 %v2849_v41  ;;  %v2855_v0 = vand.u32 4294901760, %v2854_v37  ;;  %v2860_v19 = vsub.f32 %v8832_v8, %v2859_v63  ;;  %2817 = vmatpush.msra.mxu2 %v8852_v51  ;;  %v8865_v15 = vsub.f32 %v118_v24, %v8829_v26  ;;  %v70_v37 = vld [vmem:[#allocation5 + $0x58] sm:$0xff] }
 0x181   :  { %2782 = vmatpush.msra.mxu1 %v8555_v6  ;;  %v4551_v20 = vsel %vm4541_vm3, nan, %v4550_v32  ;;  %v4653_v21 = vshll.u32 %v4652_v9, 30  ;;  %v4676_v10 = vsub.s32 4, %v4652_v9  ;;  %vm4554_vm5 = vcmp.lt.s32.totalorder %v8592_v35, 0 }
 0x182   :  { %v6596_v6 = vsel %vm8799_vm2, %v8334_v52, %v4551_v20  ;;  %2856 = vmatpush.msra.mxu3 %v2855_v0  ;;  %v2861_v47 = vand.u32 4294901760, %v2860_v19  ;;  %v8871_v45 = vadd.f32 %v4046_v31, %v4024_v17  ;;  %v2865_v58 = vand.u32 4294901760, %v8865_v15  ;;  %2914 = vmatpush.msrb.mxu0 %v8865_v15  ;;  %v1406_v17 = vpop.f32.mrf.mxu2 }
 0x183   :  { %2784 = vmatpush.msra.mxu1 %v8557_v1  ;;  %6612 = vst [vmem:[#allocation8 + $0x10] sm:$0xff] %v6596_v6  ;;  %v8874_v7 = vsub.s32 %v4650_v48, %v4653_v21  ;;  %v8877_v46 = vand.u32 4294901760, %v86_v28  ;;  %v8880_v24 = vsub.f32 %v102_v61, %v8852_v51  ;;  %v4677_v52 = vsel %vm4554_vm5, %v4676_v10, %v4652_v9  ;;  %v1505_v6 = vpop.f32.mrf.mxu0 }
 0x184   :  { %2862 = vmatpush.msra.mxu3 %v2861_v47  ;;  %v4706_v56 = vand.u32 2147483647, %v8871_v45  ;;  %v4709_v1 = vand.u32 2139095040, %v8871_v45  ;;  %v11056_v61 = vand.u32 2147483647, %v8592_v35  ;;  %v8909_v21 = vand.u32 4294901760, %v70_v37 }
 0x185   :  { %2786 = vmatpush.msra.mxu1 %v8587_v16  ;;  %vm4655_vm6 = vcmp.lt.s32.totalorder %v8874_v7, 0  ;;  %v4656_v48 = vsub.s32 0, %v8874_v7  ;;  %2819 = vmatpush.msra.mxu2 %v8877_v46  ;;  %v2866_v16 = vsub.f32 %v8865_v15, %v2865_v58  ;;  %v2871_v20 = vand.u32 4294901760, %v8880_v24 }
 0x186   :  { %2917 = vmatpush.msrb.mxu0 %v8880_v24  ;;  %vm8894_vm7 = vcmp.le.f32.partialorder %v11056_v61, 0.7853982  ;;  %v4710_v43 = vshrl.u32 %v4709_v1, 23  ;;  %v4713_v41 = vand.u32 8388607, %v4706_v56  ;;  %v1468_v10 = vadd.f32 %v1467_v14, %v1406_v17 }
 0x187   :  { %2788 = vmatpush.msra.mxu1 %v8616_v25  ;;  %v4657_v18 = vsel %vm4655_vm6, %v4656_v48, %v8874_v7  ;;  %v4679_v9 = vsel %vm8894_vm7, 0, %v4677_v52  ;;  %v2867_v19 = vand.u32 4294901760, %v2866_v16  ;;  %v8912_v25 = vsub.f32 %v86_v28, %v8877_v46  ;;  %2821 = vmatpush.msra.mxu2 %v8909_v21 }
 0x188   :  { %v4658_v31 = vclz %v4657_v18  ;;  %v6656_v32 = vadd.s32 4294967169, %v4710_v43  ;;  %v4714_v0 = vor.u32 8388608, %v4713_v41  ;;  %v4646_v47 = vadd.s32 %v8777_v50, %v8792_v59  ;;  %v8927_v50 = vld [vmem:[#allocation5 + $0x3e0] sm:$0xff]  ;;  %2827 = vmatmul.f32.vlgmr.msra.gmra.mxu2 %v7040_v60  ;;  %v1536_v18 = vpop.f32.mrf.mxu1 }
 0x189   :  { %2790 = vmatpush.msra.mxu1 %v8624_v27  ;;  %2868 = vmatpush.msra.mxu3 %v2867_v19  ;;  %v8917_v48 = vand.u32 3, %v4679_v9  ;;  %v2872_v61 = vsub.f32 %v8880_v24, %v2871_v20  ;;  %v2877_v28 = vand.u32 4294901760, %v8912_v25  ;;  %v1506_v59 = vadd.f32 %v1505_v6, %v1468_v10 }
 0x18a   :  { %v6654_v52 = vadd.s32 4294967294, %v4658_v31  ;;  %v4716_v1 = vadd.s32 1, %v6656_v32  ;;  %v8919_v27 = vshll.u32 %v4714_v0, 8  ;;  %2972 = vmatpush.msrb.mxu2 %v2841_v11  ;;  %2920 = vmatpush.msrb.mxu0 %v8912_v25  ;;  %vm4695_vm4 = vweird.f32 %v8592_v35 }
 0x18b   :  { %2792 = vmatpush.msra.mxu1 %v8666_v55  ;;  %v8932_v55 = vsub.f32 %v70_v37, %v8909_v21  ;;  %v2873_v16 = vand.u32 4294901760, %v2872_v61  ;;  %v2878_v14 = vsub.f32 %v8912_v25, %v2877_v28  ;;  %v8946_v37 = vand.u32 4294901760, %v8927_v50 }
 0x18c   :  { %2794 = vmatmul.f32.vlgmr.msra.gmra.mxu1 %v6967_v62  ;;  %vm6655_vm8 = vcmp.lt.s32.totalorder %v6654_v52, 0  ;;  %vm4717_vm9 = vcmp.gt.s32.totalorder %v4716_v1, 0  ;;  %2976 = vmatpush.msrb.mxu2 %v2847_v33  ;;  %v8950_v0 = vand.u32 65535, %v8919_v27  ;;  %v1537_v33 = vadd.f32 %v1536_v18, %v1506_v59 }
 0x18d   :  { %2939 = vmatpush.msrb.mxu1 %v8681_v5  ;;  %v4661_v43 = vsel %vm6655_vm8, 0, %v6654_v52  ;;  %v4718_v41 = vsel %vm4717_vm9, %v4716_v1, 0  ;;  %2874 = vmatpush.msra.mxu3 %v2873_v16  ;;  %v2879_v19 = vand.u32 4294901760, %v2878_v14  ;;  %v2883_v4 = vand.u32 4294901760, %v8932_v55 }
 0x18e   :  { %v4662_v53 = vsub.s32 32, %v4661_v43  ;;  %v4666_v11 = vsub.s32 4294967266, %v4661_v43  ;;  %v8940_v9 = vshrl.u32 %v4718_v41, 5  ;;  %v4663_v31 = vshll.u32 %v8874_v7, %v4661_v43  ;;  %2923 = vmatpush.msrb.mxu0 %v8932_v55  ;;  %2980 = vmatpush.msrb.mxu2 %v2853_v54 }
 0x18f   :  { %2941 = vmatpush.msrb.mxu1 %v8780_v44  ;;  %v4720_v32 = vand.u32 31, %v4718_v41  ;;  %2880 = vmatpush.msra.mxu3 %v2879_v19  ;;  %v4756_v25 = vshrl.u32 %v8919_v27, 16  ;;  %vm4698_vm2 = vcmp.eq.s32.totalorder %v8917_v48, 0  ;;  %vm4697_vm3 = vcmp.lt.s32.totalorder %v8917_v48, 2 }
 0x190   :  { %v4664_v17 = vshrl.u32 %v4646_v47, %v4662_v53  ;;  %v4667_v10 = vadd.s32 127, %v4666_v11  ;;  %3044 = vmatpush.msra.mxu0 %v8946_v37  ;;  %vm4738_vm10 = vcmp.lt.s32.totalorder %v8940_v9, 1  ;;  %2984 = vmatpush.msrb.mxu2 %v2859_v63  ;;  %vm4739_vm11 = vcmp.lt.s32.totalorder %v8940_v9, 2 }
 0x191   :  { %2943 = vmatpush.msrb.mxu1 %v8794_v22  ;;  %v4721_v6 = vsub.s32 32, %v4720_v32  ;;  %v4723_v7 = vshll.u32 %v11029_v30, %v4720_v32  ;;  %v4726_v52 = vshll.u32 %v11030_v2, %v4720_v32  ;;  %v4729_v1 = vshll.u32 %v11031_v49, %v4720_v32  ;;  %2926 = vmatmul.f32.vlgmr.msrb.gmra.mxu0 %v6988_v13 }
 0x192   :  { %v4665_v47 = vor.u32 %v4664_v17, %v4663_v31  ;;  %v4668_v61 = vshll.u32 %v4667_v10, 23  ;;  %v4732_v43 = vshll.u32 %v11032_v39, %v4720_v32  ;;  %2988 = vmatpush.msrb.mxu2 %v2865_v58  ;;  %v4735_v11 = vshll.u32 %v11046_v12, %v4720_v32  ;;  %v1581_v10 = vpop.f32.mrf.mxu2 }
 0x193   :  { %2945 = vmatpush.msrb.mxu1 %v8815_v34  ;;  %v4722_v42 = vshrl.u32 %v11029_v30, %v4721_v6  ;;  %v4724_v54 = vshrl.u32 %v11030_v2, %v4721_v6  ;;  %v4727_v59 = vshrl.u32 %v11031_v49, %v4721_v6  ;;  %v4730_v41 = vshrl.u32 %v11032_v39, %v4721_v6 }
 0x194   :  { %v4669_v16 = vor.u32 4788187, %v4668_v61  ;;  %v4672_v14 = vcvt.s32.f32 %v4665_v47  ;;  %v4733_v18 = vshrl.u32 %v11046_v12, %v4721_v6  ;;  %v4736_v17 = vshrl.u32 %v11036_v29, %v4721_v6  ;;  %2992 = vmatpush.msrb.mxu2 %v2871_v20 }
 0x195   :  { %2947 = vmatpush.msrb.mxu1 %v8829_v26  ;;  %v4725_v8 = vor.u32 %v4724_v54, %v4723_v7  ;;  %v4728_v63 = vor.u32 %v4727_v59, %v4726_v52  ;;  %v4731_v53 = vor.u32 %v4730_v41, %v4729_v1  ;;  %vm4740_vm12 = vcmp.lt.s32.totalorder %v8940_v9, 3 }
 0x196   :  { %v4670_v31 = vand.u32 2147483647, %v4669_v16  ;;  %v4734_v19 = vor.u32 %v4733_v18, %v4732_v43  ;;  %vm4741_vm13 = vcmp.lt.s32.totalorder %v8940_v9, 4  ;;  %v4737_v7 = vor.u32 %v4736_v17, %v4735_v11  ;;  %2996 = vmatpush.msrb.mxu2 %v2877_v28  ;;  %v1610_v28 = vpop.f32.mrf.mxu3 }
 0x197   :  { %2949 = vmatpush.msrb.mxu1 %v8852_v51  ;;  %v4742_v15 = vsel %vm4738_vm10, %v4722_v42, %v4725_v8  ;;  %v4746_v58 = vsel %vm4738_vm10, %v4725_v8, %v4728_v63  ;;  %v4750_v32 = vsel %vm4738_vm10, %v4728_v63, %v4731_v53  ;;  %v4743_v24 = vsel %vm4741_vm13, %v4731_v53, 2102212464 }
 0x198   :  { %v4673_v6 = vmul.f32 %v4672_v14, %v4670_v31  ;;  %v4747_v20 = vsel %vm4741_vm13, %v4734_v19, 920167782  ;;  %v4744_v52 = vsel %vm4740_vm12, %v4728_v63, %v4743_v24  ;;  %v2884_v47 = vsub.f32 %v8932_v55, %v2883_v4  ;;  %3000 = vmatpush.msrb.mxu2 %v2883_v4 }
 0x199   :  { %2951 = vmatpush.msrb.mxu1 %v8877_v46  ;;  %v4748_v1 = vsel %vm4740_vm12, %v4731_v53, %v4747_v20  ;;  %v1582_v61 = vadd.f32 %v1581_v10, %v1537_v33  ;;  %v4751_v54 = vsel %vm4741_vm13, %v4737_v7, 1326507024  ;;  %v6565_v59 = vperm.slane %v8347_v40, 3  ;;  %3002 = vmatmul.f32.vlgmr.msrb.gmra.mxu2 %v6967_v62 }
 0x19a   :  { %v4674_v43 = vxor.u32 2147483648, %v4673_v6  ;;  %v4749_v42 = vsel %vm4739_vm11, %v4746_v58, %v4748_v1  ;;  %v4752_v41 = vsel %vm4740_vm12, %v4734_v19, %v4751_v54  ;;  %v9016_v14 = vsel %vm4739_vm11, %v4742_v15, %v4744_v52 }
 0x19b   :  { %2953 = vmatpush.msrb.mxu1 %v8909_v21  ;;  %v4779_v55 = vand.u32 65535, %v4749_v42  ;;  %v4780_v33 = vshrl.u32 %v4749_v42, 16  ;;  %v4753_v4 = vsel %vm4739_vm11, %v4750_v32, %v4752_v41  ;;  %v2885_v18 = vand.u32 4294901760, %v2884_v47 }
 0x19c   :  { %2957 = vmatmul.f32.vlgmr.msrb.gmra.mxu1 %v7003_v38  ;;  %v4675_v16 = vsel %vm4554_vm5, %v4674_v43, %v4673_v6  ;;  %v4757_v63 = vand.u32 65535, %v4753_v4  ;;  %v4758_v53 = vshrl.u32 %v4753_v4, 16  ;;  %v1611_v11 = vadd.f32 %v1610_v28, %v1582_v61 }
 0x19d   :  { %v9023_v8 = vsel %vm8894_vm7, %v8592_v35, %v4675_v16  ;;  %v4781_v19 = vmul.u32 %v4779_v55, %v8950_v0  ;;  %v4782_v17 = vmul.u32 %v4780_v33, %v8950_v0  ;;  %v9029_v10 = vmul.u32 %v4779_v55, %v4756_v25  ;;  %2886 = vmatpush.msra.mxu3 %v2885_v18  ;;  %v167_v16 = vld [vmem:[#allocation5 + $0x360] sm:$0xff] }
 0x19e   :  { %v4680_v31 = vmul.f32 %v9023_v8, %v9023_v8  ;;  %v4759_v9 = vmul.u32 %v4757_v63, %v8950_v0  ;;  %v4760_v15 = vmul.u32 %v4758_v53, %v8950_v0  ;;  %v4761_v57 = vmul.u32 %v4757_v63, %v4756_v25  ;;  %2888 = vmatmul.f32.vlgmr.msra.gmra.mxu3 %v6967_v62 }
 0x19f   :  { %v4784_v58 = vmul.u32 %v4780_v33, %v4756_v25  ;;  %3015 = vmatpush.msrb.mxu3 %v8681_v5  ;;  %v4762_v7 = vmul.u32 %v4758_v53, %v4756_v25  ;;  %v4785_v24 = vshll.u32 %v4782_v17, 16  ;;  %v4786_v47 = vshrl.u32 %v4782_v17, 16 }
 0x1a0   :  { %v4681_v32 = vmul.f32 -0.001358992, %v4680_v31  ;;  %v4688_v6 = vmul.f32 -0.00019511016, %v4680_v31  ;;  %v4763_v20 = vshll.u32 %v4760_v15, 16  ;;  %v4764_v52 = vshrl.u32 %v4760_v15, 16 }
 0x1a1   :  { %v4765_v1 = vshll.u32 %v4761_v57, 16  ;;  %3017 = vmatpush.msrb.mxu3 %v8780_v44  ;;  %v4766_v42 = vshrl.u32 %v4761_v57, 16  ;;  %v4787_v0 = vshll.u32 %v9029_v10, 16  ;;  %vm4789_vm15 = vc.u32 %v4781_v19, %v4785_v24 }
 0x1a2   :  { %v4682_v61 = vadd.f32 0.041655596, %v4681_v32  ;;  %v4689_v43 = vadd.f32 0.008332121, %v4688_v6  ;;  %vm4767_vm14 = vc.u32 %v4759_v9, %v4763_v20  ;;  %v4769_v54 = vadd.s32 %v4763_v20, %v4759_v9  ;;  %v151_v32 = vld [vmem:[#allocation5 + $0x2e0] sm:$0xff] }
 0x1a3   :  { %v4791_v5 = vadd.s32 %v4785_v24, %v4781_v19  ;;  %3019 = vmatpush.msrb.mxu3 %v8794_v22  ;;  %v4768_v41 = vsel %vm4767_vm14, 1, %v11037_v23  ;;  %v4790_v55 = vsel %vm4789_vm15, 1, %v11037_v23  ;;  %v4788_v19 = vshrl.u32 %v9029_v10, 16 }
 0x1a4   :  { %v4683_v25 = vmul.f32 %v4682_v61, %v4680_v31  ;;  %v4690_v28 = vmul.f32 %v4689_v43, %v4680_v31  ;;  %v4770_v33 = vadd.s32 %v4768_v41, %v4762_v7  ;;  %vm4771_vm0 = vc.u32 %v4769_v54, %v4765_v1 }
 0x1a5   :  { %v4792_v44 = vadd.s32 %v4790_v55, %v4784_v58  ;;  %vm4793_vm1 = vc.u32 %v4791_v5, %v4787_v0  ;;  %3021 = vmatpush.msrb.mxu3 %v8815_v34  ;;  %v4772_v63 = vsel %vm4771_vm0, 1, %v11037_v23  ;;  %v3993_v9 = vperm.slane %v8844_v36, 5 }
 0x1a6   :  { %v4684_v4 = vadd.f32 -0.4999988, %v4683_v25  ;;  %v4691_v18 = vadd.f32 -0.16666654, %v4690_v28  ;;  %v4794_v53 = vsel %vm4793_vm1, 1, %v11037_v23  ;;  %v4774_v22 = vadd.s32 %v4772_v63, %v4770_v33  ;;  %v103_v63 = vld [vmem:[#allocation5 + $0x160] sm:$0xff] }
 0x1a7   :  { %v4796_v17 = vadd.s32 %v4794_v53, %v4792_v44  ;;  %3023 = vmatpush.msrb.mxu3 %v8829_v26  ;;  %v4047_v34 = vperm.slane %v8849_v3, 5  ;;  %v9051_v58 = vsub.f32 %v8927_v50, %v8946_v37  ;;  %v4025_v26 = vmul.f32 %v3993_v9, %v1611_v11  ;;  %v135_v50 = vld [vmem:[#allocation5 + $0x260] sm:$0xff] }
 0x1a8   :  { %v4685_v15 = vmul.f32 %v4684_v4, %v4680_v31  ;;  %v4692_v57 = vmul.f32 %v4691_v18, %v4680_v31  ;;  %v4775_v6 = vadd.s32 %v4774_v22, %v4764_v52  ;;  %v9055_v7 = vand.u32 4294901760, %v167_v16  ;;  %v119_v44 = vld [vmem:[#allocation5 + $0x1e0] sm:$0xff] }
 0x1a9   :  { %v4797_v10 = vadd.s32 %v4796_v17, %v4786_v47  ;;  %3025 = vmatpush.msrb.mxu3 %v8852_v51  ;;  %v9057_v24 = vadd.s32 %v4791_v5, %v4787_v0  ;;  %3139 = vmatpush.msra.mxu2 %v9051_v58  ;;  %v3078_v3 = vand.u32 4294901760, %v9051_v58  ;;  %v9063_v61 = vadd.f32 %v4047_v34, %v4025_v26 }
 0x1aa   :  { %v4686_v36 = vadd.f32 1.0, %v4685_v15  ;;  %v4693_v31 = vadd.f32 1.0, %v4692_v57  ;;  %v9061_v20 = vadd.s32 %v4775_v6, %v4766_v42  ;;  %3046 = vmatpush.msra.mxu0 %v9055_v7  ;;  %v9067_v51 = vand.u32 4294901760, %v151_v32 }
 0x1ab   :  { %v4798_v1 = vadd.s32 %v4797_v10, %v4788_v19  ;;  %3027 = vmatpush.msrb.mxu3 %v8877_v46  ;;  %v9071_v47 = vsub.f32 %v167_v16, %v9055_v7  ;;  %v3079_v43 = vsub.f32 %v9051_v58, %v3078_v3  ;;  %v11004_v46 = vand.u32 2147483647, %v9063_v61  ;;  %v1742_v58 = vpop.f32.mrf.mxu2 }
 0x1ac   :  { %v4694_v11 = vmul.f32 %v4693_v31, %v9023_v8  ;;  %v4702_v52 = vxor.u32 2147483648, %v4686_v36  ;;  %vm4801_vm5 = vc.u32 %v9061_v20, %v9057_v24  ;;  %3048 = vmatpush.msra.mxu0 %v9067_v51  ;;  %v9081_v0 = vand.u32 4294901760, %v135_v50 }
 0x1ad   :  { %v4802_v42 = vadd.s32 1, %v4798_v1  ;;  %3029 = vmatpush.msrb.mxu3 %v8909_v21  ;;  %vm4701_vm6 = vcmp.eq.s32.totalorder %v8917_v48, 2  ;;  %v4799_v54 = vmul.u32 %v8919_v27, %v9016_v14  ;;  %v4863_v5 = vand.u32 2139095040, %v9063_v61  ;;  %3142 = vmatpush.msra.mxu2 %v9071_v47 }
 0x1ae   :  { %v4699_v8 = vxor.u32 2147483648, %v4694_v11  ;;  %3031 = vmatmul.f32.vlgmr.msrb.gmra.mxu3 %v6967_v62  ;;  %v4703_v25 = vsel %vm4701_vm6, %v4702_v52, %v4694_v11  ;;  %vm9091_vm7 = vcmp.eq.s32.totalorder %v6565_v59, 1  ;;  %v4867_v41 = vand.u32 8388607, %v11004_v46  ;;  %3050 = vmatpush.msra.mxu0 %v9081_v0 }
 0x1af   :  { %v4803_v28 = vsel %vm4801_vm5, %v4802_v42, %v4798_v1  ;;  %3176 = vmatpush.msra.mxu3 %v8946_v37  ;;  %v4864_v55 = vshrl.u32 %v4863_v5, 23  ;;  %v3080_v33 = vand.u32 4294901760, %v3079_v43  ;;  %v9104_v4 = vsub.f32 %v151_v32, %v9067_v51 }
 0x1b0   :  { %v4700_v27 = vsel %vm4698_vm2, %v4686_v36, %v4699_v8  ;;  %v4804_v14 = vadd.s32 %v4803_v28, %v4799_v54  ;;  %v4868_v16 = vor.u32 8388608, %v4867_v41  ;;  %v3084_v18 = vand.u32 4294901760, %v9071_v47  ;;  %v9133_v36 = vld [vmem:[#allocation5 + $0xe0] sm:$0xff] }
 0x1b1   :  { %v4704_v59 = vsel %vm4697_vm3, %v4700_v27, %v4703_v25  ;;  %3178 = vmatpush.msra.mxu3 %v9055_v7  ;;  %v6659_v19 = vadd.s32 4294967169, %v4864_v55  ;;  %3081 = vmatpush.msra.mxu1 %v3080_v33  ;;  %v9118_v9 = vsub.f32 %v135_v50, %v9081_v0  ;;  %v9121_v15 = vand.u32 4294901760, %v119_v44 }
 0x1b2   :  { %v4705_v53 = vsel %vm4695_vm4, nan, %v4704_v59  ;;  %v4805_v22 = vadd.s32 536870912, %v4804_v14  ;;  %3145 = vmatpush.msra.mxu2 %v9104_v4  ;;  %v3085_v17 = vsub.f32 %v9071_v47, %v3084_v18  ;;  %v11006_v32 = vand.u32 4294901760, %v9104_v4 }
 0x1b3   :  { %v6597_v48 = vsel %vm9091_vm7, %v8592_v35, %v4705_v53  ;;  %3180 = vmatpush.msra.mxu3 %v9067_v51  ;;  %v4870_v34 = vadd.s32 1, %v6659_v19  ;;  %v9124_v6 = vand.u32 4294901760, %v103_v63  ;;  %v9126_v35 = vshll.u32 %v4868_v16, 8  ;;  %3052 = vmatpush.msra.mxu0 %v9121_v15 }
 0x1b4   :  { %6613 = vst [vmem:[#allocation8 + $0x18] sm:$0xff] %v6597_v48  ;;  %v4806_v57 = vshrl.u32 %v4805_v22, 30  ;;  %v3086_v10 = vand.u32 4294901760, %v3085_v17  ;;  %3148 = vmatpush.msra.mxu2 %v9118_v9  ;;  %v9131_v26 = vsub.f32 %v119_v44, %v9121_v15  ;;  %v3091_v1 = vsub.f32 %v9104_v4, %v11006_v32 }
 0x1b5   :  { %vm4871_vm8 = vcmp.gt.s32.totalorder %v4870_v34, 0  ;;  %3182 = vmatpush.msra.mxu3 %v9081_v0  ;;  %vm4708_vm9 = vcmp.lt.s32.totalorder %v8871_v45, 0  ;;  %v11005_v52 = vand.u32 4294901760, %v9118_v9  ;;  %v9143_v43 = vsub.f32 %v103_v63, %v9124_v6  ;;  %3054 = vmatpush.msra.mxu0 %v9124_v6 }
 0x1b6   :  { %v4807_v31 = vshll.u32 %v4806_v57, 30  ;;  %v4830_v50 = vsub.s32 4, %v4806_v57  ;;  %v4872_v11 = vsel %vm4871_vm8, %v4870_v34, 0  ;;  %3087 = vmatpush.msra.mxu1 %v3086_v10  ;;  %3151 = vmatpush.msra.mxu2 %v9131_v26  ;;  %v9154_v5 = vand.u32 4294901760, %v9133_v36 }
 0x1b7   :  { %v4874_v54 = vand.u32 31, %v4872_v11  ;;  %3184 = vmatpush.msra.mxu3 %v9121_v15  ;;  %vm9158_vm10 = vcmp.le.f32.partialorder %v4706_v56, 0.7853982  ;;  %v4800_v21 = vadd.s32 %v9057_v24, %v9061_v20  ;;  %v9165_v28 = vand.u32 65535, %v9126_v35 }
 0x1b8   :  { %v9145_v42 = vsub.s32 %v4804_v14, %v4807_v31  ;;  %v9149_v8 = vsel %vm4708_vm9, %v4830_v50, %v4806_v57  ;;  %v3092_v41 = vand.u32 4294901760, %v3091_v1  ;;  %3154 = vmatpush.msra.mxu2 %v9143_v43  ;;  %v9171_v55 = vshrl.u32 %v9126_v35, 16  ;;  %3056 = vmatpush.msra.mxu0 %v9154_v5 }
 0x1b9   :  { %v4875_v14 = vsub.s32 32, %v4874_v54  ;;  %3186 = vmatpush.msra.mxu3 %v9124_v6  ;;  %v4833_v56 = vsel %vm9158_vm10, 0, %v9149_v8  ;;  %v4873_v24 = vshrl.u32 %v4872_v11, 5  ;;  %v4877_v20 = vshll.u32 %v11029_v30, %v4874_v54 }
 0x1ba   :  { %vm4809_vm11 = vcmp.lt.s32.totalorder %v9145_v42, 0  ;;  %v4810_v27 = vsub.s32 0, %v9145_v42  ;;  %v4880_v33 = vshll.u32 %v11030_v2, %v4874_v54  ;;  %3093 = vmatpush.msra.mxu1 %v3092_v41  ;;  %v4883_v59 = vshll.u32 %v11031_v49, %v4874_v54 }
 0x1bb   :  { %v4886_v16 = vshll.u32 %v11032_v39, %v4874_v54  ;;  %v9186_v63 = vsub.f32 %v9118_v9, %v11005_v52  ;;  %3188 = vmatpush.msra.mxu3 %v9154_v5  ;;  %v4876_v22 = vshrl.u32 %v11029_v30, %v4875_v14  ;;  %v4878_v19 = vshrl.u32 %v11030_v2, %v4875_v14 }
 0x1bc   :  { %v4811_v44 = vsel %vm4809_vm11, %v4810_v27, %v9145_v42  ;;  %v4881_v48 = vshrl.u32 %v11031_v49, %v4875_v14  ;;  %v4884_v17 = vshrl.u32 %v11032_v39, %v4875_v14  ;;  %v4887_v57 = vshrl.u32 %v11046_v12, %v4875_v14 }
 0x1bd   :  { %v4812_v53 = vclz %v4811_v44  ;;  %v4889_v34 = vshll.u32 %v11046_v12, %v4874_v54  ;;  %v4890_v10 = vshrl.u32 %v11036_v29, %v4875_v14  ;;  %v4879_v50 = vor.u32 %v4878_v19, %v4877_v20 }
 0x1be   :  { %v4882_v1 = vor.u32 %v4881_v48, %v4880_v33  ;;  %vm4892_vm12 = vcmp.lt.s32.totalorder %v4873_v24, 1  ;;  %v4885_v11 = vor.u32 %v4884_v17, %v4883_v59  ;;  %v4888_v8 = vor.u32 %v4887_v57, %v4886_v16 }
 0x1bf   :  { %v6657_v31 = vadd.s32 4294967294, %v4812_v53  ;;  %v4891_v41 = vor.u32 %v4890_v10, %v4889_v34  ;;  %vm4893_vm13 = vcmp.lt.s32.totalorder %v4873_v24, 2  ;;  %vm4894_vm15 = vcmp.lt.s32.totalorder %v4873_v24, 3 }
 0x1c0   :  { %vm4895_vm0 = vcmp.lt.s32.totalorder %v4873_v24, 4  ;;  %v4896_v27 = vsel %vm4892_vm12, %v4876_v22, %v4879_v50  ;;  %v4900_v52 = vsel %vm4892_vm12, %v4879_v50, %v4882_v1  ;;  %v4904_v53 = vsel %vm4892_vm12, %v4882_v1, %v4885_v11 }
 0x1c1   :  { %vm6658_vm14 = vcmp.lt.s32.totalorder %v6657_v31, 0  ;;  %v4897_v46 = vsel %vm4895_vm0, %v4885_v11, 2102212464  ;;  %v4901_v54 = vsel %vm4895_vm0, %v4888_v8, 920167782  ;;  %vm4849_vm11 = vweird.f32 %v8871_v45 }
 0x1c2   :  { %v4815_v44 = vsel %vm6658_vm14, 0, %v6657_v31  ;;  %v4898_v33 = vsel %vm4894_vm15, %v4882_v1, %v4897_v46  ;;  %v4902_v16 = vsel %vm4894_vm15, %v4885_v11, %v4901_v54  ;;  %v4905_v19 = vsel %vm4895_vm0, %v4891_v41, 1326507024 }
 0x1c3   :  { %v4816_v32 = vsub.s32 32, %v4815_v44  ;;  %v4817_v14 = vshll.u32 %v9145_v42, %v4815_v44  ;;  %v4820_v20 = vsub.s32 4294967266, %v4815_v44  ;;  %v9201_v59 = vsel %vm4893_vm13, %v4896_v27, %v4898_v33 }
 0x1c4   :  { %v4903_v17 = vsel %vm4893_vm13, %v4900_v52, %v4902_v16  ;;  %v4906_v57 = vsel %vm4894_vm15, %v4888_v8, %v4905_v19  ;;  %v3102_v46 = vand.u32 4294901760, %v9131_v26  ;;  %v9209_v27 = vand.u32 3, %v4833_v56 }
 0x1c5   :  { %v4818_v22 = vshrl.u32 %v4800_v21, %v4816_v32  ;;  %v4821_v48 = vadd.s32 127, %v4820_v20  ;;  %v4907_v34 = vsel %vm4893_vm13, %v4904_v53, %v4906_v57  ;;  %v4933_v42 = vand.u32 65535, %v4903_v17 }
 0x1c6   :  { %v4934_v10 = vshrl.u32 %v4903_v17, 16  ;;  %v4911_v44 = vand.u32 65535, %v4907_v34  ;;  %v4912_v54 = vshrl.u32 %v4907_v34, 16  ;;  %v4953_v52 = vmul.u32 %v9126_v35, %v9201_v59 }
 0x1c7   :  { %v4819_v31 = vor.u32 %v4818_v22, %v4817_v14  ;;  %v4822_v50 = vshll.u32 %v4821_v48, 23  ;;  %v4937_v32 = vmul.u32 %v4933_v42, %v9171_v55  ;;  %v4935_v8 = vmul.u32 %v4933_v42, %v9165_v28 }
 0x1c8   :  { %v4936_v1 = vmul.u32 %v4934_v10, %v9165_v28  ;;  %v4913_v11 = vmul.u32 %v4911_v44, %v9165_v28  ;;  %v4914_v41 = vmul.u32 %v4912_v54, %v9165_v28  ;;  %v4915_v56 = vmul.u32 %v4911_v44, %v9171_v55 }
 0x1c9   :  { %v4823_v21 = vor.u32 4788187, %v4822_v50  ;;  %v4826_v24 = vcvt.s32.f32 %v4819_v31  ;;  %v4916_v14 = vmul.u32 %v4912_v54, %v9171_v55  ;;  %v4938_v20 = vmul.u32 %v4934_v10, %v9171_v55 }
 0x1ca   :  { %v4939_v16 = vshll.u32 %v4936_v1, 16  ;;  %v4940_v53 = vshrl.u32 %v4936_v1, 16  ;;  %v4941_v19 = vshll.u32 %v4937_v32, 16  ;;  %v4917_v22 = vshll.u32 %v4914_v41, 16  ;;  %v71_v1 = vld [vmem:[#allocation5 + $0x60] sm:$0xff] }
 0x1cb   :  { %v4824_v33 = vand.u32 2147483647, %v4823_v21  ;;  %v4918_v48 = vshrl.u32 %v4914_v41, 16  ;;  %v4919_v17 = vshll.u32 %v4915_v56, 16  ;;  %v4920_v57 = vshrl.u32 %v4915_v56, 16  ;;  %v1643_v56 = vpop.f32.mrf.mxu0 }
 0x1cc   :  { %v4942_v31 = vshrl.u32 %v4937_v32, 16  ;;  %vm4943_vm1 = vc.u32 %v4935_v8, %v4939_v16  ;;  %v4945_v42 = vadd.s32 %v4939_v16, %v4935_v8  ;;  %vm4921_vm2 = vc.u32 %v4913_v11, %v4917_v22 }
 0x1cd   :  { %v4827_v34 = vmul.f32 %v4826_v24, %v4824_v33  ;;  %v4923_v28 = vadd.s32 %v4917_v22, %v4913_v11  ;;  %v4944_v50 = vsel %vm4943_vm1, 1, %v11037_v23  ;;  %v3098_v44 = vand.u32 4294901760, %v9186_v63  ;;  %v1704_v33 = vpop.f32.mrf.mxu1 }
 0x1ce   :  { %v4922_v55 = vsel %vm4921_vm2, 1, %v11037_v23  ;;  %v4946_v10 = vadd.s32 %v4944_v50, %v4938_v20  ;;  %vm4947_vm3 = vc.u32 %v4945_v42, %v4941_v19  ;;  %v9225_v24 = vadd.s32 %v4945_v42, %v4941_v19  ;;  %v184_v20 = vld [vmem:[#allocation5 + $0x3e8] sm:$0xff] }
 0x1cf   :  { %v4828_v54 = vxor.u32 2147483648, %v4827_v34  ;;  %v4924_v21 = vadd.s32 %v4922_v55, %v4916_v14  ;;  %vm4925_vm4 = vc.u32 %v4923_v28, %v4919_v17  ;;  %v4948_v41 = vsel %vm4947_vm3, 1, %v11037_v23  ;;  %3099 = vmatpush.msra.mxu1 %v3098_v44  ;;  %v168_v50 = vld [vmem:[#allocation5 + $0x368] sm:$0xff] }
 0x1d0   :  { %v4926_v11 = vsel %vm4925_vm4, 1, %v11037_v23  ;;  %v4950_v8 = vadd.s32 %v4948_v41, %v4946_v10  ;;  %v3103_v63 = vsub.f32 %v9131_v26, %v3102_v46  ;;  %v9240_v19 = vsub.f32 %v9133_v36, %v9154_v5 }
 0x1d1   :  { %v4829_v32 = vsel %vm4708_vm9, %v4828_v54, %v4827_v34  ;;  %v4928_v16 = vadd.s32 %v4926_v11, %v4924_v21  ;;  %v9242_v22 = vand.u32 4294901760, %v71_v1  ;;  %v3108_v28 = vand.u32 4294901760, %v9143_v43 }
 0x1d2   :  { %v9236_v14 = vsel %vm9158_vm10, %v8871_v45, %v4829_v32  ;;  %v4951_v34 = vadd.s32 %v4950_v8, %v4940_v53  ;;  %v3104_v42 = vand.u32 4294901760, %v3103_v63  ;;  %3157 = vmatpush.msra.mxu2 %v9240_v19  ;;  %v9254_v36 = vand.u32 4294901760, %v184_v20 }
 0x1d3   :  { %v9246_v17 = vmul.f32 %v9236_v14, %v9236_v14  ;;  %v4929_v44 = vadd.s32 %v4928_v16, %v4918_v48  ;;  %3058 = vmatpush.msra.mxu0 %v9242_v22  ;;  %v9252_v25 = vsub.f32 %v71_v1, %v9242_v22  ;;  %v1705_v54 = vadd.f32 %v1704_v33, %v1643_v56  ;;  %v1818_v59 = vpop.f32.mrf.mxu0 }
 0x1d4   :  { %v4952_v53 = vadd.s32 %v4951_v34, %v4942_v31  ;;  %3105 = vmatpush.msra.mxu1 %v3104_v42  ;;  %v3109_v48 = vsub.f32 %v9143_v43, %v3108_v28  ;;  %v9267_v1 = vsub.f32 %v184_v20, %v9254_v36  ;;  %v3114_v41 = vand.u32 4294901760, %v9240_v19  ;;  %3190 = vmatpush.msra.mxu3 %v9242_v22  ;;  %v152_v20 = vld [vmem:[#allocation5 + $0x2e8] sm:$0xff]  ;;  %v1773_v34 = vpop.f32.mrf.mxu3 }
 0x1d5   :  { %v4835_v55 = vmul.f32 -0.001358992, %v9246_v17  ;;  %v4842_v10 = vmul.f32 -0.00019511016, %v9246_v17  ;;  %3209 = vmatpush.msrb.mxu0 %v3078_v3  ;;  %v9263_v21 = vadd.s32 %v4929_v44, %v4920_v57  ;;  %3160 = vmatpush.msra.mxu2 %v9252_v25  ;;  %v9271_v31 = vand.u32 4294901760, %v168_v50 }
 0x1d6   :  { %v4956_v8 = vadd.s32 1, %v4952_v53  ;;  %v3110_v63 = vand.u32 4294901760, %v3109_v48  ;;  %v6566_v3 = vperm.slane %v8347_v40, 4  ;;  %v3115_v57 = vsub.f32 %v9240_v19, %v3114_v41  ;;  %3163 = vmatmul.f32.vlgmr.msra.gmra.mxu2 %v6988_v13  ;;  %3064 = vmatmul.f32.vlgmr.msra.gmra.mxu0 %v7040_v60 }
 0x1d7   :  { %v4836_v32 = vadd.f32 0.041655596, %v4835_v55  ;;  %v4843_v11 = vadd.f32 0.008332121, %v4842_v10  ;;  %3281 = vmatpush.msrb.mxu2 %v9254_v36  ;;  %3213 = vmatpush.msrb.mxu0 %v3084_v18  ;;  %vm4955_vm5 = vc.u32 %v9263_v21, %v9225_v24  ;;  %v3315_v56 = vand.u32 4294901760, %v9267_v1 }
 0x1d8   :  { %v4957_v33 = vsel %vm4955_vm5, %v4956_v8, %v4952_v53  ;;  %3111 = vmatpush.msra.mxu1 %v3110_v63  ;;  %v3120_v16 = vand.u32 4294901760, %v9252_v25  ;;  %v3116_v44 = vand.u32 4294901760, %v3115_v57  ;;  %v1743_v10 = vadd.f32 %v1742_v58, %v1705_v54  ;;  %v136_v53 = vld [vmem:[#allocation5 + $0x268] sm:$0xff]  ;;  %3194 = vmatmul.f32.vlgmr.msra.gmra.mxu3 %v7003_v38 }
 0x1d9   :  { %v4837_v47 = vmul.f32 %v4836_v32, %v9246_v17  ;;  %v4844_v18 = vmul.f32 %v4843_v11, %v9246_v17  ;;  %3283 = vmatpush.msrb.mxu2 %v9271_v31  ;;  %v4958_v42 = vadd.s32 %v4957_v33, %v4953_v52  ;;  %v3316_v55 = vsub.f32 %v9267_v1, %v3315_v56  ;;  %v9308_v57 = vld [vmem:[#allocation5 + $0x1e8] sm:$0xff] }
 0x1da   :  { %v11063_v48 = vand.u32 4294901760, %v9104_v4  ;;  %v3121_v8 = vsub.f32 %v9252_v25, %v3120_v16  ;;  %v9301_v35 = vand.u32 4294901760, %v152_v20  ;;  %3117 = vmatpush.msra.mxu1 %v3116_v44  ;;  %v9304_v54 = vsub.f32 %v168_v50, %v9271_v31 }
 0x1db   :  { %v4838_v32 = vadd.f32 -0.4999988, %v4837_v47  ;;  %v4845_v11 = vadd.f32 -0.16666654, %v4844_v18  ;;  %v4959_v52 = vadd.s32 536870912, %v4958_v42  ;;  %v3317_v63 = vand.u32 4294901760, %v3316_v55 }
 0x1dc   :  { %3217 = vmatpush.msrb.mxu0 %v11063_v48  ;;  %v1774_v4 = vadd.f32 %v1773_v34, %v1743_v10  ;;  %v11064_v58 = vand.u32 4294901760, %v9118_v9  ;;  %v3122_v33 = vand.u32 4294901760, %v3121_v8  ;;  %3285 = vmatpush.msrb.mxu2 %v9301_v35  ;;  %v9313_v48 = vand.u32 4294901760, %v136_v53 }
 0x1dd   :  { %v4839_v47 = vmul.f32 %v4838_v32, %v9246_v17  ;;  %v4846_v18 = vmul.f32 %v4845_v11, %v9246_v17  ;;  %v9315_v44 = vshrl.u32 %v4959_v52, 30  ;;  %3318 = vmatpush.msrb.mxu3 %v3317_v63  ;;  %v3321_v50 = vand.u32 4294901760, %v9304_v54  ;;  %v1847_v11 = vpop.f32.mrf.mxu1 }
 0x1de   :  { %3221 = vmatpush.msrb.mxu0 %v11064_v58  ;;  %v9319_v34 = vsub.f32 %v152_v20, %v9301_v35  ;;  %v1819_v9 = vadd.f32 %v1818_v59, %v1774_v4  ;;  %3123 = vmatpush.msra.mxu1 %v3122_v33  ;;  %v9325_v17 = vand.u32 4294901760, %v9308_v57  ;;  %v9328_v32 = vsub.f32 %v136_v53, %v9313_v48  ;;  %v9367_v58 = vld [vmem:[#allocation7] ss:$4 sm:$0xff] }
 0x1df   :  { %v4840_v55 = vadd.f32 1.0, %v4839_v47  ;;  %v4847_v10 = vadd.f32 1.0, %v4846_v18  ;;  %3287 = vmatpush.msrb.mxu2 %v9313_v48  ;;  %vm4851_vm6 = vcmp.lt.s32.totalorder %v9209_v27, 2  ;;  %v4961_v20 = vshll.u32 %v9315_v44, 30  ;;  %3125 = vmatmul.f32.vlgmr.msra.gmra.mxu1 %v6967_v62  ;;  %v9370_v18 = vld [vmem:[#allocation7 + $0x1] ss:$4 sm:$0xff] }
 0x1e0   :  { %3225 = vmatpush.msrb.mxu0 %v3102_v46  ;;  %3252 = vmatpush.msrb.mxu1 %v8946_v37  ;;  %v3322_v26 = vsub.f32 %v9304_v54, %v3321_v50  ;;  %v3327_v46 = vand.u32 4294901760, %v9319_v34  ;;  %vm4852_vm7 = vcmp.eq.s32.totalorder %v9209_v27, 0  ;;  %v3333_v59 = vand.u32 4294901760, %v9328_v32 }
 0x1e1   :  { %v4848_v8 = vmul.f32 %v4847_v10, %v9236_v14  ;;  %v4856_v53 = vxor.u32 2147483648, %v4840_v55  ;;  %3289 = vmatpush.msrb.mxu2 %v9325_v17  ;;  %vm4855_vm8 = vcmp.eq.s32.totalorder %v9209_v27, 2  ;;  %v9345_v37 = vsub.s32 %v4958_v42, %v4961_v20  ;;  %v88_v10 = vld [vmem:[#allocation5 + $0xe8] sm:$0xff] }
 0x1e2   :  { %3229 = vmatpush.msrb.mxu0 %v3108_v28  ;;  %v3323_v52 = vand.u32 4294901760, %v3322_v26  ;;  %3254 = vmatpush.msrb.mxu1 %v9055_v7  ;;  %v3328_v43 = vsub.f32 %v9319_v34, %v3327_v46  ;;  %vm9355_vm9 = vcmp.eq.s32.totalorder %v6566_v3, 1  ;;  %v3334_v42 = vsub.f32 %v9328_v32, %v3333_v59 }
 0x1e3   :  { %v4853_v14 = vxor.u32 2147483648, %v4848_v8  ;;  %v1848_v63 = vadd.f32 %v1847_v11, %v1819_v9  ;;  %v4857_v7 = vsel %vm4855_vm8, %v4856_v53, %v4848_v8  ;;  %vm4963_vm10 = vcmp.lt.s32.totalorder %v9345_v37, 0  ;;  %v104_v9 = vld [vmem:[#allocation5 + $0x168] sm:$0xff] }
 0x1e4   :  { %3233 = vmatpush.msrb.mxu0 %v3114_v41  ;;  %v4964_v4 = vsub.s32 0, %v9345_v37  ;;  %3324 = vmatpush.msrb.mxu3 %v3323_v52  ;;  %v3329_v19 = vand.u32 4294901760, %v3328_v43  ;;  %v3335_v3 = vand.u32 4294901760, %v3334_v42  ;;  %v3994_v47 = vperm.slane %v9367_v58, 6  ;;  %v72_v53 = vld [vmem:[#allocation5 + $0x68] sm:$0xff] }
 0x1e5   :  { %3256 = vmatpush.msrb.mxu1 %v9067_v51  ;;  %v4854_v41 = vsel %vm4852_vm7, %v4840_v55, %v4853_v14  ;;  %v4048_v33 = vperm.slane %v9370_v18, 6  ;;  %v4984_v11 = vsub.s32 4, %v9315_v44  ;;  %v9387_v25 = vand.u32 4294901760, %v104_v9 }
 0x1e6   :  { %3237 = vmatpush.msrb.mxu0 %v3120_v16  ;;  %v4858_v51 = vsel %vm4851_vm6, %v4854_v41, %v4857_v7  ;;  %v4965_v55 = vsel %vm4963_vm10, %v4964_v4, %v9345_v37  ;;  %3330 = vmatpush.msrb.mxu3 %v3329_v19  ;;  %v4026_v8 = vmul.f32 %v3994_v47, %v1848_v63  ;;  %v11067_v52 = vand.u32 2147483647, %v9063_v61  ;;  %v1941_v63 = vpop.f32.mrf.mxu3 }
 0x1e7   :  { %3258 = vmatpush.msrb.mxu1 %v9081_v0  ;;  %v4859_v20 = vsel %vm4849_vm11, nan, %v4858_v51  ;;  %v4966_v26 = vclz %v4965_v55  ;;  %v9391_v16 = vsub.f32 %v9308_v57, %v9325_v17  ;;  %v9394_v0 = vand.u32 4294901760, %v88_v10  ;;  %3239 = vmatmul.f32.vlgmr.msrb.gmra.mxu0 %v6967_v62 }
 0x1e8   :  { %3376 = vmatpush.msra.mxu0 %v9267_v1  ;;  %v6598_v27 = vsel %vm9355_vm9, %v8871_v45, %v4859_v20  ;;  %3336 = vmatpush.msrb.mxu3 %v3335_v3  ;;  %vm9398_vm12 = vcmp.le.f32.partialorder %v11067_v52, 0.7853982  ;;  %vm4862_vm13 = vcmp.lt.s32.totalorder %v9063_v61, 0  ;;  %v9403_v14 = vadd.f32 %v4048_v33, %v4026_v8  ;;  %v1880_v3 = vpop.f32.mrf.mxu2 }
 0x1e9   :  { %3260 = vmatpush.msrb.mxu1 %v9121_v15  ;;  %6614 = vst [vmem:[#allocation8 + $0x20] sm:$0xff] %v6598_v27  ;;  %v6660_v45 = vadd.s32 4294967294, %v4966_v26  ;;  %v4954_v57 = vadd.s32 %v9225_v24, %v9263_v21  ;;  %3291 = vmatpush.msrb.mxu2 %v9387_v25  ;;  %v3339_v15 = vand.u32 4294901760, %v9391_v16  ;;  %v9411_v28 = vsub.f32 %v104_v9, %v9387_v25 }
 0x1ea   :  { %v9414_v42 = vand.u32 4294901760, %v72_v53  ;;  %v5014_v7 = vand.u32 2147483647, %v9403_v14  ;;  %v5017_v4 = vand.u32 2139095040, %v9403_v14  ;;  %v9419_v19 = vsub.f32 %v88_v10, %v9394_v0  ;;  %3379 = vmatpush.msra.mxu0 %v9304_v54 }
 0x1eb   :  { %3262 = vmatpush.msrb.mxu1 %v9124_v6  ;;  %vm6661_vm14 = vcmp.lt.s32.totalorder %v6660_v45, 0  ;;  %v4985_v21 = vsel %vm4862_vm13, %v4984_v11, %v9315_v44  ;;  %v3340_v6 = vsub.f32 %v9391_v16, %v3339_v15  ;;  %3293 = vmatpush.msrb.mxu2 %v9394_v0  ;;  %v3345_v41 = vand.u32 4294901760, %v9411_v28 }
 0x1ec   :  { %v4969_v24 = vsel %vm6661_vm14, 0, %v6660_v45  ;;  %3382 = vmatpush.msra.mxu0 %v9319_v34  ;;  %v1942_v10 = vadd.f32 %v1941_v63, %v1880_v3  ;;  %v5018_v51 = vshrl.u32 %v5017_v4, 23  ;;  %v5021_v44 = vand.u32 8388607, %v5014_v7 }
 0x1ed   :  { %3264 = vmatpush.msrb.mxu1 %v9154_v5  ;;  %v4970_v47 = vsub.s32 32, %v4969_v24  ;;  %v4971_v33 = vshll.u32 %v9345_v37, %v4969_v24  ;;  %v4974_v9 = vsub.s32 4294967266, %v4969_v24  ;;  %v3341_v55 = vand.u32 4294901760, %v3340_v6  ;;  %3295 = vmatpush.msrb.mxu2 %v9414_v42  ;;  %v1979_v5 = vpop.f32.mrf.mxu0  ;;  %v2010_v24 = vpop.f32.mrf.mxu1 }
 0x1ee   :  { %v3346_v20 = vsub.f32 %v9411_v28, %v3345_v41  ;;  %v3351_v11 = vand.u32 4294901760, %v9419_v19  ;;  %v9444_v8 = vsub.f32 %v72_v53, %v9414_v42  ;;  %v4987_v27 = vsel %vm9398_vm12, 0, %v4985_v21  ;;  %3385 = vmatpush.msra.mxu0 %v9328_v32  ;;  %3301 = vmatmul.f32.vlgmr.msrb.gmra.mxu2 %v7040_v60 }
 0x1ef   :  { %3266 = vmatpush.msrb.mxu1 %v9242_v22  ;;  %v4972_v26 = vshrl.u32 %v4954_v57, %v4970_v47  ;;  %v4975_v37 = vadd.s32 127, %v4974_v9  ;;  %3446 = vmatpush.msra.mxu2 %v3315_v56  ;;  %v6662_v52 = vadd.s32 4294967169, %v5018_v51  ;;  %v5022_v45 = vor.u32 8388608, %v5021_v44 }
 0x1f0   :  { %3268 = vmatmul.f32.vlgmr.msrb.gmra.mxu1 %v6967_v62  ;;  %3342 = vmatpush.msrb.mxu3 %v3341_v55  ;;  %v3347_v22 = vand.u32 4294901760, %v3346_v20  ;;  %v3352_v1 = vsub.f32 %v9419_v19, %v3351_v11  ;;  %v1980_v56 = vadd.f32 %v1979_v5, %v1942_v10  ;;  %v3357_v4 = vand.u32 4294901760, %v9444_v8  ;;  %v2055_v44 = vpop.f32.mrf.mxu2 }
 0x1f1   :  { %3413 = vmatpush.msra.mxu1 %v9254_v36  ;;  %v4973_v57 = vor.u32 %v4972_v26, %v4971_v33  ;;  %v4976_v63 = vshll.u32 %v4975_v37, 23  ;;  %3450 = vmatpush.msra.mxu2 %v3321_v50  ;;  %v5024_v53 = vadd.s32 1, %v6662_v52  ;;  %v9458_v6 = vshll.u32 %v5022_v45, 8 }
 0x1f2   :  { %3348 = vmatpush.msrb.mxu3 %v3347_v22  ;;  %v3353_v3 = vand.u32 4294901760, %v3352_v1  ;;  %3388 = vmatpush.msra.mxu0 %v9391_v16  ;;  %v9463_v54 = vand.u32 3, %v4987_v27  ;;  %v3358_v50 = vsub.f32 %v9444_v8, %v3357_v4  ;;  %v2011_v34 = vadd.f32 %v2010_v24, %v1980_v56 }
 0x1f3   :  { %3415 = vmatpush.msra.mxu1 %v9271_v31  ;;  %v4977_v21 = vor.u32 4788187, %v4976_v63  ;;  %3454 = vmatpush.msra.mxu2 %v3327_v46  ;;  %vm5025_vm15 = vcmp.gt.s32.totalorder %v5024_v53, 0  ;;  %v4980_v33 = vcvt.s32.f32 %v4973_v57  ;;  %v6567_v46 = vperm.slane %v8347_v40, 5 }
 0x1f4   :  { %v5026_v9 = vsel %vm5025_vm15, %v5024_v53, 0  ;;  %3354 = vmatpush.msrb.mxu3 %v3353_v3  ;;  %v3359_v51 = vand.u32 4294901760, %v3358_v50  ;;  %3391 = vmatpush.msra.mxu0 %v9411_v28  ;;  %v3995_v55 = vperm.slane %v9367_v58, 7  ;;  %v9479_v26 = vand.u32 65535, %v9458_v6  ;;  %v2084_v28 = vpop.f32.mrf.mxu3 }
 0x1f5   :  { %3417 = vmatpush.msra.mxu1 %v9301_v35  ;;  %v4978_v47 = vand.u32 2147483647, %v4977_v21  ;;  %3458 = vmatpush.msra.mxu2 %v3333_v59  ;;  %v5028_v10 = vand.u32 31, %v5026_v9  ;;  %v9476_v5 = vshrl.u32 %v5026_v9, 5  ;;  %v9482_v32 = vshrl.u32 %v9458_v6, 16  ;;  %v185_v59 = vld [vmem:[#allocation5 + $0x3f0] sm:$0xff] }
 0x1f6   :  { %3360 = vmatpush.msrb.mxu3 %v3359_v51  ;;  %3394 = vmatpush.msra.mxu0 %v9419_v19  ;;  %v2056_v16 = vadd.f32 %v2055_v44, %v2011_v34  ;;  %v9499_v53 = vand.u32 4294901760, %v185_v59  ;;  %vm5006_vm4 = vcmp.eq.s32.totalorder %v9463_v54, 0  ;;  %vm5009_vm5 = vcmp.eq.s32.totalorder %v9463_v54, 2 }
 0x1f7   :  { %3419 = vmatpush.msra.mxu1 %v9313_v48  ;;  %v4981_v20 = vmul.f32 %v4980_v33, %v4978_v47  ;;  %3462 = vmatpush.msra.mxu2 %v3339_v15  ;;  %v5029_v37 = vsub.s32 32, %v5028_v10  ;;  %v5031_v27 = vshll.u32 %v11029_v30, %v5028_v10  ;;  %v5034_v52 = vshll.u32 %v11030_v2, %v5028_v10 }
 0x1f8   :  { %v5037_v45 = vshll.u32 %v11031_v49, %v5028_v10  ;;  %v5040_v57 = vshll.u32 %v11032_v39, %v5028_v10  ;;  %v5043_v63 = vshll.u32 %v11046_v12, %v5028_v10  ;;  %3489 = vmatpush.msra.mxu3 %v9254_v36  ;;  %vm5046_vm0 = vcmp.lt.s32.totalorder %v9476_v5, 1  ;;  %3397 = vmatpush.msra.mxu0 %v9444_v8 }
 0x1f9   :  { %v4982_v22 = vxor.u32 2147483648, %v4981_v20  ;;  %3466 = vmatpush.msra.mxu2 %v3345_v41  ;;  %v5032_v15 = vshrl.u32 %v11030_v2, %v5029_v37  ;;  %v5035_v1 = vshrl.u32 %v11031_v49, %v5029_v37  ;;  %v5038_v56 = vshrl.u32 %v11032_v39, %v5029_v37  ;;  %3362 = vmatmul.f32.vlgmr.msrb.gmra.mxu3 %v6967_v62  ;;  %v9508_v41 = vld [vmem:[#allocation5 + $0x370] sm:$0xff] }
 0x1fa   :  { %v5041_v21 = vshrl.u32 %v11046_v12, %v5029_v37  ;;  %v5044_v36 = vshrl.u32 %v11036_v29, %v5029_v37  ;;  %3491 = vmatpush.msra.mxu3 %v9271_v31  ;;  %3421 = vmatpush.msra.mxu1 %v9325_v17  ;;  %v4049_v10 = vperm.slane %v9370_v18, 7  ;;  %vm5048_vm1 = vcmp.lt.s32.totalorder %v9476_v5, 3 }
 0x1fb   :  { %v4983_v24 = vsel %vm4862_vm13, %v4982_v22, %v4981_v20  ;;  %v5033_v50 = vor.u32 %v5032_v15, %v5031_v27  ;;  %v5036_v47 = vor.u32 %v5035_v1, %v5034_v52  ;;  %v5039_v33 = vor.u32 %v5038_v56, %v5037_v45  ;;  %3470 = vmatpush.msra.mxu2 %v3351_v11  ;;  %v9551_v52 = vld [vmem:[#allocation5 + $0x2f0] sm:$0xff] }
 0x1fc   :  { %v9513_v3 = vsel %vm9398_vm12, %v9063_v61, %v4983_v24  ;;  %v5042_v31 = vor.u32 %v5041_v21, %v5040_v57  ;;  %v5045_v34 = vor.u32 %v5044_v36, %v5043_v63  ;;  %3493 = vmatpush.msra.mxu3 %v9301_v35  ;;  %vm5049_vm2 = vcmp.lt.s32.totalorder %v9476_v5, 4  ;;  %3423 = vmatpush.msra.mxu1 %v9387_v25 }
 0x1fd   :  { %v4988_v9 = vmul.f32 %v9513_v3, %v9513_v3  ;;  %v2085_v43 = vadd.f32 %v2084_v28, %v2056_v16  ;;  %3474 = vmatpush.msra.mxu2 %v3357_v4  ;;  %v9528_v19 = vand.u32 4294901760, %v9508_v41  ;;  %v5030_v35 = vshrl.u32 %v11029_v30, %v5029_v37  ;;  %3518 = vmatpush.msrb.mxu0 %v9499_v53 }
 0x1fe   :  { %v5054_v18 = vsel %vm5046_vm0, %v5033_v50, %v5036_v47  ;;  %3495 = vmatpush.msra.mxu3 %v9313_v48  ;;  %3476 = vmatmul.f32.vlgmr.msra.gmra.mxu2 %v6967_v62  ;;  %v5055_v44 = vsel %vm5049_vm2, %v5042_v31, 920167782  ;;  %v5058_v8 = vsel %vm5046_vm0, %v5036_v47, %v5039_v33  ;;  %v5059_v4 = vsel %vm5049_vm2, %v5045_v34, 1326507024 }
 0x1ff   :  { %v4989_v11 = vmul.f32 -0.001358992, %v4988_v9  ;;  %v4996_v51 = vmul.f32 -0.00019511016, %v4988_v9  ;;  %v9543_v20 = vsub.f32 %v185_v59, %v9499_v53  ;;  %3425 = vmatpush.msra.mxu1 %v9394_v0  ;;  %vm5047_vm3 = vcmp.lt.s32.totalorder %v9476_v5, 2  ;;  %3400 = vmatmul.f32.vlgmr.msra.gmra.mxu0 %v6988_v13  ;;  %v105_v5 = vld [vmem:[#allocation5 + $0x170] sm:$0xff] }
 0x200   :  { %v5056_v27 = vsel %vm5048_vm1, %v5039_v33, %v5055_v44  ;;  %3497 = vmatpush.msra.mxu3 %v9325_v17  ;;  %v5051_v45 = vsel %vm5049_vm2, %v5039_v33, 2102212464  ;;  %v5060_v22 = vsel %vm5048_vm1, %v5042_v31, %v5059_v4  ;;  %v4027_v57 = vmul.f32 %v3995_v55, %v2085_v43  ;;  %3520 = vmatpush.msrb.mxu0 %v9528_v19 }
 0x201   :  { %v4990_v37 = vadd.f32 0.041655596, %v4989_v11  ;;  %v4997_v48 = vadd.f32 0.008332121, %v4996_v51  ;;  %v5057_v59 = vsel %vm5047_vm3, %v5054_v18, %v5056_v27  ;;  %3613 = vmatpush.msrb.mxu2 %v9543_v20  ;;  %v5061_v16 = vsel %vm5047_vm3, %v5058_v8, %v5060_v22  ;;  %3427 = vmatpush.msra.mxu1 %v9414_v42 }
 0x202   :  { %v5087_v15 = vand.u32 65535, %v5057_v59  ;;  %3499 = vmatpush.msra.mxu3 %v9387_v25  ;;  %v5065_v1 = vand.u32 65535, %v5061_v16  ;;  %v5066_v56 = vshrl.u32 %v5061_v16, 16  ;;  %v5088_v24 = vshrl.u32 %v5057_v59, 16  ;;  %3431 = vmatmul.f32.vlgmr.msra.gmra.mxu1 %v7003_v38 }
 0x203   :  { %v4991_v63 = vmul.f32 %v4990_v37, %v4988_v9  ;;  %v4998_v17 = vmul.f32 %v4997_v48, %v4988_v9  ;;  %v9568_v58 = vand.u32 4294901760, %v9551_v52  ;;  %v9572_v36 = vsel %vm5046_vm0, %v5030_v35, %v5033_v50 }
 0x204   :  { %3501 = vmatpush.msra.mxu3 %v9394_v0  ;;  %v9580_v25 = vsel %vm5048_vm1, %v5036_v47, %v5051_v45  ;;  %v5068_v28 = vmul.u32 %v5066_v56, %v9479_v26  ;;  %v5069_v33 = vmul.u32 %v5065_v1, %v9482_v32  ;;  %v9585_v31 = vmul.u32 %v5087_v15, %v9482_v32 }
 0x205   :  { %v4992_v55 = vadd.f32 -0.4999988, %v4991_v63  ;;  %v4999_v21 = vadd.f32 -0.16666654, %v4998_v17  ;;  %3522 = vmatpush.msrb.mxu0 %v9568_v58  ;;  %vm5005_vm6 = vcmp.lt.s32.totalorder %v9463_v54, 2  ;;  %vm9591_vm7 = vcmp.eq.s32.totalorder %v6567_v46, 1 }
 0x206   :  { %v5090_v47 = vmul.u32 %v5088_v24, %v9479_v26  ;;  %v9596_v43 = vadd.f32 %v4049_v10, %v4027_v57  ;;  %3503 = vmatpush.msra.mxu3 %v9414_v42  ;;  %vm5003_vm8 = vweird.f32 %v9063_v61  ;;  %v5067_v11 = vmul.u32 %v5065_v1, %v9479_v26 }
 0x207   :  { %v4993_v0 = vmul.f32 %v4992_v55, %v4988_v9  ;;  %v5000_v50 = vmul.f32 %v4999_v21, %v4988_v9  ;;  %v5070_v9 = vmul.u32 %v5066_v56, %v9482_v32  ;;  %v5071_v51 = vshll.u32 %v5068_v28, 16  ;;  %3505 = vmatmul.f32.vlgmr.msra.gmra.mxu3 %v6967_v62 }
 0x208   :  { %v5089_v35 = vmul.u32 %v5087_v15, %v9479_v26  ;;  %v5092_v44 = vmul.u32 %v5088_v24, %v9482_v32  ;;  %v5093_v8 = vshll.u32 %v5090_v47, 16  ;;  %3650 = vmatpush.msrb.mxu3 %v9499_v53  ;;  %v5073_v10 = vshll.u32 %v5069_v33, 16 }
 0x209   :  { %v4994_v46 = vadd.f32 1.0, %v4993_v0  ;;  %v5001_v18 = vadd.f32 1.0, %v5000_v50  ;;  %vm5075_vm9 = vc.u32 %v5067_v11, %v5071_v51  ;;  %v5077_v42 = vadd.s32 %v5071_v51, %v5067_v11 }
 0x20a   :  { %v5095_v4 = vshll.u32 %v9585_v31, 16  ;;  %v5076_v27 = vsel %vm5075_vm9, 1, %v11037_v23  ;;  %vm5097_vm10 = vc.u32 %v5089_v35, %v5093_v8  ;;  %3652 = vmatpush.msrb.mxu3 %v9528_v19  ;;  %v5099_v45 = vadd.s32 %v5093_v8, %v5089_v35 }
 0x20b   :  { %v5002_v37 = vmul.f32 %v5001_v18, %v9513_v3  ;;  %v5010_v48 = vxor.u32 2147483648, %v4994_v46  ;;  %v5078_v26 = vadd.s32 %v5076_v27, %v5070_v9  ;;  %vm5079_vm11 = vc.u32 %v5077_v42, %v5073_v10 }
 0x20c   :  { %v5098_v32 = vsel %vm5097_vm10, 1, %v11037_v23  ;;  %v5080_v22 = vsel %vm5079_vm11, 1, %v11037_v23  ;;  %v11007_v63 = vand.u32 2147483647, %v9596_v43  ;;  %3654 = vmatpush.msrb.mxu3 %v9568_v58  ;;  %v5072_v3 = vshrl.u32 %v5068_v28, 16  ;;  %v137_v28 = vld [vmem:[#allocation5 + $0x270] sm:$0xff] }
 0x20d   :  { %v5007_v59 = vxor.u32 2147483648, %v5002_v37  ;;  %v5100_v57 = vadd.s32 %v5098_v32, %v5092_v44  ;;  %v5074_v17 = vshrl.u32 %v5069_v33, 16  ;;  %v5082_v16 = vadd.s32 %v5080_v22, %v5078_v26  ;;  %v9663_v32 = vld [vmem:[#allocation5 + $0xf0] sm:$0xff] }
 0x20e   :  { %vm5101_vm12 = vc.u32 %v5099_v45, %v5095_v4  ;;  %v5011_v1 = vsel %vm5009_vm5, %v5010_v48, %v5002_v37  ;;  %v5171_v24 = vand.u32 2139095040, %v9596_v43  ;;  %v5094_v0 = vshrl.u32 %v5090_v47, 16 }
 0x20f   :  { %v5008_v15 = vsel %vm5006_vm4, %v4994_v46, %v5007_v59  ;;  %v5102_v56 = vsel %vm5101_vm12, 1, %v11037_v23  ;;  %v5083_v21 = vadd.s32 %v5082_v16, %v5072_v3  ;;  %v5096_v11 = vshrl.u32 %v9585_v31, 16 }
 0x210   :  { %v5012_v55 = vsel %vm5005_vm6, %v5008_v15, %v5011_v1  ;;  %v5104_v50 = vadd.s32 %v5102_v56, %v5100_v57  ;;  %v5172_v9 = vshrl.u32 %v5171_v24, 23  ;;  %v9627_v51 = vsub.f32 %v9508_v41, %v9528_v19  ;;  %v121_v41 = vld [vmem:[#allocation5 + $0x1f0] sm:$0xff] }
 0x211   :  { %v5013_v33 = vsel %vm5003_vm8, nan, %v5012_v55  ;;  %v5084_v54 = vadd.s32 %v5083_v21, %v5074_v17  ;;  %v5103_v46 = vadd.s32 %v5099_v45, %v5095_v4  ;;  %v3552_v44 = vand.u32 4294901760, %v9543_v20 }
 0x212   :  { %v6599_v35 = vsel %vm9591_vm7, %v9063_v61, %v5013_v33  ;;  %v5105_v18 = vadd.s32 %v5104_v50, %v5094_v0  ;;  %v6665_v47 = vadd.s32 4294967169, %v5172_v9  ;;  %3616 = vmatpush.msrb.mxu2 %v9627_v51  ;;  %v9636_v31 = vsub.f32 %v9551_v52, %v9568_v58 }
 0x213   :  { %6615 = vst [vmem:[#allocation8 + $0x28] sm:$0xff] %v6599_v35  ;;  %v9638_v8 = vand.u32 4294901760, %v137_v28  ;;  %v5053_v61 = vsel %vm5047_vm3, %v9572_v36, %v9580_v25  ;;  %vm5109_vm13 = vc.u32 %v5084_v54, %v5103_v46  ;;  %v5175_v10 = vand.u32 8388607, %v11007_v63 }
 0x214   :  { %v5106_v34 = vadd.s32 %v5105_v18, %v5096_v11  ;;  %v5178_v42 = vadd.s32 1, %v6665_v47  ;;  %v3553_v4 = vsub.f32 %v9543_v20, %v3552_v44  ;;  %3619 = vmatpush.msrb.mxu2 %v9636_v31  ;;  %v11010_v52 = vand.u32 4294901760, %v9627_v51 }
 0x215   :  { %3524 = vmatpush.msrb.mxu0 %v9638_v8  ;;  %v9653_v37 = vsub.f32 %v137_v28, %v9638_v8  ;;  %v9655_v25 = vand.u32 4294901760, %v121_v41  ;;  %3656 = vmatpush.msrb.mxu3 %v9638_v8  ;;  %v5107_v48 = vmul.u32 %v9458_v6, %v5053_v61  ;;  %v9670_v57 = vand.u32 4294901760, %v105_v5 }
 0x216   :  { %v5110_v36 = vadd.s32 1, %v5106_v34  ;;  %vm5179_vm14 = vcmp.gt.s32.totalorder %v5178_v42, 0  ;;  %v3554_v27 = vand.u32 4294901760, %v3553_v4  ;;  %v3559_v26 = vsub.f32 %v9627_v51, %v11010_v52 }
 0x217   :  { %3622 = vmatpush.msrb.mxu2 %v9653_v37  ;;  %v5180_v59 = vsel %vm5179_vm14, %v5178_v42, 0  ;;  %3526 = vmatpush.msrb.mxu0 %v9655_v25  ;;  %v9668_v22 = vsub.f32 %v121_v41, %v9655_v25  ;;  %v5176_v3 = vor.u32 8388608, %v5175_v10  ;;  %v9673_v15 = vadd.s32 %v5103_v46, %v5084_v54 }
 0x218   :  { %v5111_v45 = vsel %vm5109_vm13, %v5110_v36, %v5106_v34  ;;  %3658 = vmatpush.msrb.mxu3 %v9655_v25  ;;  %v5182_v17 = vand.u32 31, %v5180_v59  ;;  %3555 = vmatpush.msrb.mxu1 %v3554_v27  ;;  %v3560_v16 = vand.u32 4294901760, %v3559_v26  ;;  %v9675_v1 = vshrl.u32 %v5180_v59, 5 }
 0x219   :  { %v5112_v6 = vadd.s32 %v5111_v45, %v5107_v48  ;;  %3625 = vmatpush.msrb.mxu2 %v9668_v22  ;;  %3528 = vmatpush.msrb.mxu0 %v9670_v57  ;;  %v9680_v56 = vsub.f32 %v105_v5, %v9670_v57  ;;  %v9683_v24 = vand.u32 4294901760, %v9663_v32  ;;  %vm5016_vm15 = vcmp.lt.s32.totalorder %v9403_v14, 0 }
 0x21a   :  { %v5183_v21 = vsub.s32 32, %v5182_v17  ;;  %v5185_v0 = vshll.u32 %v11029_v30, %v5182_v17  ;;  %v5188_v50 = vshll.u32 %v11030_v2, %v5182_v17  ;;  %3561 = vmatpush.msrb.mxu1 %v3560_v16  ;;  %3660 = vmatpush.msrb.mxu3 %v9670_v57  ;;  %v5191_v28 = vshll.u32 %v11031_v49, %v5182_v17 }
 0x21b   :  { %v5113_v55 = vadd.s32 536870912, %v5112_v6  ;;  %v5194_v33 = vshll.u32 %v11032_v39, %v5182_v17  ;;  %v5197_v11 = vshll.u32 %v11046_v12, %v5182_v17  ;;  %3628 = vmatpush.msrb.mxu2 %v9680_v56  ;;  %3530 = vmatpush.msrb.mxu0 %v9683_v24  ;;  %v9696_v46 = vshll.u32 %v5176_v3, 8 }
 0x21c   :  { %v5186_v35 = vshrl.u32 %v11030_v2, %v5183_v21  ;;  %v5189_v54 = vshrl.u32 %v11031_v49, %v5183_v21  ;;  %3662 = vmatpush.msrb.mxu3 %v9683_v24  ;;  %v5192_v18 = vshrl.u32 %v11032_v39, %v5183_v21  ;;  %v5195_v47 = vshrl.u32 %v11046_v12, %v5183_v21 }
 0x21d   :  { %v5114_v9 = vshrl.u32 %v5113_v55, 30  ;;  %v5198_v41 = vshrl.u32 %v11036_v29, %v5183_v21  ;;  %v11009_v61 = vand.u32 4294901760, %v9636_v31  ;;  %vm9705_vm0 = vcmp.le.f32.partialorder %v5014_v7, 0.7853982 }
 0x21e   :  { %v5187_v42 = vor.u32 %v5186_v35, %v5185_v0  ;;  %v5190_v4 = vor.u32 %v5189_v54, %v5188_v50  ;;  %vm5200_vm1 = vcmp.lt.s32.totalorder %v9675_v1, 1  ;;  %v5184_v5 = vshrl.u32 %v11029_v30, %v5183_v21 }
 0x21f   :  { %v5115_v10 = vshll.u32 %v5114_v9, 30  ;;  %v5193_v36 = vor.u32 %v5192_v18, %v5191_v28  ;;  %v5196_v48 = vor.u32 %v5195_v47, %v5194_v33  ;;  %v5199_v27 = vor.u32 %v5198_v41, %v5197_v11 }
 0x220   :  { %v5138_v45 = vsub.s32 4, %v5114_v9  ;;  %vm5202_vm2 = vcmp.lt.s32.totalorder %v9675_v1, 3  ;;  %vm5203_vm3 = vcmp.lt.s32.totalorder %v9675_v1, 4  ;;  %v5217_v59 = vand.u32 65535, %v9696_v46 }
 0x221   :  { %v5116_v26 = vsub.s32 %v5112_v6, %v5115_v10  ;;  %v5209_v7 = vsel %vm5203_vm3, %v5196_v48, 920167782  ;;  %v5218_v3 = vshrl.u32 %v9696_v46, 16  ;;  %v3565_v17 = vsub.f32 %v9636_v31, %v11009_v61 }
 0x222   :  { %v5205_v55 = vsel %vm5203_vm3, %v5193_v36, 2102212464  ;;  %v5208_v6 = vsel %vm5200_vm1, %v5187_v42, %v5190_v4  ;;  %v5210_v21 = vsel %vm5202_vm2, %v5193_v36, %v5209_v7  ;;  %v5212_v0 = vsel %vm5200_vm1, %v5190_v4, %v5193_v36 }
 0x223   :  { %vm5117_vm4 = vcmp.lt.s32.totalorder %v5116_v26, 0  ;;  %v5118_v16 = vsub.s32 0, %v5116_v26  ;;  %v5213_v50 = vsel %vm5203_vm3, %v5199_v27, 1326507024  ;;  %v11008_v28 = vand.u32 4294901760, %v9653_v37 }
 0x224   :  { %v9727_v11 = vsel %vm5016_vm15, %v5138_v45, %v5114_v9  ;;  %vm5201_vm5 = vcmp.lt.s32.totalorder %v9675_v1, 2  ;;  %v5204_v35 = vsel %vm5200_vm1, %v5184_v5, %v5187_v42  ;;  %v5206_v18 = vsel %vm5202_vm2, %v5190_v4, %v5205_v55 }
 0x225   :  { %v5119_v33 = vsel %vm5117_vm4, %v5118_v16, %v5116_v26  ;;  %v5211_v47 = vsel %vm5201_vm5, %v5208_v6, %v5210_v21  ;;  %v5214_v41 = vsel %vm5202_vm2, %v5196_v48, %v5213_v50  ;;  %v3566_v7 = vand.u32 4294901760, %v3565_v17 }
 0x226   :  { %v5120_v54 = vclz %v5119_v33  ;;  %v5215_v10 = vsel %vm5201_vm5, %v5212_v0, %v5214_v41  ;;  %v5241_v36 = vand.u32 65535, %v5211_v47  ;;  %v5242_v27 = vshrl.u32 %v5211_v47, 16 }
 0x227   :  { %v5219_v45 = vand.u32 65535, %v5215_v10  ;;  %v5220_v63 = vshrl.u32 %v5215_v10, 16  ;;  %v9739_v42 = vsel %vm5201_vm5, %v5204_v35, %v5206_v18  ;;  %3567 = vmatpush.msrb.mxu1 %v3566_v7  ;;  %v3571_v1 = vsub.f32 %v9653_v37, %v11008_v28 }
 0x228   :  { %v6663_v16 = vadd.s32 4294967294, %v5120_v54  ;;  %v5243_v5 = vmul.u32 %v5241_v36, %v5217_v59  ;;  %v9741_v33 = vmul.u32 %v5242_v27, %v5217_v59  ;;  %v9746_v17 = vmul.u32 %v5241_v36, %v5218_v3 }
 0x229   :  { %v5222_v4 = vmul.u32 %v5220_v63, %v5217_v59  ;;  %v5223_v48 = vmul.u32 %v5219_v45, %v5218_v3  ;;  %v5221_v6 = vmul.u32 %v5219_v45, %v5217_v59  ;;  %v5246_v21 = vmul.u32 %v5242_v27, %v5218_v3 }
 0x22a   :  { %vm6664_vm6 = vcmp.lt.s32.totalorder %v6663_v16, 0  ;;  %v5247_v0 = vshll.u32 %v9741_v33, 16  ;;  %v5224_v54 = vmul.u32 %v5220_v63, %v5218_v3  ;;  %v5248_v7 = vshrl.u32 %v9741_v33, 16 }
 0x22b   :  { %v5123_v55 = vsel %vm6664_vm6, 0, %v6663_v16  ;;  %v5225_v18 = vshll.u32 %v5222_v4, 16  ;;  %v5226_v41 = vshrl.u32 %v5222_v4, 16  ;;  %v5227_v10 = vshll.u32 %v5223_v48, 16 }
 0x22c   :  { %v5124_v50 = vsub.s32 32, %v5123_v55  ;;  %v5128_v35 = vsub.s32 4294967266, %v5123_v55  ;;  %v5125_v47 = vshll.u32 %v5116_v26, %v5123_v55  ;;  %v5228_v61 = vshrl.u32 %v5223_v48, 16 }
 0x22d   :  { %vm5229_vm7 = vc.u32 %v5221_v6, %v5225_v18  ;;  %v5231_v59 = vadd.s32 %v5225_v18, %v5221_v6  ;;  %v5249_v27 = vshll.u32 %v9746_v17, 16  ;;  %vm5251_vm8 = vc.u32 %v5243_v5, %v5247_v0  ;;  %v2117_v6 = vpop.f32.mrf.mxu0 }
 0x22e   :  { %v5126_v9 = vshrl.u32 %v9673_v15, %v5124_v50  ;;  %v5129_v28 = vadd.s32 127, %v5128_v35  ;;  %v5230_v36 = vsel %vm5229_vm7, 1, %v11037_v23  ;;  %v5250_v26 = vshrl.u32 %v9746_v17, 16  ;;  %v73_v15 = vld [vmem:[#allocation5 + $0x70] sm:$0xff]  ;;  %v2178_v17 = vpop.f32.mrf.mxu1 }
 0x22f   :  { %v5232_v63 = vadd.s32 %v5230_v36, %v5224_v54  ;;  %vm5233_vm9 = vc.u32 %v5231_v59, %v5227_v10  ;;  %v5252_v3 = vsel %vm5251_vm8, 1, %v11037_v23  ;;  %v5253_v33 = vadd.s32 %v5247_v0, %v5243_v5  ;;  %v170_v59 = vld [vmem:[#allocation5 + $0x378] sm:$0xff] }
 0x230   :  { %v5127_v16 = vor.u32 %v5126_v9, %v5125_v47  ;;  %v5130_v45 = vshll.u32 %v5129_v28, 23  ;;  %v3572_v4 = vand.u32 4294901760, %v3571_v1  ;;  %v5234_v50 = vsel %vm5233_vm9, 1, %v11037_v23  ;;  %v186_v9 = vld [vmem:[#allocation5 + $0x3f8] sm:$0xff] }
 0x231   :  { %v5254_v35 = vadd.s32 %v5252_v3, %v5246_v21  ;;  %v5236_v18 = vadd.s32 %v5234_v50, %v5232_v63  ;;  %vm5255_vm10 = vc.u32 %v5253_v33, %v5249_v27  ;;  %v9756_v52 = vadd.s32 %v5253_v33, %v5249_v27 }
 0x232   :  { %v5131_v55 = vor.u32 4788187, %v5130_v45  ;;  %v5134_v48 = vcvt.s32.f32 %v5127_v16  ;;  %3573 = vmatpush.msrb.mxu1 %v3572_v4  ;;  %v3576_v28 = vand.u32 4294901760, %v9668_v22  ;;  %v5256_v5 = vsel %vm5255_vm10, 1, %v11037_v23  ;;  %v2216_v4 = vpop.f32.mrf.mxu2 }
 0x233   :  { %v9762_v1 = vsub.f32 %v9663_v32, %v9683_v24  ;;  %v9764_v0 = vand.u32 4294901760, %v73_v15  ;;  %v5237_v21 = vadd.s32 %v5236_v18, %v5226_v41  ;;  %v5258_v47 = vadd.s32 %v5256_v5, %v5254_v35 }
 0x234   :  { %v5132_v54 = vand.u32 2147483647, %v5131_v55  ;;  %v3577_v10 = vsub.f32 %v9668_v22, %v3576_v28  ;;  %v3582_v36 = vand.u32 4294901760, %v9680_v56  ;;  %v9775_v32 = vand.u32 4294901760, %v186_v9 }
 0x235   :  { %3631 = vmatpush.msrb.mxu2 %v9762_v1  ;;  %3532 = vmatpush.msrb.mxu0 %v9764_v0  ;;  %v9773_v16 = vsub.f32 %v73_v15, %v9764_v0  ;;  %v2179_v45 = vadd.f32 %v2178_v17, %v2117_v6  ;;  %v9777_v41 = vadd.s32 %v5237_v21, %v5228_v61  ;;  %v3588_v61 = vand.u32 4294901760, %v9762_v1 }
 0x236   :  { %v5135_v27 = vmul.f32 %v5134_v48, %v5132_v54  ;;  %v5259_v63 = vadd.s32 %v5258_v47, %v5248_v7  ;;  %v3578_v3 = vand.u32 4294901760, %v3577_v10  ;;  %v3583_v33 = vsub.f32 %v9680_v56, %v3582_v36  ;;  %3664 = vmatpush.msrb.mxu3 %v9764_v0  ;;  %v154_v48 = vld [vmem:[#allocation5 + $0x2f8] sm:$0xff]  ;;  %3538 = vmatmul.f32.vlgmr.msrb.gmra.mxu0 %v7040_v60 }
 0x237   :  { %3683 = vmatpush.msra.mxu0 %v3552_v44  ;;  %3634 = vmatpush.msrb.mxu2 %v9773_v16  ;;  %v9787_v15 = vsub.f32 %v186_v9, %v9775_v32  ;;  %v9790_v7 = vand.u32 4294901760, %v170_v59  ;;  %v5261_v20 = vmul.u32 %v9696_v46, %v9739_v42  ;;  %vm5263_vm11 = vc.u32 %v9777_v41, %v9756_v52  ;;  %v2247_v42 = vpop.f32.mrf.mxu3  ;;  %v138_v9 = vld [vmem:[#allocation5 + $0x278] sm:$0xff] }
 0x238   :  { %v5136_v55 = vxor.u32 2147483648, %v5135_v27  ;;  %v5260_v50 = vadd.s32 %v5259_v63, %v5250_v26  ;;  %3579 = vmatpush.msrb.mxu1 %v3578_v3  ;;  %v3584_v44 = vand.u32 4294901760, %v3583_v33  ;;  %v3589_v6 = vsub.f32 %v9762_v1, %v3588_v61  ;;  %3637 = vmatmul.f32.vlgmr.msrb.gmra.mxu2 %v6988_v13  ;;  %v2292_v63 = vpop.f32.mrf.mxu0 }
 0x239   :  { %3755 = vmatpush.msra.mxu2 %v9775_v32  ;;  %v11074_v18 = vand.u32 4294901760, %v9627_v51  ;;  %v11011_v26 = vand.u32 4294901760, %v9787_v15  ;;  %v2217_v46 = vadd.f32 %v2216_v4, %v2179_v45  ;;  %v11012_v5 = vand.u32 4294901760, %v9773_v16  ;;  %3668 = vmatmul.f32.vlgmr.msrb.gmra.mxu3 %v7003_v38 }
 0x23a   :  { %v5137_v35 = vsel %vm5016_vm15, %v5136_v55, %v5135_v27  ;;  %v5264_v54 = vadd.s32 1, %v5260_v50  ;;  %3585 = vmatpush.msrb.mxu1 %v3584_v44  ;;  %v9814_v51 = vand.u32 4294901760, %v154_v48  ;;  %v3590_v47 = vand.u32 4294901760, %v3589_v6 }
 0x23b   :  { %3687 = vmatpush.msra.mxu0 %v11074_v18  ;;  %v9810_v17 = vsel %vm9705_vm0, %v9403_v14, %v5137_v35  ;;  %3757 = vmatpush.msra.mxu2 %v9790_v7  ;;  %v3790_v10 = vsub.f32 %v9787_v15, %v11011_v26  ;;  %v11075_v27 = vand.u32 4294901760, %v9636_v31  ;;  %v9824_v45 = vsub.f32 %v170_v59, %v9790_v7  ;;  %v9836_v31 = vld [vmem:[#allocation5 + $0x1f8] sm:$0xff] }
 0x23c   :  { %v5142_v21 = vmul.f32 %v9810_v17, %v9810_v17  ;;  %v5265_v3 = vsel %vm5263_vm11, %v5264_v54, %v5260_v50  ;;  %v3595_v33 = vsub.f32 %v9773_v16, %v11012_v5  ;;  %v2248_v4 = vadd.f32 %v2247_v42, %v2217_v46  ;;  %3591 = vmatpush.msrb.mxu1 %v3590_v47  ;;  %v2321_v50 = vpop.f32.mrf.mxu1  ;;  %v9845_v26 = vld [vmem:[#allocation7 + $0x20] ss:$4 sm:$0xff]  ;;  %v9847_v5 = vld [vmem:[#allocation7 + $0x21] ss:$4 sm:$0xff] }
 0x23d   :  { %3691 = vmatpush.msra.mxu0 %v11075_v27  ;;  %3759 = vmatpush.msra.mxu2 %v9814_v51  ;;  %v9834_v55 = vand.u32 4294901760, %v138_v9  ;;  %v5266_v35 = vadd.s32 %v5265_v3, %v5261_v20  ;;  %v3791_v6 = vand.u32 4294901760, %v3790_v10  ;;  %v11076_v18 = vand.u32 4294901760, %v9653_v37 }
 0x23e   :  { %v5143_v59 = vmul.f32 -0.001358992, %v5142_v21  ;;  %v5150_v44 = vmul.f32 -0.00019511016, %v5142_v21  ;;  %v3596_v54 = vand.u32 4294901760, %v3595_v33  ;;  %v3795_v27 = vand.u32 4294901760, %v9824_v45 }
 0x23f   :  { %3695 = vmatpush.msra.mxu0 %v11076_v18  ;;  %3761 = vmatpush.msra.mxu2 %v9834_v55  ;;  %v9843_v46 = vsub.f32 %v154_v48, %v9814_v51  ;;  %v2293_v42 = vadd.f32 %v2292_v63, %v2248_v4  ;;  %v5267_v10 = vadd.s32 536870912, %v5266_v35  ;;  %v9852_v37 = vand.u32 4294901760, %v9836_v31 }
 0x240   :  { %v5144_v20 = vadd.f32 0.041655596, %v5143_v59  ;;  %v5151_v47 = vadd.f32 0.008332121, %v5150_v44  ;;  %3792 = vmatpush.msra.mxu3 %v3791_v6  ;;  %3597 = vmatpush.msrb.mxu1 %v3596_v54  ;;  %v3796_v48 = vsub.f32 %v9824_v45, %v3795_v27  ;;  %v9859_v3 = vsub.f32 %v138_v9, %v9834_v55 }
 0x241   :  { %3699 = vmatpush.msra.mxu0 %v3576_v28  ;;  %v3801_v63 = vand.u32 4294901760, %v9843_v46  ;;  %v2322_v33 = vadd.f32 %v2321_v50, %v2293_v42  ;;  %v5268_v44 = vshrl.u32 %v5267_v10, 30  ;;  %3763 = vmatpush.msra.mxu2 %v9852_v37  ;;  %v3996_v22 = vperm.slane %v9845_v26, 0  ;;  %v9864_v28 = vld [vmem:[#allocation5 + $0x178] sm:$0xff] }
 0x242   :  { %v5145_v4 = vmul.f32 %v5144_v20, %v5142_v21  ;;  %v5152_v59 = vmul.f32 %v5151_v47, %v5142_v21  ;;  %3726 = vmatpush.msra.mxu1 %v9499_v53  ;;  %v3797_v6 = vand.u32 4294901760, %v3796_v48  ;;  %v3807_v9 = vand.u32 4294901760, %v9859_v3 }
 0x243   :  { %v3802_v18 = vsub.f32 %v9843_v46, %v3801_v63  ;;  %v4050_v50 = vperm.slane %v9847_v5, 0  ;;  %3703 = vmatpush.msra.mxu0 %v3582_v36  ;;  %3599 = vmatmul.f32.vlgmr.msrb.gmra.mxu1 %v6967_v62  ;;  %v5269_v42 = vshll.u32 %v5268_v44, 30  ;;  %v4028_v10 = vmul.f32 %v3996_v22, %v2322_v33 }
 0x244   :  { %v5146_v53 = vadd.f32 -0.4999988, %v5145_v4  ;;  %v5153_v54 = vadd.f32 -0.16666654, %v5152_v59  ;;  %3728 = vmatpush.msra.mxu1 %v9528_v19  ;;  %3798 = vmatpush.msra.mxu3 %v3797_v6  ;;  %v3808_v47 = vsub.f32 %v9859_v3, %v3807_v9  ;;  %v9879_v48 = vand.u32 4294901760, %v9864_v28 }
 0x245   :  { %v3803_v20 = vand.u32 4294901760, %v3802_v18  ;;  %3707 = vmatpush.msra.mxu0 %v3588_v61  ;;  %v11077_v4 = vsel %vm9705_vm0, 0, %v9727_v11  ;;  %v9887_v59 = vsub.s32 %v5266_v35, %v5269_v42  ;;  %vm5157_vm12 = vweird.f32 %v9403_v14 }
 0x246   :  { %v5147_v56 = vmul.f32 %v5146_v53, %v5142_v21  ;;  %v5154_v36 = vmul.f32 %v5153_v54, %v5142_v21  ;;  %v5158_v19 = vand.u32 3, %v11077_v4  ;;  %3730 = vmatpush.msra.mxu1 %v9568_v58  ;;  %v6568_v33 = vperm.slane %v8347_v40, 6  ;;  %3765 = vmatpush.msra.mxu2 %v9879_v48  ;;  %v9911_v53 = vld [vmem:[#allocation5 + $0xf8] sm:$0xff] }
 0x247   :  { %v5292_v22 = vsub.s32 4, %v5268_v44  ;;  %3804 = vmatpush.msra.mxu3 %v3803_v20  ;;  %v3809_v6 = vand.u32 4294901760, %v3808_v47  ;;  %v9892_v1 = vadd.f32 %v4050_v50, %v4028_v10  ;;  %vm5271_vm13 = vcmp.lt.s32.totalorder %v9887_v59, 0  ;;  %v9926_v47 = vld [vmem:[#allocation5 + $0x78] sm:$0xff] }
 0x248   :  { %v5148_v61 = vadd.f32 1.0, %v5147_v56  ;;  %v5155_v34 = vadd.f32 1.0, %v5154_v36  ;;  %v5272_v11 = vsub.s32 0, %v9887_v59  ;;  %3732 = vmatpush.msra.mxu1 %v9638_v8  ;;  %v11078_v58 = vand.u32 4294901760, %v9773_v16 }
 0x249   :  { %vm5170_vm14 = vcmp.lt.s32.totalorder %v9596_v43, 0  ;;  %3810 = vmatpush.msra.mxu3 %v3809_v6  ;;  %v5322_v21 = vand.u32 2147483647, %v9892_v1  ;;  %v5325_v35 = vand.u32 2139095040, %v9892_v1  ;;  %v9905_v18 = vsub.f32 %v9836_v31, %v9852_v37 }
 0x24a   :  { %3711 = vmatpush.msra.mxu0 %v11078_v58  ;;  %v5156_v50 = vmul.f32 %v5155_v34, %v9810_v17  ;;  %vm5159_vm15 = vcmp.lt.s32.totalorder %v5158_v19, 2  ;;  %v5164_v8 = vxor.u32 2147483648, %v5148_v61  ;;  %v5273_v16 = vsel %vm5271_vm13, %v5272_v11, %v9887_v59  ;;  %3734 = vmatpush.msra.mxu1 %v9655_v25 }
 0x24b   :  { %3713 = vmatmul.f32.vlgmr.msra.gmra.mxu0 %v6967_v62  ;;  %vm5160_vm0 = vcmp.eq.s32.totalorder %v5158_v19, 0  ;;  %vm5163_vm1 = vcmp.eq.s32.totalorder %v5158_v19, 2  ;;  %vm9914_vm2 = vcmp.eq.s32.totalorder %v6568_v33, 1  ;;  %v5274_v31 = vclz %v5273_v16 }
 0x24c   :  { %3850 = vmatpush.msrb.mxu0 %v9787_v15  ;;  %v5161_v17 = vxor.u32 2147483648, %v5156_v50  ;;  %v5262_v42 = vadd.s32 %v9756_v52, %v9777_v41  ;;  %v9923_v25 = vsel %vm5170_vm14, %v5292_v22, %v5268_v44  ;;  %v5326_v20 = vshrl.u32 %v5325_v35, 23  ;;  %3736 = vmatpush.msra.mxu1 %v9670_v57 }
 0x24d   :  { %v6666_v10 = vadd.s32 4294967294, %v5274_v31  ;;  %v5329_v56 = vand.u32 8388607, %v5322_v21  ;;  %v3813_v36 = vand.u32 4294901760, %v9905_v18  ;;  %v9932_v4 = vand.u32 4294901760, %v9911_v53 }
 0x24e   :  { %3853 = vmatpush.msrb.mxu0 %v9824_v45  ;;  %v5162_v52 = vsel %vm5160_vm0, %v5148_v61, %v5161_v17  ;;  %v5165_v41 = vsel %vm5163_vm1, %v5164_v8, %v5156_v50  ;;  %v6668_v44 = vadd.s32 4294967169, %v5326_v20  ;;  %v9939_v57 = vsub.f32 %v9864_v28, %v9879_v48  ;;  %3738 = vmatpush.msra.mxu1 %v9683_v24 }
 0x24f   :  { %v5166_v33 = vsel %vm5159_vm15, %v5162_v52, %v5165_v41  ;;  %vm6667_vm3 = vcmp.lt.s32.totalorder %v6666_v10, 0  ;;  %v3814_v22 = vsub.f32 %v9905_v18, %v3813_v36  ;;  %3767 = vmatpush.msra.mxu2 %v9932_v4  ;;  %v9948_v6 = vand.u32 4294901760, %v9926_v47 }
 0x250   :  { %3856 = vmatpush.msrb.mxu0 %v9843_v46  ;;  %v5167_v28 = vsel %vm5157_vm12, nan, %v5166_v33  ;;  %v5277_v61 = vsel %vm6667_vm3, 0, %v6666_v10  ;;  %v5332_v34 = vadd.s32 1, %v6668_v44  ;;  %v3819_v24 = vand.u32 4294901760, %v9939_v57  ;;  %3740 = vmatpush.msra.mxu1 %v9764_v0 }
 0x251   :  { %v6600_v19 = vsel %vm9914_vm2, %v9403_v14, %v5167_v28  ;;  %v5278_v11 = vsub.s32 32, %v5277_v61  ;;  %v5282_v58 = vsub.s32 4294967266, %v5277_v61  ;;  %v5330_v35 = vor.u32 8388608, %v5329_v56  ;;  %3769 = vmatpush.msra.mxu2 %v9948_v6  ;;  %3742 = vmatmul.f32.vlgmr.msra.gmra.mxu1 %v6967_v62 }
 0x252   :  { %3859 = vmatpush.msrb.mxu0 %v9859_v3  ;;  %6616 = vst [vmem:[#allocation8 + $0x30] sm:$0xff] %v6600_v19  ;;  %v11081_v50 = vand.u32 2147483647, %v9596_v43  ;;  %vm5333_vm5 = vcmp.gt.s32.totalorder %v5332_v34, 0  ;;  %v3815_v0 = vand.u32 4294901760, %v3814_v22  ;;  %v3820_v14 = vsub.f32 %v9939_v57, %v3819_v24  ;;  %3887 = vmatpush.msrb.mxu1 %v9775_v32 }
 0x253   :  { %v11084_v16 = vand.u32 4294901760, %v9787_v15  ;;  %v5279_v54 = vshll.u32 %v9887_v59, %v5277_v61  ;;  %v5280_v31 = vshrl.u32 %v5262_v42, %v5278_v11  ;;  %v5283_v17 = vadd.s32 127, %v5282_v58  ;;  %3775 = vmatmul.f32.vlgmr.msra.gmra.mxu2 %v7040_v60 }
 0x254   :  { %vm9962_vm4 = vcmp.le.f32.partialorder %v11081_v50, 0.7853982  ;;  %v5334_v20 = vsel %vm5333_vm5, %v5332_v34, 0  ;;  %3862 = vmatpush.msrb.mxu0 %v9905_v18  ;;  %3816 = vmatpush.msra.mxu3 %v3815_v0  ;;  %v9980_v41 = vshll.u32 %v5330_v35, 8  ;;  %v3821_v59 = vand.u32 4294901760, %v3820_v14 }
 0x255   :  { %3920 = vmatpush.msrb.mxu2 %v11084_v16  ;;  %v5295_v10 = vsel %vm9962_vm4, 0, %v9923_v25  ;;  %v5336_v56 = vand.u32 31, %v5334_v20  ;;  %v5281_v15 = vor.u32 %v5280_v31, %v5279_v54  ;;  %v5284_v52 = vshll.u32 %v5283_v17, 23  ;;  %3889 = vmatpush.msrb.mxu1 %v9790_v7 }
 0x256   :  { %3865 = vmatpush.msrb.mxu0 %v9939_v57  ;;  %v9984_v60 = vshrl.u32 %v5334_v20, 5  ;;  %3822 = vmatpush.msra.mxu3 %v3821_v59  ;;  %v9994_v22 = vsub.f32 %v9911_v53, %v9932_v4  ;;  %v5371_v54 = vand.u32 65535, %v9980_v41  ;;  %vm5311_vm0 = vweird.f32 %v9596_v43 }
 0x257   :  { %3924 = vmatpush.msrb.mxu2 %v3795_v27  ;;  %v5337_v42 = vsub.s32 32, %v5336_v56  ;;  %v5339_v44 = vshll.u32 %v11029_v30, %v5336_v56  ;;  %v5342_v25 = vshll.u32 %v11030_v2, %v5336_v56  ;;  %v5285_v45 = vor.u32 4788187, %v5284_v52  ;;  %3891 = vmatpush.msrb.mxu1 %v9814_v51 }
 0x258   :  { %v5345_v27 = vshll.u32 %v11031_v49, %v5336_v56  ;;  %v5348_v33 = vshll.u32 %v11032_v39, %v5336_v56  ;;  %v5288_v28 = vcvt.s32.f32 %v5281_v15  ;;  %v5351_v11 = vshll.u32 %v11046_v12, %v5336_v56  ;;  %3868 = vmatpush.msrb.mxu0 %v9994_v22 }
 0x259   :  { %3928 = vmatpush.msrb.mxu2 %v3801_v63  ;;  %v5340_v61 = vshrl.u32 %v11030_v2, %v5337_v42  ;;  %v5343_v34 = vshrl.u32 %v11031_v49, %v5337_v42  ;;  %v5346_v46 = vshrl.u32 %v11032_v39, %v5337_v42  ;;  %v5286_v63 = vand.u32 2147483647, %v5285_v45  ;;  %3893 = vmatpush.msrb.mxu1 %v9834_v55 }
 0x25a   :  { %v5349_v19 = vshrl.u32 %v11046_v12, %v5337_v42  ;;  %v5352_v53 = vshrl.u32 %v11036_v29, %v5337_v42  ;;  %vm5354_vm6 = vcmp.lt.s32.totalorder %v9984_v60, 1  ;;  %vm5356_vm7 = vcmp.lt.s32.totalorder %v9984_v60, 3 }
 0x25b   :  { %3932 = vmatpush.msrb.mxu2 %v3807_v9  ;;  %v5341_v58 = vor.u32 %v5340_v61, %v5339_v44  ;;  %v10007_v35 = vor.u32 %v5343_v34, %v5342_v25  ;;  %v5347_v50 = vor.u32 %v5346_v46, %v5345_v27  ;;  %v5289_v3 = vmul.f32 %v5288_v28, %v5286_v63  ;;  %v2354_v63 = vpop.f32.mrf.mxu2 }
 0x25c   :  { %v10012_v9 = vand.u32 3, %v5295_v10  ;;  %v5350_v0 = vor.u32 %v5349_v19, %v5348_v33  ;;  %v5353_v14 = vor.u32 %v5352_v53, %v5351_v11  ;;  %3895 = vmatpush.msrb.mxu1 %v9852_v37  ;;  %vm5357_vm8 = vcmp.lt.s32.totalorder %v9984_v60, 4 }
 0x25d   :  { %3936 = vmatpush.msrb.mxu2 %v3813_v36  ;;  %v5362_v16 = vsel %vm5354_vm6, %v5341_v58, %v10007_v35  ;;  %v5290_v18 = vxor.u32 2147483648, %v5289_v3  ;;  %v5338_v36 = vshrl.u32 %v11029_v30, %v5337_v42  ;;  %v5366_v17 = vsel %vm5354_vm6, %v10007_v35, %v5347_v50 }
 0x25e   :  { %v5363_v31 = vsel %vm5357_vm8, %v5350_v0, 920167782  ;;  %3897 = vmatpush.msrb.mxu1 %v9879_v48  ;;  %vm5355_vm9 = vcmp.lt.s32.totalorder %v9984_v60, 2  ;;  %v5367_v57 = vsel %vm5357_vm8, %v5353_v14, 1326507024  ;;  %v5372_v52 = vshrl.u32 %v9980_v41, 16 }
 0x25f   :  { %3940 = vmatpush.msrb.mxu2 %v3819_v24  ;;  %v5364_v20 = vsel %vm5356_vm7, %v5347_v50, %v5363_v31  ;;  %v3825_v24 = vand.u32 4294901760, %v9994_v22  ;;  %v5291_v10 = vsel %vm5170_vm14, %v5290_v18, %v5289_v3  ;;  %v5368_v15 = vsel %vm5356_vm7, %v5350_v0, %v5367_v57  ;;  %v2415_v18 = vpop.f32.mrf.mxu3 }
 0x260   :  { %v5365_v56 = vsel %vm5355_vm9, %v5362_v16, %v5364_v20  ;;  %3899 = vmatpush.msrb.mxu1 %v9932_v4  ;;  %v10047_v59 = vsel %vm9962_vm4, %v9596_v43, %v5291_v10  ;;  %v5369_v42 = vsel %vm5355_vm9, %v5366_v17, %v5368_v15  ;;  %v6569_v27 = vperm.slane %v8347_v40, 7 }
 0x261   :  { %v5395_v44 = vand.u32 65535, %v5365_v56  ;;  %v5396_v25 = vshrl.u32 %v5365_v56, 16  ;;  %3944 = vmatpush.msrb.mxu2 %v3825_v24  ;;  %v5296_v45 = vmul.f32 %v10047_v59, %v10047_v59  ;;  %v5373_v33 = vand.u32 65535, %v5369_v42 }
 0x262   :  { %v5374_v28 = vshrl.u32 %v5369_v42, 16  ;;  %3901 = vmatpush.msrb.mxu1 %v9948_v6  ;;  %v10057_v8 = vsel %vm5354_vm6, %v5338_v36, %v5341_v58  ;;  %v5359_v61 = vsel %vm5357_vm8, %v5347_v50, 2102212464  ;;  %vm5314_vm13 = vcmp.eq.s32.totalorder %v10012_v9, 0 }
 0x263   :  { %v10061_v34 = vmul.u32 %v5396_v25, %v5371_v54  ;;  %v10063_v46 = vmul.u32 %v5395_v44, %v5372_v52  ;;  %3905 = vmatmul.f32.vlgmr.msrb.gmra.mxu1 %v7003_v38  ;;  %v5297_v19 = vmul.f32 -0.001358992, %v5296_v45  ;;  %v5304_v11 = vmul.f32 -0.00019511016, %v5296_v45 }
 0x264   :  { %v5376_v53 = vmul.u32 %v5374_v28, %v5371_v54  ;;  %v5397_v3 = vmul.u32 %v5395_v44, %v5371_v54  ;;  %v5375_v0 = vmul.u32 %v5373_v33, %v5371_v54  ;;  %v5377_v14 = vmul.u32 %v5373_v33, %v5372_v52  ;;  %v2453_v33 = vpop.f32.mrf.mxu0 }
 0x265   :  { %v5400_v16 = vmul.u32 %v5396_v25, %v5372_v52  ;;  %v5401_v58 = vshll.u32 %v10061_v34, 16  ;;  %v5298_v36 = vadd.f32 0.041655596, %v5297_v19  ;;  %v5305_v31 = vadd.f32 0.008332121, %v5304_v11 }
 0x266   :  { %v5378_v50 = vmul.u32 %v5374_v28, %v5372_v52  ;;  %v5379_v17 = vshll.u32 %v5376_v53, 16  ;;  %v5380_v20 = vshrl.u32 %v5376_v53, 16  ;;  %v5381_v57 = vshll.u32 %v5377_v14, 16 }
 0x267   :  { %v5402_v10 = vshrl.u32 %v10061_v34, 16  ;;  %v5403_v38 = vshll.u32 %v10063_v46, 16  ;;  %v5299_v56 = vmul.f32 %v5298_v36, %v5296_v45  ;;  %v5306_v15 = vmul.f32 %v5305_v31, %v5296_v45 }
 0x268   :  { %vm5383_vm10 = vc.u32 %v5375_v0, %v5379_v17  ;;  %v5385_v42 = vadd.s32 %v5379_v17, %v5375_v0  ;;  %vm5405_vm11 = vc.u32 %v5397_v3, %v5401_v58  ;;  %v5407_v44 = vadd.s32 %v5401_v58, %v5397_v3  ;;  %v2484_v0 = vpop.f32.mrf.mxu1  ;;  %v2529_v17 = vpop.f32.mrf.mxu2 }
 0x269   :  { %v5384_v54 = vsel %vm5383_vm10, 1, %v11037_v23  ;;  %v3826_v25 = vsub.f32 %v9994_v22, %v3825_v24  ;;  %v5300_v19 = vadd.f32 -0.4999988, %v5299_v56  ;;  %v5307_v52 = vadd.f32 -0.16666654, %v5306_v15 }
 0x26a   :  { %v5386_v28 = vadd.s32 %v5384_v54, %v5378_v50  ;;  %vm5387_vm12 = vc.u32 %v5385_v42, %v5381_v57  ;;  %v5382_v34 = vshrl.u32 %v5377_v14, 16  ;;  %v5406_v53 = vsel %vm5405_vm11, 1, %v11037_v23 }
 0x26b   :  { %v5388_v11 = vsel %vm5387_vm12, 1, %v11037_v23  ;;  %vm5409_vm14 = vc.u32 %v5407_v44, %v5403_v38  ;;  %v5301_v36 = vmul.f32 %v5300_v19, %v5296_v45  ;;  %v5308_v31 = vmul.f32 %v5307_v52, %v5296_v45  ;;  %v2558_v52 = vpop.f32.mrf.mxu3 }
 0x26c   :  { %vm5313_vm15 = vcmp.lt.s32.totalorder %v10012_v9, 2  ;;  %v5390_v3 = vadd.s32 %v5388_v11, %v5386_v28  ;;  %v5408_v22 = vadd.s32 %v5406_v53, %v5400_v16  ;;  %v5410_v24 = vsel %vm5409_vm14, 1, %v11037_v23 }
 0x26d   :  { %v3827_v58 = vand.u32 4294901760, %v3826_v25  ;;  %v3830_v14 = vsub.f32 %v9926_v47, %v9948_v6  ;;  %v2416_v50 = vadd.f32 %v2415_v18, %v2354_v63  ;;  %v5302_v57 = vadd.f32 1.0, %v5301_v36 }
 0x26e   :  { %v5309_v56 = vadd.f32 1.0, %v5308_v31  ;;  %v5391_v15 = vadd.s32 %v5390_v3, %v5380_v20  ;;  %v5412_v42 = vadd.s32 %v5410_v24, %v5408_v22  ;;  %v5360_v45 = vsel %vm5356_vm7, %v10007_v35, %v5359_v61 }
 0x26f   :  { %v5404_v16 = vshrl.u32 %v10063_v46, 16  ;;  %3828 = vmatpush.msra.mxu3 %v3827_v58  ;;  %v3831_v54 = vand.u32 4294901760, %v3830_v14  ;;  %v2454_v19 = vadd.f32 %v2453_v33, %v2416_v50  ;;  %3871 = vmatpush.msrb.mxu0 %v3830_v14  ;;  %v5318_v47 = vxor.u32 2147483648, %v5302_v57  ;;  %v2591_v46 = vpop.f32.mrf.mxu0 }
 0x270   :  { %v5310_v25 = vmul.f32 %v5309_v56, %v10047_v59  ;;  %v10084_v63 = vadd.s32 %v5391_v15, %v5382_v34  ;;  %v5413_v18 = vadd.s32 %v5412_v42, %v5402_v10  ;;  %3874 = vmatmul.f32.vlgmr.msrb.gmra.mxu0 %v6988_v13  ;;  %vm5317_vm1 = vcmp.eq.s32.totalorder %v10012_v9, 2  ;;  %v2652_v34 = vpop.f32.mrf.mxu1  ;;  %v2690_v31 = vpop.f32.mrf.mxu2 }
 0x271   :  { %v10088_v20 = vadd.s32 %v5407_v44, %v5403_v38  ;;  %v3832_v35 = vsub.f32 %v3830_v14, %v3831_v54  ;;  %v2485_v61 = vadd.f32 %v2484_v0, %v2454_v19  ;;  %3948 = vmatpush.msrb.mxu2 %v3831_v54  ;;  %vm10092_vm2 = vcmp.eq.s32.totalorder %v6569_v27, 1 }
 0x272   :  { %v5315_v28 = vxor.u32 2147483648, %v5310_v25  ;;  %v5361_v59 = vsel %vm5355_vm9, %v10057_v8, %v5360_v45  ;;  %v5414_v13 = vadd.s32 %v5413_v18, %v5404_v16  ;;  %3950 = vmatmul.f32.vlgmr.msrb.gmra.mxu2 %v6967_v62  ;;  %v3997_v44 = vperm.slane %v9845_v26, 1 }
 0x273   :  { %vm5417_vm3 = vc.u32 %v10084_v63, %v10088_v20  ;;  %v3833_v10 = vand.u32 4294901760, %v3832_v35  ;;  %v2530_v38 = vadd.f32 %v2529_v17, %v2485_v61  ;;  %v5319_v27 = vsel %vm5317_vm1, %v5318_v47, %v5310_v25  ;;  %v2721_v14 = vpop.f32.mrf.mxu3 }
 0x274   :  { %v5316_v40 = vsel %vm5314_vm13, %v5302_v57, %v5315_v28  ;;  %v5418_v11 = vadd.s32 1, %v5414_v13  ;;  %v2653_v60 = vadd.f32 %v2652_v34, %v2591_v46  ;;  %v5415_v53 = vmul.u32 %v9980_v41, %v5361_v59 }
 0x275   :  { %v5320_v8 = vsel %vm5313_vm15, %v5316_v40, %v5319_v27  ;;  %3834 = vmatpush.msra.mxu3 %v3833_v10  ;;  %v2559_v0 = vadd.f32 %v2558_v52, %v2530_v38  ;;  %v4051_v36 = vperm.slane %v9847_v5, 1  ;;  %vm5324_vm6 = vcmp.lt.s32.totalorder %v9892_v1, 0 }
 0x276   :  { %v5321_v3 = vsel %vm5311_vm0, nan, %v5320_v8  ;;  %v5419_v22 = vsel %vm5417_vm3, %v5418_v11, %v5414_v13  ;;  %v2691_v24 = vadd.f32 %v2690_v31, %v2653_v60  ;;  %3836 = vmatmul.f32.vlgmr.msra.gmra.mxu3 %v6967_v62  ;;  %vm10140_vm7 = vcmp.le.f32.partialorder %v5322_v21, 0.7853982 }
 0x277   :  { %3963 = vmatpush.msrb.mxu3 %v9775_v32  ;;  %v6601_v9 = vsel %vm10092_vm2, %v9596_v43, %v5321_v3  ;;  %v5420_v41 = vadd.s32 %v5419_v22, %v5415_v53  ;;  %v4029_v58 = vmul.f32 %v3997_v44, %v2559_v0  ;;  %v2766_v56 = vpop.f32.mrf.mxu0  ;;  %v5416_v33 = vadd.s32 %v10088_v20, %v10084_v63 }
 0x278   :  { %6617 = vst [vmem:[#allocation8 + $0x38] sm:$0xff] %v6601_v9  ;;  %v2722_v50 = vadd.f32 %v2721_v14, %v2691_v24  ;;  %v2795_v16 = vpop.f32.mrf.mxu1 }
 0x279   :  { %3965 = vmatpush.msrb.mxu3 %v9790_v7  ;;  %v5421_v17 = vadd.s32 536870912, %v5420_v41  ;;  %v10122_v57 = vadd.f32 %v4051_v36, %v4029_v58  ;;  %v6557_v58 = vld [vmem:[#allocation7 + $0x22] ss:$4 sm:$0xff] }
 0x27a   :  { %v2767_v43 = vadd.f32 %v2766_v56, %v2722_v50  ;;  %vm6559_vm12 = vcmp.gt.f32.partialorder %v6557_v58, 0.5 }
 0x27b   :  { %3967 = vmatpush.msrb.mxu3 %v9814_v51  ;;  %v5422_v32 = vshrl.u32 %v5421_v17, 30  ;;  %v5479_v15 = vand.u32 2139095040, %v10122_v57  ;;  %v5476_v7 = vand.u32 2147483647, %v10122_v57  ;;  %v3998_v51 = vperm.slane %v9845_v26, 2 }
 0x27c   :  { %v2796_v52 = vadd.f32 %v2795_v16, %v2767_v43 }
 0x27d   :  { %3969 = vmatpush.msrb.mxu3 %v9834_v55  ;;  %v5423_v42 = vshll.u32 %v5422_v32, 30  ;;  %v5480_v45 = vshrl.u32 %v5479_v15, 23  ;;  %v5446_v18 = vsub.s32 4, %v5422_v32  ;;  %v5483_v35 = vand.u32 8388607, %v5476_v7 }
 0x27e   :  { %v4030_v61 = vmul.f32 %v3998_v51, %v2796_v52 }
 0x27f   :  { %3971 = vmatpush.msrb.mxu3 %v9852_v37  ;;  %v5424_v54 = vsub.s32 %v5420_v41, %v5423_v42  ;;  %v6671_v19 = vadd.s32 4294967169, %v5480_v45 }
 0x281   :  { %3973 = vmatpush.msrb.mxu3 %v9879_v48  ;;  %vm5425_vm4 = vcmp.lt.s32.totalorder %v5424_v54, 0  ;;  %v5426_v25 = vsub.s32 0, %v5424_v54  ;;  %v5486_v47 = vadd.s32 1, %v6671_v19  ;;  %v4052_v48 = vperm.slane %v9847_v5, 2 }
 0x282   :  { %v5484_v5 = vor.u32 8388608, %v5483_v35 }
 0x283   :  { %3975 = vmatpush.msrb.mxu3 %v9932_v4  ;;  %v5427_v55 = vsel %vm5425_vm4, %v5426_v25, %v5424_v54  ;;  %vm5487_vm5 = vcmp.gt.s32.totalorder %v5486_v47, 0  ;;  %v10150_v13 = vadd.f32 %v4052_v48, %v4030_v61  ;;  %v10186_v48 = vsel %vm6559_vm12, 1, %v11037_v23 }
 0x284   :  { %v5428_v37 = vclz %v5427_v55  ;;  %v5488_v46 = vsel %vm5487_vm5, %v5486_v47, 0  ;;  %v10170_v43 = vshll.u32 %v5484_v5, 8 }
 0x285   :  { %3977 = vmatpush.msrb.mxu3 %v9948_v6  ;;  %v5490_v28 = vand.u32 31, %v5488_v46  ;;  %v5447_v6 = vsel %vm5324_vm6, %v5446_v18, %v5422_v32  ;;  %v10148_v59 = vshrl.u32 %v5488_v46, 5  ;;  %v5633_v56 = vand.u32 2139095040, %v10150_v13 }
 0x286   :  { %3979 = vmatmul.f32.vlgmr.msrb.gmra.mxu3 %v6967_v62  ;;  %v6669_v26 = vadd.s32 4294967294, %v5428_v37  ;;  %v5449_v3 = vsel %vm10140_vm7, 0, %v5447_v6  ;;  %v5526_v6 = vshrl.u32 %v10170_v43, 16 }
 0x287   :  { %v5491_v62 = vsub.s32 32, %v5490_v28  ;;  %v5493_v38 = vshll.u32 %v11029_v30, %v5490_v28  ;;  %v5496_v21 = vshll.u32 %v11030_v2, %v5490_v28  ;;  %v5499_v44 = vshll.u32 %v11031_v49, %v5490_v28 }
 0x288   :  { %vm6670_vm8 = vcmp.lt.s32.totalorder %v6669_v26, 0  ;;  %v5502_v63 = vshll.u32 %v11032_v39, %v5490_v28  ;;  %v5505_v20 = vshll.u32 %v11046_v12, %v5490_v28  ;;  %vm5508_vm9 = vcmp.lt.s32.totalorder %v10148_v59, 1 }
 0x289   :  { %v5431_v10 = vsel %vm6670_vm8, 0, %v6669_v26  ;;  %v5494_v27 = vshrl.u32 %v11030_v2, %v5491_v62  ;;  %v5497_v11 = vshrl.u32 %v11031_v49, %v5491_v62  ;;  %v5500_v60 = vshrl.u32 %v11032_v39, %v5491_v62 }
 0x28a   :  { %v5432_v34 = vsub.s32 32, %v5431_v10  ;;  %v5436_v40 = vsub.s32 4294967266, %v5431_v10  ;;  %v5503_v8 = vshrl.u32 %v11046_v12, %v5491_v62  ;;  %v5433_v53 = vshll.u32 %v5424_v54, %v5431_v10 }
 0x28b   :  { %v5506_v31 = vshrl.u32 %v11036_v29, %v5491_v62  ;;  %v5495_v22 = vor.u32 %v5494_v27, %v5493_v38  ;;  %v5498_v24 = vor.u32 %v5497_v11, %v5496_v21  ;;  %v5501_v14 = vor.u32 %v5500_v60, %v5499_v44 }
 0x28c   :  { %v5434_v0 = vshrl.u32 %v5416_v33, %v5432_v34  ;;  %v5437_v36 = vadd.s32 127, %v5436_v40  ;;  %v5504_v50 = vor.u32 %v5503_v8, %v5502_v63  ;;  %vm5510_vm10 = vcmp.lt.s32.totalorder %v10148_v59, 3 }
 0x28d   :  { %v5507_v17 = vor.u32 %v5506_v31, %v5505_v20  ;;  %v10167_v15 = vand.u32 3, %v5449_v3  ;;  %vm5511_vm11 = vcmp.lt.s32.totalorder %v10148_v59, 4  ;;  %vm5509_vm13 = vcmp.lt.s32.totalorder %v10148_v59, 2 }
 0x28e   :  { %v5435_v9 = vor.u32 %v5434_v0, %v5433_v53  ;;  %v5438_v41 = vshll.u32 %v5437_v36, 23  ;;  %v5516_v42 = vsel %vm5508_vm9, %v5495_v22, %v5498_v24  ;;  %v5517_v45 = vsel %vm5511_vm11, %v5504_v50, 920167782 }
 0x28f   :  { %v5518_v19 = vsel %vm5510_vm10, %v5501_v14, %v5517_v45  ;;  %v5520_v52 = vsel %vm5508_vm9, %v5498_v24, %v5501_v14  ;;  %v5492_v51 = vshrl.u32 %v11029_v30, %v5491_v62  ;;  %v5521_v47 = vsel %vm5511_vm11, %v5507_v17, 1326507024 }
 0x290   :  { %v5439_v32 = vor.u32 4788187, %v5438_v41  ;;  %v5442_v54 = vcvt.s32.f32 %v5435_v9  ;;  %v5519_v25 = vsel %vm5509_vm13, %v5516_v42, %v5518_v19  ;;  %v5634_v55 = vshrl.u32 %v5633_v56, 23 }
 0x291   :  { %v5513_v35 = vsel %vm5511_vm11, %v5501_v14, 2102212464  ;;  %v5522_v37 = vsel %vm5510_vm10, %v5504_v50, %v5521_v47  ;;  %v5550_v61 = vshrl.u32 %v5519_v25, 16  ;;  %v5525_v26 = vand.u32 65535, %v10170_v43 }
 0x292   :  { %v5440_v16 = vand.u32 2147483647, %v5439_v32  ;;  %v5523_v46 = vsel %vm5509_vm13, %v5520_v52, %v5522_v37  ;;  %v5549_v28 = vand.u32 65535, %v5519_v25  ;;  %v5512_v10 = vsel %vm5508_vm9, %v5492_v51, %v5495_v22 }
 0x293   :  { %v5527_v5 = vand.u32 65535, %v5523_v46  ;;  %v5528_v62 = vshrl.u32 %v5523_v46, 16  ;;  %v5514_v38 = vsel %vm5510_vm10, %v5498_v24, %v5513_v35  ;;  %v5552_v21 = vmul.u32 %v5550_v61, %v5525_v26 }
 0x294   :  { %v5443_v18 = vmul.f32 %v5442_v54, %v5440_v16  ;;  %v6674_v44 = vadd.s32 4294967169, %v5634_v55  ;;  %v6570_v40 = vperm.slane %v10186_v48, 0  ;;  %v5551_v11 = vmul.u32 %v5549_v28, %v5525_v26 }
 0x295   :  { %v5530_v63 = vmul.u32 %v5528_v62, %v5525_v26  ;;  %v5531_v20 = vmul.u32 %v5527_v5, %v5526_v6  ;;  %v5553_v60 = vmul.u32 %v5549_v28, %v5526_v6  ;;  %v5555_v8 = vshll.u32 %v5552_v21, 16 }
 0x296   :  { %v5444_v33 = vxor.u32 2147483648, %v5443_v18  ;;  %v10208_v0 = vsel %vm5509_vm13, %v5512_v10, %v5514_v38  ;;  %v5529_v36 = vmul.u32 %v5527_v5, %v5525_v26  ;;  %v5532_v3 = vmul.u32 %v5528_v62, %v5526_v6 }
 0x297   :  { %v5533_v31 = vshll.u32 %v5530_v63, 16  ;;  %v5535_v22 = vshll.u32 %v5531_v20, 16  ;;  %v5554_v24 = vmul.u32 %v5550_v61, %v5526_v6  ;;  %vm5559_vm14 = vc.u32 %v5551_v11, %v5555_v8 }
 0x298   :  { %v5445_v34 = vsel %vm5324_vm6, %v5444_v33, %v5443_v18  ;;  %v5557_v14 = vshll.u32 %v5553_v60, 16  ;;  %v5560_v50 = vsel %vm5559_vm14, 1, %v11037_v23  ;;  %v5561_v17 = vadd.s32 %v5555_v8, %v5551_v11 }
 0x299   :  { %v10202_v27 = vsel %vm10140_vm7, %v9892_v1, %v5445_v34  ;;  %vm5537_vm15 = vc.u32 %v5529_v36, %v5533_v31  ;;  %v5539_v41 = vadd.s32 %v5533_v31, %v5529_v36  ;;  %v5534_v42 = vshrl.u32 %v5530_v63, 16 }
 0x29a   :  { %v5450_v53 = vmul.f32 %v10202_v27, %v10202_v27  ;;  %v5538_v58 = vsel %vm5537_vm15, 1, %v11037_v23  ;;  %v5562_v16 = vadd.s32 %v5560_v50, %v5554_v24  ;;  %vm5563_vm1 = vc.u32 %v5561_v17, %v5557_v14 }
 0x29b   :  { %v5540_v32 = vadd.s32 %v5538_v58, %v5532_v3  ;;  %vm5541_vm0 = vc.u32 %v5539_v41, %v5535_v22  ;;  %v5564_v51 = vsel %vm5563_vm1, 1, %v11037_v23  ;;  %v5556_v25 = vshrl.u32 %v5552_v21, 16 }
 0x29c   :  { %v5451_v9 = vmul.f32 -0.001358992, %v5450_v53  ;;  %v5458_v4 = vmul.f32 -0.00019511016, %v5450_v53  ;;  %v5542_v45 = vsel %vm5541_vm0, 1, %v11037_v23  ;;  %v5566_v47 = vadd.s32 %v5564_v51, %v5562_v16 }
 0x29d   :  { %v5544_v52 = vadd.s32 %v5542_v45, %v5540_v32  ;;  %v5630_v55 = vand.u32 2147483647, %v10150_v13  ;;  %v5640_v18 = vadd.s32 1, %v6674_v44  ;;  %vm5471_vm2 = vcmp.eq.s32.totalorder %v10167_v15, 2 }
 0x29e   :  { %v5452_v56 = vadd.f32 0.041655596, %v5451_v9  ;;  %v5459_v59 = vadd.f32 0.008332121, %v5458_v4  ;;  %v5536_v61 = vshrl.u32 %v5531_v20, 16  ;;  %vm5468_vm3 = vcmp.eq.s32.totalorder %v10167_v15, 0 }
 0x29f   :  { %v5545_v46 = vadd.s32 %v5544_v52, %v5534_v42  ;;  %v5558_v26 = vshrl.u32 %v5553_v60, 16  ;;  %v10217_v28 = vadd.s32 %v5561_v17, %v5557_v14  ;;  %v5567_v33 = vadd.s32 %v5566_v47, %v5556_v25  ;;  %v2889_v52 = vpop.f32.mrf.mxu3 }
 0x2a0   :  { %v5453_v54 = vmul.f32 %v5452_v56, %v5450_v53  ;;  %v5460_v19 = vmul.f32 %v5459_v59, %v5450_v53  ;;  %vm5641_vm4 = vcmp.gt.s32.totalorder %v5640_v18, 0  ;;  %vm5467_vm5 = vcmp.lt.s32.totalorder %v10167_v15, 2 }
 0x2a1   :  { %v10220_v62 = vadd.s32 %v5545_v46, %v5536_v61  ;;  %v5642_v10 = vsel %vm5641_vm4, %v5640_v18, 0  ;;  %vm5465_vm6 = vweird.f32 %v9892_v1  ;;  %vm10223_vm7 = vcmp.eq.s32.totalorder %v6570_v40, 1 }
 0x2a2   :  { %v5454_v35 = vadd.f32 -0.4999988, %v5453_v54  ;;  %v5461_v37 = vadd.f32 -0.16666654, %v5460_v19  ;;  %v5568_v21 = vadd.s32 %v5567_v33, %v5558_v26  ;;  %v5569_v44 = vmul.u32 %v10170_v43, %v10208_v0 }
 0x2a3   :  { %v5644_v34 = vand.u32 31, %v5642_v10  ;;  %vm5571_vm8 = vc.u32 %v10220_v62, %v10217_v28  ;;  %v5637_v11 = vand.u32 8388607, %v5630_v55  ;;  %v10233_v8 = vshrl.u32 %v5642_v10, 5 }
 0x2a4   :  { %v5455_v6 = vmul.f32 %v5454_v35, %v5450_v53  ;;  %v5462_v5 = vmul.f32 %v5461_v37, %v5450_v53  ;;  %v5572_v60 = vadd.s32 1, %v5568_v21  ;;  %v2828_v35 = vpop.f32.mrf.mxu2  ;;  %vm5478_vm4 = vcmp.lt.s32.totalorder %v10122_v57, 0 }
 0x2a5   :  { %v5645_v40 = vsub.s32 32, %v5644_v34  ;;  %v5647_v53 = vshll.u32 %v11029_v30, %v5644_v34  ;;  %v5650_v43 = vshll.u32 %v11030_v2, %v5644_v34  ;;  %v5653_v0 = vshll.u32 %v11031_v49, %v5644_v34 }
 0x2a6   :  { %v5456_v63 = vadd.f32 1.0, %v5455_v6  ;;  %v5463_v20 = vadd.f32 1.0, %v5462_v5  ;;  %v5573_v3 = vsel %vm5571_vm8, %v5572_v60, %v5568_v21  ;;  %v5656_v9 = vshll.u32 %v11032_v39, %v5644_v34  ;;  %v2927_v6 = vpop.f32.mrf.mxu0 }
 0x2a7   :  { %v5648_v22 = vshrl.u32 %v11030_v2, %v5645_v40  ;;  %v5651_v24 = vshrl.u32 %v11031_v49, %v5645_v40  ;;  %v5574_v41 = vadd.s32 %v5573_v3, %v5569_v44  ;;  %v5638_v58 = vor.u32 8388608, %v5637_v11 }
 0x2a8   :  { %v5464_v36 = vmul.f32 %v5463_v20, %v10202_v27  ;;  %v5472_v31 = vxor.u32 2147483648, %v5456_v63  ;;  %v5654_v14 = vshrl.u32 %v11032_v39, %v5645_v40  ;;  %v5657_v17 = vshrl.u32 %v11046_v12, %v5645_v40 }
 0x2a9   :  { %v10245_v50 = vor.u32 %v5648_v22, %v5647_v53  ;;  %v5659_v56 = vshll.u32 %v11046_v12, %v5644_v34  ;;  %v5575_v32 = vadd.s32 536870912, %v5574_v41  ;;  %v10251_v42 = vor.u32 %v5651_v24, %v5650_v43  ;;  %v2958_v43 = vpop.f32.mrf.mxu1 }
 0x2aa   :  { %v5469_v4 = vxor.u32 2147483648, %v5464_v36  ;;  %v5473_v27 = vsel %vm5471_vm2, %v5472_v31, %v5464_v36  ;;  %v5660_v45 = vshrl.u32 %v11036_v29, %v5645_v40  ;;  %v5655_v54 = vor.u32 %v5654_v14, %v5653_v0 }
 0x2ab   :  { %v5658_v19 = vor.u32 %v5657_v17, %v5656_v9  ;;  %vm5662_vm9 = vcmp.lt.s32.totalorder %v10233_v8, 1  ;;  %v10259_v25 = vshrl.u32 %v5575_v32, 30  ;;  %vm5664_vm10 = vcmp.lt.s32.totalorder %v10233_v8, 3 }
 0x2ac   :  { %v5470_v59 = vsel %vm5468_vm3, %v5456_v63, %v5469_v4  ;;  %v5661_v47 = vor.u32 %v5660_v45, %v5659_v56  ;;  %vm5665_vm11 = vcmp.lt.s32.totalorder %v10233_v8, 4  ;;  %v10266_v15 = vshll.u32 %v5638_v58, 8 }
 0x2ad   :  { %v5474_v16 = vsel %vm5467_vm5, %v5470_v59, %v5473_v27  ;;  %v5577_v37 = vshll.u32 %v10259_v25, 30  ;;  %v5670_v61 = vsel %vm5662_vm9, %v10245_v50, %v10251_v42  ;;  %v2890_v46 = vadd.f32 %v2889_v52, %v2828_v35 }
 0x2ae   :  { %v5475_v51 = vsel %vm5465_vm6, nan, %v5474_v16  ;;  %v5671_v26 = vsel %vm5665_vm11, %v5658_v19, 920167782  ;;  %v5675_v33 = vsel %vm5665_vm11, %v5661_v47, 1326507024  ;;  %vm5663_vm12 = vcmp.lt.s32.totalorder %v10233_v8, 2 }
 0x2af   :  { %v6602_v18 = vsel %vm10223_vm7, %v9892_v1, %v5475_v51  ;;  %v5674_v1 = vsel %vm5662_vm9, %v10251_v42, %v5655_v54  ;;  %v10280_v5 = vsub.s32 %v5574_v41, %v5577_v37  ;;  %v5672_v10 = vsel %vm5664_vm10, %v5655_v54, %v5671_v26 }
 0x2b0   :  { %6618 = vst [vmem:[#allocation8 + $0x40] sm:$0xff] %v6602_v18  ;;  %v5673_v38 = vsel %vm5663_vm12, %v5670_v61, %v5672_v10  ;;  %v5676_v21 = vsel %vm5664_vm10, %v5658_v19, %v5675_v33  ;;  %v5679_v44 = vand.u32 65535, %v10266_v15  ;;  %v5680_v34 = vshrl.u32 %v10266_v15, 16  ;;  %v3003_v19 = vpop.f32.mrf.mxu2 }
 0x2b1   :  { %vm5579_vm13 = vcmp.lt.s32.totalorder %v10280_v5, 0  ;;  %v5580_v63 = vsub.s32 0, %v10280_v5  ;;  %v5677_v20 = vsel %vm5663_vm12, %v5674_v1, %v5676_v21  ;;  %v2928_v11 = vadd.f32 %v2927_v6, %v2890_v46  ;;  %v3032_v46 = vpop.f32.mrf.mxu3 }
 0x2b2   :  { %v5681_v60 = vand.u32 65535, %v5677_v20  ;;  %v5682_v53 = vshrl.u32 %v5677_v20, 16  ;;  %v5703_v36 = vand.u32 65535, %v5673_v38  ;;  %v5704_v31 = vshrl.u32 %v5673_v38, 16 }
 0x2b3   :  { %v5570_v0 = vadd.s32 %v10217_v28, %v10220_v62  ;;  %v5581_v3 = vsel %vm5579_vm13, %v5580_v63, %v10280_v5  ;;  %v5646_v24 = vshrl.u32 %v11029_v30, %v5645_v40  ;;  %v5667_v41 = vsel %vm5665_vm11, %v5655_v54, 2102212464 }
 0x2b4   :  { %v5582_v22 = vclz %v5581_v3  ;;  %v5684_v9 = vmul.u32 %v5682_v53, %v5679_v44  ;;  %v5685_v4 = vmul.u32 %v5681_v60, %v5680_v34  ;;  %v5706_v58 = vmul.u32 %v5704_v31, %v5679_v44  ;;  %v10309_v3 = vld [vmem:[#allocation7 + $0x20] ss:$4 sm:$0xff] }
 0x2b5   :  { %v10301_v14 = vmul.u32 %v5703_v36, %v5680_v34  ;;  %v2959_v27 = vadd.f32 %v2958_v43, %v2928_v11  ;;  %v5683_v56 = vmul.u32 %v5681_v60, %v5679_v44  ;;  %v5686_v59 = vmul.u32 %v5682_v53, %v5680_v34  ;;  %v3126_v11 = vpop.f32.mrf.mxu1 }
 0x2b6   :  { %v6672_v17 = vadd.s32 4294967294, %v5582_v22  ;;  %v5687_v32 = vshll.u32 %v5684_v9, 16  ;;  %v5688_v45 = vshrl.u32 %v5684_v9, 16  ;;  %v5689_v28 = vshll.u32 %v5685_v4, 16  ;;  %v10312_v22 = vld [vmem:[#allocation7 + $0x21] ss:$4 sm:$0xff] }
 0x2b7   :  { %v5705_v62 = vmul.u32 %v5703_v36, %v5679_v44  ;;  %v5709_v16 = vshll.u32 %v5706_v58, 16  ;;  %v5708_v52 = vmul.u32 %v5704_v31, %v5680_v34  ;;  %v5711_v47 = vshll.u32 %v10301_v14, 16  ;;  %v3065_v44 = vpop.f32.mrf.mxu0 }
 0x2b8   :  { %vm6673_vm14 = vcmp.lt.s32.totalorder %v6672_v17, 0  ;;  %vm5691_vm15 = vc.u32 %v5683_v56, %v5687_v32  ;;  %v5693_v40 = vadd.s32 %v5687_v32, %v5683_v56  ;;  %v3004_v33 = vadd.f32 %v3003_v19, %v2959_v27 }
 0x2b9   :  { %v5585_v51 = vsel %vm6673_vm14, 0, %v6672_v17  ;;  %v5692_v54 = vsel %vm5691_vm15, 1, %v11037_v23  ;;  %vm5713_vm0 = vc.u32 %v5705_v62, %v5709_v16  ;;  %v5715_v1 = vadd.s32 %v5709_v16, %v5705_v62 }
 0x2ba   :  { %v5586_v18 = vsub.s32 32, %v5585_v51  ;;  %v5587_v35 = vshll.u32 %v10280_v5, %v5585_v51  ;;  %v5590_v37 = vsub.s32 4294967266, %v5585_v51  ;;  %v5694_v61 = vadd.s32 %v5692_v54, %v5686_v59 }
 0x2bb   :  { %vm5695_vm1 = vc.u32 %v5693_v40, %v5689_v28  ;;  %v5714_v26 = vsel %vm5713_vm0, 1, %v11037_v23  ;;  %v5690_v34 = vshrl.u32 %v5685_v4, 16  ;;  %vm5717_vm2 = vc.u32 %v5715_v1, %v5711_v47  ;;  %v3164_v4 = vpop.f32.mrf.mxu2 }
 0x2bc   :  { %v5588_v6 = vshrl.u32 %v5570_v0, %v5586_v18  ;;  %v5591_v10 = vadd.s32 127, %v5590_v37  ;;  %v5696_v38 = vsel %vm5695_vm1, 1, %v11037_v23  ;;  %v5716_v21 = vadd.s32 %v5714_v26, %v5708_v52  ;;  %v3195_v52 = vpop.f32.mrf.mxu3 }
 0x2bd   :  { %v5698_v63 = vadd.s32 %v5696_v38, %v5694_v61  ;;  %v3033_v20 = vadd.f32 %v3032_v46, %v3004_v33  ;;  %v5710_v53 = vshrl.u32 %v5706_v58, 16  ;;  %v5718_v36 = vsel %vm5717_vm2, 1, %v11037_v23 }
 0x2be   :  { %v5589_v5 = vor.u32 %v5588_v6, %v5587_v35  ;;  %v5592_v60 = vshll.u32 %v5591_v10, 23  ;;  %v5720_v43 = vadd.s32 %v5718_v36, %v5716_v21  ;;  %v3999_v0 = vperm.slane %v10309_v3, 3 }
 0x2bf   :  { %v5699_v31 = vadd.s32 %v5698_v63, %v5688_v45  ;;  %v4053_v9 = vperm.slane %v10312_v22, 3  ;;  %v5666_v17 = vsel %vm5662_vm9, %v5646_v24, %v10245_v50  ;;  %v5668_v58 = vsel %vm5664_vm10, %v10251_v42, %v5667_v41  ;;  %v3240_v37 = vpop.f32.mrf.mxu0 }
 0x2c0   :  { %v5593_v27 = vor.u32 4788187, %v5592_v60  ;;  %v3127_v56 = vadd.f32 %v3126_v11, %v3065_v44  ;;  %v5712_v32 = vshrl.u32 %v10301_v14, 16  ;;  %v5721_v45 = vadd.s32 %v5720_v43, %v5710_v53 }
 0x2c1   :  { %v10321_v59 = vadd.s32 %v5699_v31, %v5690_v34  ;;  %v4031_v28 = vmul.f32 %v3999_v0, %v3033_v20  ;;  %v5596_v16 = vcvt.s32.f32 %v5589_v5  ;;  %v5719_v19 = vadd.s32 %v5715_v1, %v5711_v47  ;;  %v3269_v34 = vpop.f32.mrf.mxu1 }
 0x2c2   :  { %v5594_v62 = vand.u32 2147483647, %v5593_v27  ;;  %v3165_v40 = vadd.f32 %v3164_v4, %v3127_v56  ;;  %v5669_v51 = vsel %vm5663_vm12, %v5666_v17, %v5668_v58  ;;  %v5722_v50 = vadd.s32 %v5721_v45, %v5712_v32 }
 0x2c3   :  { %v10326_v24 = vadd.f32 %v4053_v9, %v4031_v28  ;;  %v5600_v42 = vsub.s32 4, %v10259_v25  ;;  %vm5725_vm3 = vc.u32 %v10321_v59, %v5719_v19  ;;  %v5723_v47 = vmul.u32 %v10266_v15, %v5669_v51 }
 0x2c4   :  { %v5597_v54 = vmul.f32 %v5596_v16, %v5594_v62  ;;  %v5726_v41 = vadd.s32 1, %v5722_v50  ;;  %v3196_v18 = vadd.f32 %v3195_v52, %v3165_v40  ;;  %vm10335_vm5 = vcmp.le.f32.partialorder %v5476_v7, 0.7853982 }
 0x2c5   :  { %v5787_v14 = vand.u32 2139095040, %v10326_v24  ;;  %v5601_v1 = vsel %vm5478_vm4, %v5600_v42, %v10259_v25  ;;  %v5784_v15 = vand.u32 2147483647, %v10326_v24  ;;  %v4000_v53 = vperm.slane %v10309_v3, 4 }
 0x2c6   :  { %v5598_v35 = vxor.u32 2147483648, %v5597_v54  ;;  %v5727_v8 = vsel %vm5725_vm3, %v5726_v41, %v5722_v50  ;;  %v3241_v38 = vadd.f32 %v3240_v37, %v3196_v18  ;;  %v5603_v7 = vsel %vm10335_vm5, 0, %v5601_v1 }
 0x2c7   :  { %v5788_v61 = vshrl.u32 %v5787_v14, 23  ;;  %v5728_v33 = vadd.s32 %v5727_v8, %v5723_v47  ;;  %v5791_v25 = vand.u32 8388607, %v5784_v15  ;;  %v5620_v0 = vand.u32 3, %v5603_v7 }
 0x2c8   :  { %v5599_v26 = vsel %vm5478_vm4, %v5598_v35, %v5597_v54  ;;  %v3270_v60 = vadd.f32 %v3269_v34, %v3241_v38  ;;  %v6571_v17 = vperm.slane %v10186_v48, 1  ;;  %v4054_v28 = vperm.slane %v10312_v22, 4 }
 0x2c9   :  { %v5602_v6 = vsel %vm10335_vm5, %v10122_v57, %v5599_v26  ;;  %v6677_v10 = vadd.s32 4294967169, %v5788_v61  ;;  %v5729_v44 = vadd.s32 536870912, %v5728_v33  ;;  %v5792_v56 = vor.u32 8388608, %v5791_v25 }
 0x2ca   :  { %v5604_v21 = vmul.f32 %v5602_v6, %v5602_v6  ;;  %v4032_v45 = vmul.f32 %v4000_v53, %v3270_v60  ;;  %vm5622_vm8 = vcmp.eq.s32.totalorder %v5620_v0, 0  ;;  %vm5625_vm9 = vcmp.eq.s32.totalorder %v5620_v0, 2 }
 0x2cb   :  { %v5794_v63 = vadd.s32 1, %v6677_v10  ;;  %v10346_v5 = vshrl.u32 %v5729_v44, 30  ;;  %vm5621_vm10 = vcmp.lt.s32.totalorder %v5620_v0, 2  ;;  %vm10360_vm11 = vcmp.eq.s32.totalorder %v6571_v17, 1 }
 0x2cc   :  { %v5605_v20 = vmul.f32 -0.001358992, %v5604_v21  ;;  %v5612_v11 = vmul.f32 -0.00019511016, %v5604_v21  ;;  %v5724_v42 = vadd.s32 %v5719_v19, %v10321_v59  ;;  %vm5619_vm12 = vweird.f32 %v10122_v57 }
 0x2cd   :  { %vm5795_vm6 = vcmp.gt.s32.totalorder %v5794_v63, 0  ;;  %v5731_v43 = vshll.u32 %v10346_v5, 30  ;;  %v10368_v35 = vshll.u32 %v5792_v56, 8  ;;  %v10370_v47 = vadd.f32 %v4054_v28, %v4032_v45 }
 0x2ce   :  { %v5606_v36 = vadd.f32 0.041655596, %v5605_v20  ;;  %v5613_v31 = vadd.f32 0.008332121, %v5612_v11  ;;  %v5796_v9 = vsel %vm5795_vm6, %v5794_v63, 0  ;;  %v5754_v44 = vsub.s32 4, %v10346_v5 }
 0x2cf   :  { %v10353_v58 = vsub.s32 %v5728_v33, %v5731_v43  ;;  %v5798_v32 = vand.u32 31, %v5796_v9  ;;  %v10384_v34 = vshrl.u32 %v5796_v9, 5  ;;  %vm10395_vm14 = vcmp.le.f32.partialorder %v5630_v55, 0.7853982 }
 0x2d0   :  { %v5607_v4 = vmul.f32 %v5606_v36, %v5604_v21  ;;  %v5614_v27 = vmul.f32 %v5613_v31, %v5604_v21  ;;  %vm5632_vm2 = vcmp.lt.s32.totalorder %v10150_v13, 0 }
 0x2d1   :  { %vm5733_vm7 = vcmp.lt.s32.totalorder %v10353_v58, 0  ;;  %v5734_v40 = vsub.s32 0, %v10353_v58  ;;  %v10358_v52 = vsub.s32 32, %v5798_v32  ;;  %v5801_v18 = vshll.u32 %v11029_v30, %v5798_v32 }
 0x2d2   :  { %v5608_v62 = vadd.f32 -0.4999988, %v5607_v4  ;;  %v5615_v16 = vadd.f32 -0.16666654, %v5614_v27  ;;  %v5804_v46 = vshll.u32 %v11030_v2, %v5798_v32  ;;  %v5807_v19 = vshll.u32 %v11031_v49, %v5798_v32 }
 0x2d3   :  { %v5735_v41 = vsel %vm5733_vm7, %v5734_v40, %v10353_v58  ;;  %v5802_v61 = vshrl.u32 %v11030_v2, %v10358_v52  ;;  %v5805_v59 = vshrl.u32 %v11031_v49, %v10358_v52  ;;  %v5808_v1 = vshrl.u32 %v11032_v39, %v10358_v52 }
 0x2d4   :  { %v5609_v51 = vmul.f32 %v5608_v62, %v5604_v21  ;;  %v5616_v50 = vmul.f32 %v5615_v16, %v5604_v21  ;;  %v5736_v14 = vclz %v5735_v41  ;;  %v5810_v38 = vshll.u32 %v11032_v39, %v5798_v32 }
 0x2d5   :  { %v5811_v21 = vshrl.u32 %v11046_v12, %v10358_v52  ;;  %v5803_v63 = vor.u32 %v5802_v61, %v5801_v18  ;;  %v5806_v11 = vor.u32 %v5805_v59, %v5804_v46  ;;  %v5813_v25 = vshll.u32 %v11046_v12, %v5798_v32 }
 0x2d6   :  { %v5610_v37 = vadd.f32 1.0, %v5609_v51  ;;  %v5617_v8 = vadd.f32 1.0, %v5616_v50  ;;  %v6675_v26 = vadd.s32 4294967294, %v5736_v14  ;;  %v5814_v36 = vshrl.u32 %v11036_v29, %v10358_v52 }
 0x2d7   :  { %v5812_v9 = vor.u32 %v5811_v21, %v5810_v38  ;;  %vm5816_vm15 = vcmp.lt.s32.totalorder %v10384_v34, 1  ;;  %vm5818_vm0 = vcmp.lt.s32.totalorder %v10384_v34, 3  ;;  %vm5819_vm1 = vcmp.lt.s32.totalorder %v10384_v34, 4 }
 0x2d8   :  { %v5618_v33 = vmul.f32 %v5617_v8, %v5602_v6  ;;  %v5626_v10 = vxor.u32 2147483648, %v5610_v37  ;;  %vm6676_vm13 = vcmp.lt.s32.totalorder %v6675_v26, 0  ;;  %v5809_v6 = vor.u32 %v5808_v1, %v5807_v19 }
 0x2d9   :  { %v5739_v20 = vsel %vm6676_vm13, 0, %v6675_v26  ;;  %v5815_v28 = vor.u32 %v5814_v36, %v5813_v25  ;;  %v5824_v62 = vsel %vm5816_vm15, %v5803_v63, %v5806_v11  ;;  %v5825_v16 = vsel %vm5819_vm1, %v5812_v9, 920167782 }
 0x2da   :  { %v5623_v7 = vxor.u32 2147483648, %v5618_v33  ;;  %v5740_v60 = vsub.s32 32, %v5739_v20  ;;  %v5744_v53 = vsub.s32 4294967266, %v5739_v20  ;;  %v5627_v43 = vsel %vm5625_vm9, %v5626_v10, %v5618_v33 }
 0x2db   :  { %v5741_v4 = vshll.u32 %v10353_v58, %v5739_v20  ;;  %v5833_v40 = vand.u32 65535, %v10368_v35  ;;  %v5941_v51 = vand.u32 2139095040, %v10370_v47  ;;  %vm5817_vm3 = vcmp.lt.s32.totalorder %v10384_v34, 2 }
 0x2dc   :  { %v5624_v31 = vsel %vm5622_vm8, %v5610_v37, %v5623_v7  ;;  %v5742_v56 = vshrl.u32 %v5724_v42, %v5740_v60  ;;  %v5745_v32 = vadd.s32 127, %v5744_v53  ;;  %v5826_v54 = vsel %vm5818_vm0, %v5809_v6, %v5825_v16 }
 0x2dd   :  { %v5628_v27 = vsel %vm5621_vm10, %v5624_v31, %v5627_v43  ;;  %v5800_v42 = vshrl.u32 %v11029_v30, %v10358_v52  ;;  %v5827_v41 = vsel %vm5817_vm3, %v5824_v62, %v5826_v54  ;;  %v5828_v14 = vsel %vm5816_vm15, %v5806_v11, %v5809_v6 }
 0x2de   :  { %v5629_v45 = vsel %vm5619_vm12, nan, %v5628_v27  ;;  %v5743_v55 = vor.u32 %v5742_v56, %v5741_v4  ;;  %v5746_v58 = vshll.u32 %v5745_v32, 23  ;;  %v5829_v18 = vsel %vm5819_vm1, %v5815_v28, 1326507024 }
 0x2df   :  { %v6603_v0 = vsel %vm10360_vm11, %v10122_v57, %v5629_v45  ;;  %v5755_v57 = vsel %vm5632_vm2, %v5754_v44, %v10346_v5  ;;  %v5830_v5 = vsel %vm5818_vm0, %v5812_v9, %v5829_v18  ;;  %v5858_v61 = vshrl.u32 %v5827_v41, 16 }
 0x2e0   :  { %6619 = vst [vmem:[#allocation8 + $0x48] sm:$0xff] %v6603_v0  ;;  %v5747_v50 = vor.u32 4788187, %v5746_v58  ;;  %v5750_v8 = vcvt.s32.f32 %v5743_v55  ;;  %v5821_v46 = vsel %vm5819_vm1, %v5809_v6, 2102212464  ;;  %v5831_v52 = vsel %vm5817_vm3, %v5828_v14, %v5830_v5 }
 0x2e1   :  { %v5834_v26 = vshrl.u32 %v10368_v35, 16  ;;  %v5857_v59 = vand.u32 65535, %v5827_v41  ;;  %v5835_v1 = vand.u32 65535, %v5831_v52  ;;  %v5836_v33 = vshrl.u32 %v5831_v52, 16 }
 0x2e2   :  { %v5748_v37 = vand.u32 2147483647, %v5747_v50  ;;  %v5942_v10 = vshrl.u32 %v5941_v51, 23  ;;  %v5757_v38 = vsel %vm10395_vm14, 0, %v5755_v57  ;;  %v5820_v21 = vsel %vm5816_vm15, %v5800_v42, %v5803_v63 }
 0x2e3   :  { %v5860_v44 = vmul.u32 %v5858_v61, %v5833_v40  ;;  %v5938_v7 = vand.u32 2147483647, %v10370_v47  ;;  %v5822_v25 = vsel %vm5818_vm0, %v5806_v11, %v5821_v46  ;;  %v5838_v60 = vmul.u32 %v5836_v33, %v5833_v40 }
 0x2e4   :  { %v5751_v19 = vmul.f32 %v5750_v8, %v5748_v37  ;;  %v5839_v53 = vmul.u32 %v5835_v1, %v5834_v26  ;;  %v5859_v6 = vmul.u32 %v5857_v59, %v5833_v40  ;;  %v5861_v36 = vmul.u32 %v5857_v59, %v5834_v26 }
 0x2e5   :  { %v5862_v31 = vmul.u32 %v5858_v61, %v5834_v26  ;;  %v5863_v43 = vshll.u32 %v5860_v44, 16  ;;  %v5837_v9 = vmul.u32 %v5835_v1, %v5833_v40  ;;  %v5841_v27 = vshll.u32 %v5838_v60, 16 }
 0x2e6   :  { %v5752_v20 = vxor.u32 2147483648, %v5751_v19  ;;  %v6680_v56 = vadd.s32 4294967169, %v5942_v10  ;;  %v5840_v32 = vmul.u32 %v5836_v33, %v5834_v26  ;;  %v5843_v45 = vshll.u32 %v5839_v53, 16 }
 0x2e7   :  { %vm5867_vm4 = vc.u32 %v5859_v6, %v5863_v43  ;;  %vm5845_vm5 = vc.u32 %v5837_v9, %v5841_v27  ;;  %v5847_v28 = vadd.s32 %v5841_v27, %v5837_v9  ;;  %v5865_v58 = vshll.u32 %v5861_v36, 16 }
 0x2e8   :  { %v5753_v4 = vsel %vm5632_vm2, %v5752_v20, %v5751_v19  ;;  %v5868_v0 = vsel %vm5867_vm4, 1, %v11037_v23  ;;  %v5846_v55 = vsel %vm5845_vm5, 1, %v11037_v23  ;;  %v5869_v62 = vadd.s32 %v5863_v43, %v5859_v6 }
 0x2e9   :  { %v10447_v63 = vsel %vm10395_vm14, %v10150_v13, %v5753_v4  ;;  %v5870_v16 = vadd.s32 %v5868_v0, %v5862_v31  ;;  %v5848_v17 = vadd.s32 %v5846_v55, %v5840_v32  ;;  %vm5849_vm6 = vc.u32 %v5847_v28, %v5843_v45 }
 0x2ea   :  { %v5758_v11 = vmul.f32 %v10447_v63, %v10447_v63  ;;  %v10453_v50 = vand.u32 3, %v5757_v38  ;;  %v5842_v57 = vshrl.u32 %v5838_v60, 16  ;;  %v5850_v54 = vsel %vm5849_vm6, 1, %v11037_v23 }
 0x2eb   :  { %vm5871_vm7 = vc.u32 %v5869_v62, %v5865_v58  ;;  %v5852_v14 = vadd.s32 %v5850_v54, %v5848_v17  ;;  %v5823_v37 = vsel %vm5817_vm3, %v5820_v21, %v5822_v25  ;;  %v5864_v8 = vshrl.u32 %v5860_v44, 16 }
 0x2ec   :  { %v5759_v40 = vmul.f32 -0.001358992, %v5758_v11  ;;  %v5766_v51 = vmul.f32 -0.00019511016, %v5758_v11  ;;  %v5872_v18 = vsel %vm5871_vm7, 1, %v11037_v23  ;;  %v5948_v61 = vadd.s32 1, %v6680_v56 }
 0x2ed   :  { %v5874_v5 = vadd.s32 %v5872_v18, %v5870_v16  ;;  %v5844_v26 = vshrl.u32 %v5839_v53, 16  ;;  %v5853_v59 = vadd.s32 %v5852_v14, %v5842_v57  ;;  %v5866_v19 = vshrl.u32 %v5861_v36, 16  ;;  %v3363_v18 = vpop.f32.mrf.mxu3 }
 0x2ee   :  { %v5760_v42 = vadd.f32 0.041655596, %v5759_v40  ;;  %v5767_v41 = vadd.f32 0.008332121, %v5766_v51  ;;  %v10459_v1 = vadd.s32 %v5869_v62, %v5865_v58  ;;  %vm5949_vm8 = vcmp.gt.s32.totalorder %v5948_v61, 0 }
 0x2ef   :  { %v5875_v33 = vadd.s32 %v5874_v5, %v5864_v8  ;;  %vm5779_vm9 = vcmp.eq.s32.totalorder %v10453_v50, 2  ;;  %v10462_v20 = vadd.s32 %v5853_v59, %v5844_v26  ;;  %v5950_v34 = vsel %vm5949_vm8, %v5948_v61, 0 }
 0x2f0   :  { %v5761_v46 = vmul.f32 %v5760_v42, %v5758_v11  ;;  %v5768_v52 = vmul.f32 %v5767_v41, %v5758_v11  ;;  %vm5776_vm10 = vcmp.eq.s32.totalorder %v10453_v50, 0  ;;  %v6572_v21 = vperm.slane %v10186_v48, 2 }
 0x2f1   :  { %v5876_v44 = vadd.s32 %v5875_v33, %v5866_v19  ;;  %v5877_v25 = vmul.u32 %v10368_v35, %v5823_v37  ;;  %v5952_v60 = vand.u32 31, %v5950_v34  ;;  %vm5775_vm11 = vcmp.lt.s32.totalorder %v10453_v50, 2 }
 0x2f2   :  { %v5762_v10 = vadd.f32 -0.4999988, %v5761_v46  ;;  %v5769_v38 = vadd.f32 -0.16666654, %v5768_v52  ;;  %vm5879_vm12 = vc.u32 %v10462_v20, %v10459_v1  ;;  %v5945_v36 = vand.u32 8388607, %v5938_v7  ;;  %v3302_v52 = vpop.f32.mrf.mxu2 }
 0x2f3   :  { %vm5773_vm13 = vweird.f32 %v10150_v13  ;;  %v5880_v31 = vadd.s32 1, %v5876_v44  ;;  %v10473_v43 = vshrl.u32 %v5950_v34, 5  ;;  %v5953_v4 = vsub.s32 32, %v5952_v60 }
 0x2f4   :  { %v5763_v53 = vmul.f32 %v5762_v10, %v5758_v11  ;;  %v5770_v6 = vmul.f32 %v5769_v38, %v5758_v11  ;;  %v5955_v9 = vshll.u32 %v11029_v30, %v5952_v60  ;;  %v5958_v56 = vshll.u32 %v11030_v2, %v5952_v60  ;;  %v3401_v38 = vpop.f32.mrf.mxu0 }
 0x2f5   :  { %v5961_v32 = vshll.u32 %v11031_v49, %v5952_v60  ;;  %v5881_v45 = vsel %vm5879_vm12, %v5880_v31, %v5876_v44  ;;  %v5956_v11 = vshrl.u32 %v11030_v2, %v5953_v4  ;;  %v5959_v28 = vshrl.u32 %v11031_v49, %v5953_v4 }
 0x2f6   :  { %v5764_v35 = vadd.f32 1.0, %v5763_v53  ;;  %v5771_v27 = vadd.f32 1.0, %v5770_v6  ;;  %v5964_v0 = vshll.u32 %v11032_v39, %v5952_v60  ;;  %v5882_v62 = vadd.s32 %v5881_v45, %v5877_v25 }
 0x2f7   :  { %v5962_v16 = vshrl.u32 %v11032_v39, %v5953_v4  ;;  %vm10483_vm14 = vcmp.eq.s32.totalorder %v6572_v21, 1  ;;  %v5946_v51 = vor.u32 8388608, %v5945_v36  ;;  %v5965_v17 = vshrl.u32 %v11046_v12, %v5953_v4 }
 0x2f8   :  { %v5772_v55 = vmul.f32 %v5771_v27, %v10447_v63  ;;  %v5780_v58 = vxor.u32 2147483648, %v5764_v35  ;;  %v5967_v57 = vshll.u32 %v11046_v12, %v5952_v60  ;;  %v5883_v42 = vadd.s32 536870912, %v5882_v62 }
 0x2f9   :  { %v5957_v41 = vor.u32 %v5956_v11, %v5955_v9  ;;  %v10489_v14 = vor.u32 %v5959_v28, %v5958_v56  ;;  %v5963_v37 = vor.u32 %v5962_v16, %v5961_v32  ;;  %v5966_v8 = vor.u32 %v5965_v17, %v5964_v0 }
 0x2fa   :  { %v5777_v54 = vxor.u32 2147483648, %v5772_v55  ;;  %v5781_v63 = vsel %vm5779_vm9, %v5780_v58, %v5772_v55  ;;  %v5968_v5 = vshrl.u32 %v11036_v29, %v5953_v4  ;;  %v10496_v46 = vshrl.u32 %v5883_v42, 30 }
 0x2fb   :  { %vm5970_vm15 = vcmp.lt.s32.totalorder %v10473_v43, 1  ;;  %vm5973_vm0 = vcmp.lt.s32.totalorder %v10473_v43, 4  ;;  %vm5972_vm1 = vcmp.lt.s32.totalorder %v10473_v43, 3  ;;  %v3364_v19 = vadd.f32 %v3363_v18, %v3302_v52 }
 0x2fc   :  { %v5778_v61 = vsel %vm5776_vm10, %v5764_v35, %v5777_v54  ;;  %v5969_v59 = vor.u32 %v5968_v5, %v5967_v57  ;;  %v5885_v10 = vshll.u32 %v10496_v46, 30  ;;  %v5978_v21 = vsel %vm5970_vm15, %v5957_v41, %v10489_v14  ;;  %v3432_v35 = vpop.f32.mrf.mxu1 }
 0x2fd   :  { %v5782_v26 = vsel %vm5775_vm11, %v5778_v61, %v5781_v63  ;;  %v5979_v50 = vsel %vm5973_vm0, %v5966_v8, 920167782  ;;  %v10514_v44 = vshll.u32 %v5946_v51, 8  ;;  %vm5971_vm2 = vcmp.lt.s32.totalorder %v10473_v43, 2 }
 0x2fe   :  { %v5783_v33 = vsel %vm5773_vm13, nan, %v5782_v26  ;;  %v5886_v25 = vsub.s32 %v5882_v62, %v5885_v10  ;;  %v5980_v60 = vsel %vm5972_vm1, %v5963_v37, %v5979_v50  ;;  %v5983_v6 = vsel %vm5973_vm0, %v5969_v59, 1326507024 }
 0x2ff   :  { %v6604_v34 = vsel %vm10483_vm14, %v10150_v13, %v5783_v33  ;;  %v5982_v13 = vsel %vm5970_vm15, %v10489_v14, %v5963_v37  ;;  %v5981_v53 = vsel %vm5971_vm2, %v5978_v21, %v5980_v60  ;;  %v3402_v36 = vadd.f32 %v3401_v38, %v3364_v19 }
 0x300   :  { %6620 = vst [vmem:[#allocation8 + $0x50] sm:$0xff] %v6604_v34  ;;  %vm5887_vm3 = vcmp.lt.s32.totalorder %v5886_v25, 0  ;;  %v5888_v31 = vsub.s32 0, %v5886_v25  ;;  %v5984_v9 = vsel %vm5972_vm1, %v5966_v8, %v5983_v6  ;;  %v5954_v27 = vshrl.u32 %v11029_v30, %v5953_v4  ;;  %v3477_v4 = vpop.f32.mrf.mxu2  ;;  %v3506_v6 = vpop.f32.mrf.mxu3 }
 0x301   :  { %v5985_v56 = vsel %vm5971_vm2, %v5982_v13, %v5984_v9  ;;  %v6011_v32 = vand.u32 65535, %v5981_v53  ;;  %v6012_v45 = vshrl.u32 %v5981_v53, 16  ;;  %v5987_v28 = vand.u32 65535, %v10514_v44 }
 0x302   :  { %v5889_v11 = vsel %vm5887_vm3, %v5888_v31, %v5886_v25  ;;  %v5988_v0 = vshrl.u32 %v10514_v44, 16  ;;  %v5989_v58 = vand.u32 65535, %v5985_v56  ;;  %v5990_v62 = vshrl.u32 %v5985_v56, 16 }
 0x303   :  { %v5890_v55 = vclz %v5889_v11  ;;  %v3433_v16 = vadd.f32 %v3432_v35, %v3402_v36  ;;  %v5878_v40 = vadd.s32 %v10459_v1, %v10462_v20  ;;  %v6014_v51 = vmul.u32 %v6012_v45, %v5987_v28 }
 0x304   :  { %v10535_v17 = vmul.u32 %v6011_v32, %v5988_v0  ;;  %v5974_v54 = vsel %vm5970_vm15, %v5954_v27, %v5957_v41  ;;  %v5992_v42 = vmul.u32 %v5990_v62, %v5987_v28  ;;  %v5993_v18 = vmul.u32 %v5989_v58, %v5988_v0 }
 0x305   :  { %v6678_v57 = vadd.s32 4294967294, %v5890_v55  ;;  %v5975_v63 = vsel %vm5973_vm0, %v5963_v37, 2102212464  ;;  %v6013_v8 = vmul.u32 %v6011_v32, %v5987_v28  ;;  %v6016_v5 = vmul.u32 %v6012_v45, %v5988_v0  ;;  %v3600_v32 = vpop.f32.mrf.mxu1 }
 0x306   :  { %v6017_v61 = vshll.u32 %v6014_v51, 16  ;;  %v5991_v52 = vmul.u32 %v5989_v58, %v5987_v28  ;;  %v5995_v26 = vshll.u32 %v5992_v42, 16  ;;  %v3478_v1 = vadd.f32 %v3477_v4, %v3433_v16 }
 0x307   :  { %vm6679_vm4 = vcmp.lt.s32.totalorder %v6678_v57, 0  ;;  %v5994_v59 = vmul.u32 %v5990_v62, %v5988_v0  ;;  %v6019_v19 = vshll.u32 %v10535_v17, 16  ;;  %v5997_v41 = vshll.u32 %v5993_v18, 16  ;;  %v3539_v62 = vpop.f32.mrf.mxu0 }
 0x308   :  { %v5893_v20 = vsel %vm6679_vm4, 0, %v6678_v57  ;;  %vm6021_vm5 = vc.u32 %v6013_v8, %v6017_v61  ;;  %vm5999_vm6 = vc.u32 %v5991_v52, %v5995_v26  ;;  %v6001_v34 = vadd.s32 %v5995_v26, %v5991_v52 }
 0x309   :  { %v5894_v33 = vsub.s32 32, %v5893_v20  ;;  %v5898_v10 = vsub.s32 4294967266, %v5893_v20  ;;  %v6000_v38 = vsel %vm5999_vm6, 1, %v11037_v23  ;;  %v6022_v37 = vsel %vm6021_vm5, 1, %v11037_v23 }
 0x30a   :  { %v6023_v21 = vadd.s32 %v6017_v61, %v6013_v8  ;;  %v5895_v50 = vshll.u32 %v5886_v25, %v5893_v20  ;;  %v6002_v53 = vadd.s32 %v6000_v38, %v5994_v59  ;;  %v5976_v36 = vsel %vm5972_vm1, %v10489_v14, %v5975_v63  ;;  %v3638_v61 = vpop.f32.mrf.mxu2 }
 0x30b   :  { %v5896_v60 = vshrl.u32 %v5878_v40, %v5894_v33  ;;  %v5899_v13 = vadd.s32 127, %v5898_v10  ;;  %vm6003_vm7 = vc.u32 %v6001_v34, %v5997_v41  ;;  %v6024_v31 = vadd.s32 %v6022_v37, %v6016_v5 }
 0x30c   :  { %vm6025_vm8 = vc.u32 %v6023_v21, %v6019_v19  ;;  %v5996_v27 = vshrl.u32 %v5992_v42, 16  ;;  %v6004_v56 = vsel %vm6003_vm7, 1, %v11037_v23  ;;  %v3507_v11 = vadd.f32 %v3506_v6, %v3478_v1 }
 0x30d   :  { %v5897_v9 = vor.u32 %v5896_v60, %v5895_v50  ;;  %v5900_v35 = vshll.u32 %v5899_v13, 23  ;;  %v6006_v45 = vadd.s32 %v6004_v56, %v6002_v53  ;;  %v6026_v25 = vsel %vm6025_vm8, 1, %v11037_v23 }
 0x30e   :  { %v4001_v28 = vperm.slane %v10309_v3, 5  ;;  %v6018_v55 = vshrl.u32 %v6014_v51, 16  ;;  %v6028_v58 = vadd.s32 %v6026_v25, %v6024_v31  ;;  %v4055_v14 = vperm.slane %v10312_v22, 5 }
 0x30f   :  { %v5901_v0 = vor.u32 4788187, %v5900_v35  ;;  %v5998_v16 = vshrl.u32 %v5993_v18, 16  ;;  %v6007_v40 = vadd.s32 %v6006_v45, %v5996_v27  ;;  %v3601_v57 = vadd.f32 %v3600_v32, %v3539_v62 }
 0x310   :  { %v4033_v4 = vmul.f32 %v4001_v28, %v3507_v11  ;;  %v5904_v63 = vcvt.s32.f32 %v5897_v9  ;;  %v6020_v8 = vshrl.u32 %v10535_v17, 16  ;;  %v6029_v5 = vadd.s32 %v6028_v58, %v6018_v55  ;;  %v3669_v17 = vpop.f32.mrf.mxu3  ;;  %v3743_v11 = vpop.f32.mrf.mxu1 }
 0x311   :  { %v5902_v42 = vand.u32 2147483647, %v5901_v0  ;;  %v6008_v52 = vadd.s32 %v6007_v40, %v5998_v16  ;;  %v6027_v26 = vadd.s32 %v6023_v21, %v6019_v19  ;;  %v5908_v51 = vsub.s32 4, %v10496_v46 }
 0x312   :  { %v10552_v1 = vadd.f32 %v4055_v14, %v4033_v4  ;;  %v5977_v59 = vsel %vm5971_vm2, %v5974_v54, %v5976_v36  ;;  %v6030_v18 = vadd.s32 %v6029_v5, %v6020_v8  ;;  %v3639_v33 = vadd.f32 %v3638_v61, %v3601_v57  ;;  %v3714_v36 = vpop.f32.mrf.mxu0 }
 0x313   :  { %v5905_v20 = vmul.f32 %v5904_v63, %v5902_v42  ;;  %vm6033_vm9 = vc.u32 %v6008_v52, %v6027_v26  ;;  %vm10560_vm10 = vcmp.le.f32.partialorder %v5784_v15, 0.7853982  ;;  %vm5786_vm11 = vcmp.lt.s32.totalorder %v10326_v24, 0 }
 0x314   :  { %v6034_v41 = vadd.s32 1, %v6030_v18  ;;  %v6095_v38 = vand.u32 2139095040, %v10552_v1  ;;  %v6031_v34 = vmul.u32 %v10514_v44, %v5977_v59  ;;  %v5909_v54 = vsel %vm5786_vm11, %v5908_v51, %v10496_v46 }
 0x315   :  { %v5906_v10 = vxor.u32 2147483648, %v5905_v20  ;;  %v6092_v13 = vand.u32 2147483647, %v10552_v1  ;;  %v3670_v15 = vadd.f32 %v3669_v17, %v3639_v33  ;;  %v5911_v44 = vsel %vm10560_vm10, 0, %v5909_v54 }
 0x316   :  { %v6035_v37 = vsel %vm6033_vm9, %v6034_v41, %v6030_v18  ;;  %v6096_v21 = vshrl.u32 %v6095_v38, 23  ;;  %v5928_v28 = vand.u32 3, %v5911_v44  ;;  %v6573_v62 = vperm.slane %v10186_v48, 3 }
 0x317   :  { %v5907_v43 = vsel %vm5786_vm11, %v5906_v10, %v5905_v20  ;;  %v6036_v60 = vadd.s32 %v6035_v37, %v6031_v34  ;;  %v6099_v56 = vand.u32 8388607, %v6092_v13  ;;  %v3715_v32 = vadd.f32 %v3714_v36, %v3670_v15 }
 0x318   :  { %v5910_v50 = vsel %vm10560_vm10, %v10326_v24, %v5907_v43  ;;  %v6683_v6 = vadd.s32 4294967169, %v6096_v21  ;;  %v4002_v42 = vperm.slane %v10309_v3, 6  ;;  %vm5930_vm13 = vcmp.eq.s32.totalorder %v5928_v28, 0 }
 0x319   :  { %v5912_v53 = vmul.f32 %v5910_v50, %v5910_v50  ;;  %v6037_v31 = vadd.s32 536870912, %v6036_v60  ;;  %v6100_v4 = vor.u32 8388608, %v6099_v56  ;;  %v3744_v57 = vadd.f32 %v3743_v11, %v3715_v32 }
 0x31a   :  { %v6102_v46 = vadd.s32 1, %v6683_v6  ;;  %vm5933_vm14 = vcmp.eq.s32.totalorder %v5928_v28, 2  ;;  %vm5929_vm0 = vcmp.lt.s32.totalorder %v5928_v28, 2  ;;  %vm10586_vm1 = vcmp.eq.s32.totalorder %v6573_v62, 1 }
 0x31b   :  { %v5913_v9 = vmul.f32 -0.001358992, %v5912_v53  ;;  %v5920_v35 = vmul.f32 -0.00019511016, %v5912_v53  ;;  %v10573_v27 = vshrl.u32 %v6037_v31, 30  ;;  %v6032_v18 = vadd.s32 %v6027_v26, %v6008_v52 }
 0x31c   :  { %vm6103_vm12 = vcmp.gt.s32.totalorder %v6102_v46, 0  ;;  %v4056_v3 = vperm.slane %v10312_v22, 6  ;;  %vm5927_vm2 = vweird.f32 %v10326_v24  ;;  %v10594_v41 = vshll.u32 %v6100_v4, 8 }
 0x31d   :  { %v5914_v45 = vadd.f32 0.041655596, %v5913_v9  ;;  %v5921_v25 = vadd.f32 0.008332121, %v5920_v35  ;;  %v6039_v0 = vshll.u32 %v10573_v27, 30  ;;  %v6104_v55 = vsel %vm6103_vm12, %v6102_v46, 0 }
 0x31e   :  { %v6106_v16 = vand.u32 31, %v6104_v55  ;;  %v4034_v38 = vmul.f32 %v4002_v42, %v3744_v57  ;;  %vm5940_vm3 = vcmp.lt.s32.totalorder %v10370_v47, 0  ;;  %v10607_v6 = vshrl.u32 %v6104_v55, 5 }
 0x31f   :  { %v5915_v58 = vmul.f32 %v5914_v45, %v5912_v53  ;;  %v5922_v14 = vmul.f32 %v5921_v25, %v5912_v53  ;;  %v10579_v40 = vsub.s32 %v6036_v60, %v6039_v0  ;;  %vm10614_vm4 = vcmp.le.f32.partialorder %v5938_v7, 0.7853982 }
 0x320   :  { %v10582_v5 = vsub.s32 32, %v6106_v16  ;;  %v6109_v10 = vshll.u32 %v11029_v30, %v6106_v16  ;;  %v6112_v52 = vshll.u32 %v11030_v2, %v6106_v16  ;;  %v6115_v26 = vshll.u32 %v11031_v49, %v6106_v16 }
 0x321   :  { %v5916_v63 = vadd.f32 -0.4999988, %v5915_v58  ;;  %v5923_v8 = vadd.f32 -0.16666654, %v5922_v14  ;;  %vm6041_vm15 = vcmp.lt.s32.totalorder %v10579_v40, 0  ;;  %v6042_v61 = vsub.s32 0, %v10579_v40 }
 0x322   :  { %v6110_v43 = vshrl.u32 %v11030_v2, %v10582_v5  ;;  %v6113_v22 = vshrl.u32 %v11031_v49, %v10582_v5  ;;  %v6116_v54 = vshrl.u32 %v11032_v39, %v10582_v5  ;;  %v6118_v15 = vshll.u32 %v11032_v39, %v6106_v16 }
 0x323   :  { %v5917_v20 = vmul.f32 %v5916_v63, %v5912_v53  ;;  %v5924_v51 = vmul.f32 %v5923_v8, %v5912_v53  ;;  %v6043_v33 = vsel %vm6041_vm15, %v6042_v61, %v10579_v40  ;;  %v6062_v53 = vsub.s32 4, %v10573_v27 }
 0x324   :  { %v6044_v34 = vclz %v6043_v33  ;;  %v6119_v36 = vshrl.u32 %v11046_v12, %v10582_v5  ;;  %v6121_v31 = vshll.u32 %v11046_v12, %v6106_v16  ;;  %v6122_v35 = vshrl.u32 %v11036_v29, %v10582_v5 }
 0x325   :  { %v5918_v17 = vadd.f32 1.0, %v5917_v20  ;;  %v5925_v19 = vadd.f32 1.0, %v5924_v51  ;;  %v10623_v32 = vor.u32 %v6113_v22, %v6112_v52  ;;  %v6117_v45 = vor.u32 %v6116_v54, %v6115_v26 }
 0x326   :  { %v6681_v60 = vadd.s32 4294967294, %v6044_v34  ;;  %v6120_v7 = vor.u32 %v6119_v36, %v6118_v15  ;;  %v6123_v14 = vor.u32 %v6122_v35, %v6121_v31  ;;  %vm6124_vm6 = vcmp.lt.s32.totalorder %v10607_v6, 1 }
 0x327   :  { %v5926_v37 = vmul.f32 %v5925_v19, %v5910_v50  ;;  %v5934_v21 = vxor.u32 2147483648, %v5918_v17  ;;  %v10618_v50 = vor.u32 %v6110_v43, %v6109_v10  ;;  %vm6127_vm7 = vcmp.lt.s32.totalorder %v10607_v6, 4 }
 0x328   :  { %vm6682_vm5 = vcmp.lt.s32.totalorder %v6681_v60, 0  ;;  %vm6126_vm8 = vcmp.lt.s32.totalorder %v10607_v6, 3  ;;  %v6141_v28 = vand.u32 65535, %v10594_v41  ;;  %v6063_v8 = vsel %vm5940_vm3, %v6062_v53, %v10573_v27 }
 0x329   :  { %v5931_v44 = vxor.u32 2147483648, %v5926_v37  ;;  %v5935_v46 = vsel %vm5933_vm14, %v5934_v21, %v5926_v37  ;;  %v6047_v56 = vsel %vm6682_vm5, 0, %v6681_v60  ;;  %v6132_v61 = vsel %vm6124_vm6, %v10618_v50, %v10623_v32 }
 0x32a   :  { %v6048_v11 = vsub.s32 32, %v6047_v56  ;;  %v6052_v0 = vsub.s32 4294967266, %v6047_v56  ;;  %v6049_v58 = vshll.u32 %v10579_v40, %v6047_v56  ;;  %v6142_v40 = vshrl.u32 %v10594_v41, 16 }
 0x32b   :  { %v5932_v25 = vsel %vm5930_vm13, %v5918_v17, %v5931_v44  ;;  %v6136_v20 = vsel %vm6124_vm6, %v10623_v32, %v6117_v45  ;;  %v6137_v51 = vsel %vm6127_vm7, %v6123_v14, 1326507024  ;;  %v10652_v59 = vadd.f32 %v4056_v3, %v4034_v38 }
 0x32c   :  { %v5936_v55 = vsel %vm5929_vm0, %v5932_v25, %v5935_v46  ;;  %v6050_v16 = vshrl.u32 %v6032_v18, %v6048_v11  ;;  %v6053_v4 = vadd.s32 127, %v6052_v0  ;;  %vm6125_vm9 = vcmp.lt.s32.totalorder %v10607_v6, 2 }
 0x32d   :  { %v5937_v62 = vsel %vm5927_vm2, nan, %v5936_v55  ;;  %v6138_v33 = vsel %vm6126_vm8, %v6120_v7, %v6137_v51  ;;  %v6065_v17 = vsel %vm10614_vm4, 0, %v6063_v8  ;;  %v6246_v26 = vand.u32 2147483647, %v10652_v59 }
 0x32e   :  { %v6605_v57 = vsel %vm10586_vm1, %v10326_v24, %v5937_v62  ;;  %v6051_v42 = vor.u32 %v6050_v16, %v6049_v58  ;;  %v6054_v63 = vshll.u32 %v6053_v4, 23  ;;  %v6133_v24 = vsel %vm6127_vm7, %v6120_v7, 920167782 }
 0x32f   :  { %6621 = vst [vmem:[#allocation8 + $0x58] sm:$0xff] %v6605_v57  ;;  %v6134_v27 = vsel %vm6126_vm8, %v6117_v45, %v6133_v24  ;;  %v6139_v3 = vsel %vm6125_vm9, %v6136_v20, %v6138_v33  ;;  %v10666_v37 = vand.u32 3, %v6065_v17  ;;  %v6108_v15 = vshrl.u32 %v11029_v30, %v10582_v5 }
 0x330   :  { %v6055_v18 = vor.u32 4788187, %v6054_v63  ;;  %v6058_v10 = vcvt.s32.f32 %v6051_v42  ;;  %v6135_v19 = vsel %vm6125_vm9, %v6132_v61, %v6134_v27  ;;  %v6143_v34 = vand.u32 65535, %v6139_v3 }
 0x331   :  { %v6144_v43 = vshrl.u32 %v6139_v3, 16  ;;  %v6165_v52 = vand.u32 65535, %v6135_v19  ;;  %v6166_v22 = vshrl.u32 %v6135_v19, 16  ;;  %v6129_v53 = vsel %vm6127_vm7, %v6117_v45, 2102212464 }
 0x332   :  { %v6056_v38 = vand.u32 2147483647, %v6055_v18  ;;  %v6147_v60 = vmul.u32 %v6143_v34, %v6142_v40  ;;  %v6145_v35 = vmul.u32 %v6143_v34, %v6141_v28  ;;  %v6249_v56 = vand.u32 2139095040, %v10652_v59 }
 0x333   :  { %v6146_v21 = vmul.u32 %v6144_v43, %v6141_v28  ;;  %v6168_v36 = vmul.u32 %v6166_v22, %v6141_v28  ;;  %v6169_v31 = vmul.u32 %v6165_v52, %v6142_v40  ;;  %v6148_v25 = vmul.u32 %v6144_v43, %v6142_v40 }
 0x334   :  { %v6059_v54 = vmul.f32 %v6058_v10, %v6056_v38  ;;  %v6151_v11 = vshll.u32 %v6147_v60, 16  ;;  %v6167_v0 = vmul.u32 %v6165_v52, %v6141_v28  ;;  %v6170_v5 = vmul.u32 %v6166_v22, %v6142_v40 }
 0x335   :  { %v6149_v46 = vshll.u32 %v6146_v21, 16  ;;  %v6171_v7 = vshll.u32 %v6168_v36, 16  ;;  %v6173_v62 = vshll.u32 %v6169_v31, 16  ;;  %v6250_v63 = vshrl.u32 %v6249_v56, 23 }
 0x336   :  { %v6060_v44 = vxor.u32 2147483648, %v6059_v54  ;;  %v6150_v61 = vshrl.u32 %v6146_v21, 16  ;;  %v6128_v20 = vsel %vm6124_vm6, %v6108_v15, %v10618_v50  ;;  %v6152_v51 = vshrl.u32 %v6147_v60, 16 }
 0x337   :  { %vm6153_vm10 = vc.u32 %v6145_v35, %v6149_v46  ;;  %v6155_v58 = vadd.s32 %v6149_v46, %v6145_v35  ;;  %vm6175_vm11 = vc.u32 %v6167_v0, %v6171_v7  ;;  %v6177_v42 = vadd.s32 %v6171_v7, %v6167_v0 }
 0x338   :  { %v6061_v55 = vsel %vm5940_vm3, %v6060_v44, %v6059_v54  ;;  %v6154_v14 = vsel %vm6153_vm10, 1, %v11037_v23  ;;  %v6176_v57 = vsel %vm6175_vm11, 1, %v11037_v23  ;;  %v6686_v18 = vadd.s32 4294967169, %v6250_v63 }
 0x339   :  { %v10678_v45 = vsel %vm10614_vm4, %v10370_v47, %v6061_v55  ;;  %v6156_v4 = vadd.s32 %v6154_v14, %v6148_v25  ;;  %vm6157_vm12 = vc.u32 %v6155_v58, %v6151_v11  ;;  %v6178_v40 = vadd.s32 %v6176_v57, %v6170_v5  ;;  %v3776_v57 = vpop.f32.mrf.mxu2 }
 0x33a   :  { %v6066_v16 = vmul.f32 %v10678_v45, %v10678_v45  ;;  %v6158_v28 = vsel %vm6157_vm12, 1, %v11037_v23  ;;  %vm6179_vm13 = vc.u32 %v6177_v42, %v6173_v62  ;;  %v6130_v19 = vsel %vm6126_vm8, %v10623_v32, %v6129_v53 }
 0x33b   :  { %v6160_v24 = vadd.s32 %v6158_v28, %v6156_v4  ;;  %v6180_v17 = vsel %vm6179_vm13, 1, %v11037_v23  ;;  %v6172_v3 = vshrl.u32 %v6168_v36, 16  ;;  %v6256_v34 = vadd.s32 1, %v6686_v18  ;;  %v3837_v28 = vpop.f32.mrf.mxu3 }
 0x33c   :  { %v6067_v8 = vmul.f32 -0.001358992, %v6066_v16  ;;  %v6074_v9 = vmul.f32 -0.00019511016, %v6066_v16  ;;  %v6182_v38 = vadd.s32 %v6180_v17, %v6178_v40  ;;  %v6574_v22 = vperm.slane %v10186_v48, 4 }
 0x33d   :  { %v6161_v10 = vadd.s32 %v6160_v24, %v6150_v61  ;;  %v6174_v54 = vshrl.u32 %v6169_v31, 16  ;;  %v6253_v60 = vand.u32 8388607, %v6246_v26  ;;  %vm6257_vm14 = vcmp.gt.s32.totalorder %v6256_v34, 0 }
 0x33e   :  { %v6068_v27 = vadd.f32 0.041655596, %v6067_v8  ;;  %v6075_v33 = vadd.f32 0.008332121, %v6074_v9  ;;  %v6183_v21 = vadd.s32 %v6182_v38, %v6172_v3  ;;  %v6131_v32 = vsel %vm6125_vm9, %v6128_v20, %v6130_v19  ;;  %v3875_v19 = vpop.f32.mrf.mxu0 }
 0x33f   :  { %v10693_v50 = vadd.s32 %v6161_v10, %v6152_v51  ;;  %v10699_v53 = vadd.s32 %v6177_v42, %v6173_v62  ;;  %vm6084_vm15 = vcmp.eq.s32.totalorder %v10666_v37, 0  ;;  %vm6087_vm0 = vcmp.eq.s32.totalorder %v10666_v37, 2 }
 0x340   :  { %v6069_v43 = vmul.f32 %v6068_v27, %v6066_v16  ;;  %v6076_v52 = vmul.f32 %v6075_v33, %v6066_v16  ;;  %v6184_v36 = vadd.s32 %v6183_v21, %v6174_v54  ;;  %v6258_v35 = vsel %vm6257_vm14, %v6256_v34, 0 }
 0x341   :  { %vm6083_vm1 = vcmp.lt.s32.totalorder %v10666_v37, 2  ;;  %vm6187_vm2 = vc.u32 %v10693_v50, %v10699_v53  ;;  %v6260_v56 = vand.u32 31, %v6258_v35  ;;  %vm10706_vm3 = vcmp.eq.s32.totalorder %v6574_v22, 1  ;;  %v3906_v22 = vpop.f32.mrf.mxu1 }
 0x342   :  { %v6070_v15 = vadd.f32 -0.4999988, %v6069_v43  ;;  %v6077_v44 = vadd.f32 -0.16666654, %v6076_v52  ;;  %v6185_v6 = vmul.u32 %v10594_v41, %v6131_v32  ;;  %v6188_v11 = vadd.s32 1, %v6184_v36 }
 0x343   :  { %v6254_v0 = vor.u32 8388608, %v6253_v60  ;;  %v10711_v58 = vshrl.u32 %v6258_v35, 5  ;;  %v10713_v5 = vsub.s32 32, %v6260_v56  ;;  %v6263_v62 = vshll.u32 %v11029_v30, %v6260_v56 }
 0x344   :  { %v6071_v46 = vmul.f32 %v6070_v15, %v6066_v16  ;;  %v6078_v31 = vmul.f32 %v6077_v44, %v6066_v16  ;;  %v6189_v14 = vsel %vm6187_vm2, %v6188_v11, %v6184_v36  ;;  %v6266_v16 = vshll.u32 %v11030_v2, %v6260_v56 }
 0x345   :  { %v6272_v4 = vshll.u32 %v11032_v39, %v6260_v56  ;;  %v6190_v40 = vadd.s32 %v6189_v14, %v6185_v6  ;;  %v6269_v63 = vshll.u32 %v11031_v49, %v6260_v56  ;;  %v6264_v8 = vshrl.u32 %v11030_v2, %v10713_v5 }
 0x346   :  { %v6072_v7 = vadd.f32 1.0, %v6071_v46  ;;  %v6079_v55 = vadd.f32 1.0, %v6078_v31  ;;  %v6267_v9 = vshrl.u32 %v11031_v49, %v10713_v5  ;;  %v6270_v61 = vshrl.u32 %v11032_v39, %v10713_v5  ;;  %v3951_v31 = vpop.f32.mrf.mxu2 }
 0x347   :  { %v6273_v24 = vshrl.u32 %v11046_v12, %v10713_v5  ;;  %v6191_v51 = vadd.s32 536870912, %v6190_v40  ;;  %v3838_v18 = vadd.f32 %v3837_v28, %v3776_v57  ;;  %v10730_v27 = vor.u32 %v6264_v8, %v6263_v62  ;;  %v6713_v8 = vld [vmem:[#allocation7 + $0x20] ss:$4 sm:$0xff] }
 0x348   :  { %v6080_v42 = vmul.f32 %v6079_v55, %v10678_v45  ;;  %v6088_v41 = vxor.u32 2147483648, %v6072_v7  ;;  %v10732_v33 = vor.u32 %v6267_v9, %v6266_v16  ;;  %v6275_v17 = vshll.u32 %v11046_v12, %v6260_v56 }
 0x349   :  { %v6274_v10 = vor.u32 %v6273_v24, %v6272_v4  ;;  %v10737_v38 = vshrl.u32 %v6191_v51, 30  ;;  %v6276_v34 = vshrl.u32 %v11036_v29, %v10713_v5  ;;  %vm6278_vm4 = vcmp.lt.s32.totalorder %v10711_v58, 1 }
 0x34a   :  { %v6085_v20 = vxor.u32 2147483648, %v6080_v42  ;;  %v6089_v45 = vsel %vm6087_vm0, %v6088_v41, %v6080_v42  ;;  %vm6081_vm5 = vweird.f32 %v10370_v47  ;;  %v10745_v52 = vor.u32 %v6270_v61, %v6269_v63  ;;  %v3980_v42 = vpop.f32.mrf.mxu3 }
 0x34b   :  { %vm6281_vm6 = vcmp.lt.s32.totalorder %v10711_v58, 4  ;;  %v6193_v21 = vshll.u32 %v10737_v38, 30  ;;  %v10749_v60 = vshll.u32 %v6254_v0, 8  ;;  %v3876_v15 = vadd.f32 %v3875_v19, %v3838_v18 }
 0x34c   :  { %v6086_v3 = vsel %vm6084_vm15, %v6072_v7, %v6085_v20  ;;  %v6277_v32 = vor.u32 %v6276_v34, %v6275_v17  ;;  %v6286_v37 = vsel %vm6278_vm4, %v10730_v27, %v10732_v33  ;;  %vm6280_vm7 = vcmp.lt.s32.totalorder %v10711_v58, 3  ;;  %v6714_v17 = vld [vmem:[#allocation7 + $0x21] ss:$4 sm:$0xff] }
 0x34d   :  { %v6090_v43 = vsel %vm6083_vm1, %v6086_v3, %v6089_v45  ;;  %v6194_v36 = vsub.s32 %v6190_v40, %v6193_v21  ;;  %v6287_v35 = vsel %vm6281_vm6, %v6274_v10, 920167782  ;;  %v3907_v46 = vadd.f32 %v3906_v22, %v3876_v15 }
 0x34e   :  { %v6091_v54 = vsel %vm6081_vm5, nan, %v6090_v43  ;;  %vm6279_vm8 = vcmp.lt.s32.totalorder %v10711_v58, 2  ;;  %v6295_v6 = vand.u32 65535, %v10749_v60  ;;  %v6290_v11 = vsel %vm6278_vm4, %v10732_v33, %v10745_v52 }
 0x34f   :  { %v6606_v44 = vsel %vm10706_vm3, %v10370_v47, %v6091_v54  ;;  %v6288_v47 = vsel %vm6280_vm7, %v10745_v52, %v6287_v35  ;;  %vm6195_vm9 = vcmp.lt.s32.totalorder %v6194_v36, 0  ;;  %v6196_v56 = vsub.s32 0, %v6194_v36 }
 0x350   :  { %6622 = vst [vmem:[#allocation8 + $0x60] sm:$0xff] %v6606_v44  ;;  %v6289_v25 = vsel %vm6279_vm8, %v6286_v37, %v6288_v47  ;;  %v6291_v0 = vsel %vm6281_vm6, %v6277_v32, 1326507024  ;;  %v6296_v62 = vshrl.u32 %v10749_v60, 16  ;;  %v3952_v16 = vadd.f32 %v3951_v31, %v3907_v46 }
 0x351   :  { %v6319_v7 = vand.u32 65535, %v6289_v25  ;;  %v6320_v55 = vshrl.u32 %v6289_v25, 16  ;;  %v6197_v14 = vsel %vm6195_vm9, %v6196_v56, %v6194_v36  ;;  %v6292_v57 = vsel %vm6280_vm7, %v6274_v10, %v6291_v0 }
 0x352   :  { %v6198_v4 = vclz %v6197_v14  ;;  %v6186_v41 = vadd.s32 %v10699_v53, %v10693_v50  ;;  %v6293_v40 = vsel %vm6279_vm8, %v6290_v11, %v6292_v57  ;;  %v4003_v9 = vperm.slane %v6713_v8, 7 }
 0x353   :  { %v6322_v28 = vmul.u32 %v6320_v55, %v6295_v6  ;;  %v10781_v63 = vmul.u32 %v6319_v7, %v6296_v62  ;;  %v6297_v24 = vand.u32 65535, %v6293_v40  ;;  %v6298_v20 = vshrl.u32 %v6293_v40, 16 }
 0x354   :  { %v6684_v61 = vadd.s32 4294967294, %v6198_v4  ;;  %v6262_v51 = vshrl.u32 %v11029_v30, %v10713_v5  ;;  %v6321_v18 = vmul.u32 %v6319_v7, %v6295_v6  ;;  %v3981_v10 = vadd.f32 %v3980_v42, %v3952_v16 }
 0x355   :  { %v6325_v45 = vshll.u32 %v6322_v28, 16  ;;  %v4057_v19 = vperm.slane %v6714_v17, 7  ;;  %v6300_v50 = vmul.u32 %v6298_v20, %v6295_v6  ;;  %v6301_v53 = vmul.u32 %v6297_v24, %v6296_v62 }
 0x356   :  { %vm6685_vm10 = vcmp.lt.s32.totalorder %v6684_v61, 0  ;;  %v6324_v3 = vmul.u32 %v6320_v55, %v6296_v62  ;;  %v6327_v43 = vshll.u32 %v10781_v63, 16  ;;  %v6299_v15 = vmul.u32 %v6297_v24, %v6295_v6 }
 0x357   :  { %v6201_v34 = vsel %vm6685_vm10, 0, %v6684_v61  ;;  %vm6329_vm11 = vc.u32 %v6321_v18, %v6325_v45  ;;  %v6331_v22 = vadd.s32 %v6325_v45, %v6321_v18  ;;  %v6303_v44 = vshll.u32 %v6300_v50, 16 }
 0x358   :  { %v6202_v54 = vsub.s32 32, %v6201_v34  ;;  %v6206_v21 = vsub.s32 4294967266, %v6201_v34  ;;  %v6203_v32 = vshll.u32 %v6194_v36, %v6201_v34  ;;  %v6302_v37 = vmul.u32 %v6298_v20, %v6296_v62 }
 0x359   :  { %v6330_v5 = vsel %vm6329_vm11, 1, %v11037_v23  ;;  %v4035_v35 = vmul.f32 %v4003_v9, %v3981_v10  ;;  %v6305_v31 = vshll.u32 %v6301_v53, 16  ;;  %vm6307_vm12 = vc.u32 %v6299_v15, %v6303_v44 }
 0x35a   :  { %v6204_v46 = vshrl.u32 %v6186_v41, %v6202_v54  ;;  %v6207_v47 = vadd.s32 127, %v6206_v21  ;;  %v6308_v56 = vsel %vm6307_vm12, 1, %v11037_v23  ;;  %v6309_v25 = vadd.s32 %v6303_v44, %v6299_v15 }
 0x35b   :  { %v6332_v11 = vadd.s32 %v6330_v5, %v6324_v3  ;;  %vm6333_vm13 = vc.u32 %v6331_v22, %v6327_v43  ;;  %v6283_v6 = vsel %vm6281_vm6, %v10745_v52, 2102212464  ;;  %v6310_v36 = vadd.s32 %v6308_v56, %v6302_v37 }
 0x35c   :  { %v6205_v0 = vor.u32 %v6204_v46, %v6203_v32  ;;  %v6208_v7 = vshll.u32 %v6207_v47, 23  ;;  %v6282_v55 = vsel %vm6278_vm4, %v6262_v51, %v10730_v27  ;;  %vm6311_vm14 = vc.u32 %v6309_v25, %v6305_v31 }
 0x35d   :  { %v6334_v14 = vsel %vm6333_vm13, 1, %v11037_v23  ;;  %v10795_v62 = vadd.f32 %v4057_v19, %v4035_v35  ;;  %v6312_v4 = vsel %vm6311_vm14, 1, %v11037_v23  ;;  %v6326_v57 = vshrl.u32 %v6322_v28, 16 }
 0x35e   :  { %v6209_v16 = vor.u32 4788187, %v6208_v7  ;;  %v6336_v42 = vadd.s32 %v6334_v14, %v6332_v11  ;;  %v6284_v41 = vsel %vm6280_vm7, %v10732_v33, %v6283_v6  ;;  %v6304_v52 = vshrl.u32 %v6300_v50, 16 }
 0x35f   :  { %v6314_v40 = vadd.s32 %v6312_v4, %v6310_v36  ;;  %v6403_v8 = vand.u32 2139095040, %v10795_v62  ;;  %v6212_v27 = vcvt.s32.f32 %v6205_v0  ;;  %v6328_v61 = vshrl.u32 %v10781_v63, 16 }
 0x360   :  { %v6210_v9 = vand.u32 2147483647, %v6209_v16  ;;  %v6337_v24 = vadd.s32 %v6336_v42, %v6326_v57  ;;  %v6306_v20 = vshrl.u32 %v6301_v53, 16  ;;  %v6216_v28 = vsub.s32 4, %v10737_v38 }
 0x361   :  { %v6315_v45 = vadd.s32 %v6314_v40, %v6304_v52  ;;  %v6404_v51 = vshrl.u32 %v6403_v8, 23  ;;  %v6285_v10 = vsel %vm6279_vm8, %v6282_v55, %v6284_v41  ;;  %v10808_v19 = vadd.s32 %v6331_v22, %v6327_v43 }
 0x362   :  { %v6213_v18 = vmul.f32 %v6212_v27, %v6210_v9  ;;  %v6338_v17 = vadd.s32 %v6337_v24, %v6328_v61  ;;  %vm6094_vm15 = vcmp.lt.s32.totalorder %v10552_v1, 0  ;;  %vm10813_vm0 = vcmp.le.f32.partialorder %v6092_v13, 0.7853982 }
 0x363   :  { %v10806_v33 = vadd.s32 %v6315_v45, %v6306_v20  ;;  %v6689_v50 = vadd.s32 4294967169, %v6404_v51  ;;  %v6339_v34 = vmul.u32 %v10749_v60, %v6285_v10  ;;  %v6217_v43 = vsel %vm6094_vm15, %v6216_v28, %v10737_v38 }
 0x364   :  { %v6214_v3 = vxor.u32 2147483648, %v6213_v18  ;;  %v6342_v63 = vadd.s32 1, %v6338_v17  ;;  %v6400_v21 = vand.u32 2147483647, %v10795_v62  ;;  %v6219_v60 = vsel %vm10813_vm0, 0, %v6217_v43 }
 0x365   :  { %vm6341_vm1 = vc.u32 %v10806_v33, %v10808_v19  ;;  %v6410_v58 = vadd.s32 1, %v6689_v50  ;;  %v6236_v11 = vand.u32 3, %v6219_v60  ;;  %v6575_v36 = vperm.slane %v10186_v48, 5 }
 0x366   :  { %v6215_v54 = vsel %vm6094_vm15, %v6214_v3, %v6213_v18  ;;  %v6343_v22 = vsel %vm6341_vm1, %v6342_v63, %v6338_v17  ;;  %v6407_v38 = vand.u32 8388607, %v6400_v21  ;;  %vm6235_vm7 = vweird.f32 %v10552_v1 }
 0x367   :  { %v6218_v15 = vsel %vm10813_vm0, %v10552_v1, %v6215_v54  ;;  %v6344_v13 = vadd.s32 %v6343_v22, %v6339_v34  ;;  %vm6411_vm2 = vcmp.gt.s32.totalorder %v6410_v58, 0  ;;  %vm6241_vm3 = vcmp.eq.s32.totalorder %v6236_v11, 2 }
 0x368   :  { %v6220_v44 = vmul.f32 %v6218_v15, %v6218_v15  ;;  %v6412_v32 = vsel %vm6411_vm2, %v6410_v58, 0  ;;  %v6408_v55 = vor.u32 8388608, %v6407_v38  ;;  %vm6238_vm4 = vcmp.eq.s32.totalorder %v6236_v11, 0 }
 0x369   :  { %v6345_v37 = vadd.s32 536870912, %v6344_v13  ;;  %v6414_v5 = vand.u32 31, %v6412_v32  ;;  %vm6237_vm6 = vcmp.lt.s32.totalorder %v6236_v11, 2  ;;  %v10850_v20 = vshrl.u32 %v6412_v32, 5 }
 0x36a   :  { %v6221_v35 = vmul.f32 -0.001358992, %v6220_v44  ;;  %v6228_v46 = vmul.f32 -0.00019511016, %v6220_v44  ;;  %vm10861_vm8 = vcmp.eq.s32.totalorder %v6575_v36, 1  ;;  %v10874_v22 = vshll.u32 %v6408_v55, 8 }
 0x36b   :  { %v10829_v47 = vshrl.u32 %v6345_v37, 30  ;;  %v10831_v31 = vsub.s32 32, %v6414_v5  ;;  %v6417_v52 = vshll.u32 %v11029_v30, %v6414_v5  ;;  %v6420_v40 = vshll.u32 %v11030_v2, %v6414_v5 }
 0x36c   :  { %v6222_v56 = vadd.f32 0.041655596, %v6221_v35  ;;  %v6229_v25 = vadd.f32 0.008332121, %v6228_v46  ;;  %v6426_v27 = vshll.u32 %v11032_v39, %v6414_v5  ;;  %v6423_v45 = vshll.u32 %v11031_v49, %v6414_v5 }
 0x36d   :  { %v6347_v0 = vshll.u32 %v10829_v47, 30  ;;  %v6418_v16 = vshrl.u32 %v11030_v2, %v10831_v31  ;;  %v6421_v4 = vshrl.u32 %v11031_v49, %v10831_v31  ;;  %v6427_v57 = vshrl.u32 %v11046_v12, %v10831_v31 }
 0x36e   :  { %v6223_v7 = vmul.f32 %v6222_v56, %v6220_v44  ;;  %v6230_v6 = vmul.f32 %v6229_v25, %v6220_v44  ;;  %v6424_v9 = vshrl.u32 %v11032_v39, %v10831_v31  ;;  %v6430_v39 = vshrl.u32 %v11036_v29, %v10831_v31 }
 0x36f   :  { %v10835_v14 = vsub.s32 %v6344_v13, %v6347_v0  ;;  %v10855_v51 = vor.u32 %v6418_v16, %v6417_v52  ;;  %v10857_v18 = vor.u32 %v6421_v4, %v6420_v40  ;;  %v6428_v28 = vor.u32 %v6427_v57, %v6426_v27 }
 0x370   :  { %v6224_v42 = vadd.f32 -0.4999988, %v6223_v7  ;;  %v6231_v41 = vadd.f32 -0.16666654, %v6230_v6  ;;  %v6340_v49 = vadd.s32 %v10808_v19, %v10806_v33  ;;  %v10867_v63 = vor.u32 %v6424_v9, %v6423_v45 }
 0x371   :  { %vm6349_vm5 = vcmp.lt.s32.totalorder %v10835_v14, 0  ;;  %v6350_v8 = vsub.s32 0, %v10835_v14  ;;  %v6429_v53 = vshll.u32 %v11046_v12, %v6414_v5  ;;  %vm6435_vm9 = vcmp.lt.s32.totalorder %v10850_v20, 4 }
 0x372   :  { %v6225_v61 = vmul.f32 %v6224_v42, %v6220_v44  ;;  %v6232_v24 = vmul.f32 %v6231_v41, %v6220_v44  ;;  %vm6432_vm10 = vcmp.lt.s32.totalorder %v10850_v20, 1  ;;  %v6441_v29 = vsel %vm6435_vm9, %v6428_v28, 920167782 }
 0x373   :  { %v6351_v2 = vsel %vm6349_vm5, %v6350_v8, %v10835_v14  ;;  %v6431_v43 = vor.u32 %v6430_v39, %v6429_v53  ;;  %vm6434_vm12 = vcmp.lt.s32.totalorder %v10850_v20, 3  ;;  %v6440_v12 = vsel %vm6432_vm10, %v10855_v51, %v10857_v18 }
 0x374   :  { %v6226_v10 = vadd.f32 1.0, %v6225_v61  ;;  %v6233_v17 = vadd.f32 1.0, %v6232_v24  ;;  %v6352_v50 = vclz %v6351_v2  ;;  %vm6433_vm13 = vcmp.lt.s32.totalorder %v10850_v20, 2 }
 0x375   :  { %v6444_v37 = vsel %vm6432_vm10, %v10857_v18, %v10867_v63  ;;  %v6445_v38 = vsel %vm6435_vm9, %v6431_v43, 1326507024  ;;  %v6449_v36 = vand.u32 65535, %v10874_v22  ;;  %v6450_v42 = vshrl.u32 %v10874_v22, 16 }
 0x376   :  { %v6234_v34 = vmul.f32 %v6233_v17, %v6218_v15  ;;  %v6242_v58 = vxor.u32 2147483648, %v6226_v10  ;;  %v6687_v54 = vadd.s32 4294967294, %v6352_v50  ;;  %v6442_v15 = vsel %vm6434_vm12, %v10867_v63, %v6441_v29 }
 0x377   :  { %v6443_v46 = vsel %vm6433_vm13, %v6440_v12, %v6442_v15  ;;  %v6446_v7 = vsel %vm6434_vm12, %v6428_v28, %v6445_v38  ;;  %vm10910_vm14 = vcmp.le.f32.partialorder %v6246_v26, 0.7853982  ;;  %vm6248_vm15 = vcmp.lt.s32.totalorder %v10652_v59, 0 }
 0x378   :  { %v6239_v13 = vxor.u32 2147483648, %v6234_v34  ;;  %vm6688_vm11 = vcmp.lt.s32.totalorder %v6687_v54, 0  ;;  %v6243_v33 = vsel %vm6241_vm3, %v6242_v58, %v6234_v34  ;;  %v6447_v6 = vsel %vm6433_vm13, %v6444_v37, %v6446_v7 }
 0x379   :  { %v6355_v19 = vsel %vm6688_vm11, 0, %v6687_v54  ;;  %v6473_v55 = vand.u32 65535, %v6443_v46  ;;  %v6451_v4 = vand.u32 65535, %v6447_v6  ;;  %v6452_v57 = vshrl.u32 %v6447_v6, 16 }
 0x37a   :  { %v6240_v44 = vsel %vm6238_vm4, %v6226_v10, %v6239_v13  ;;  %v6356_v32 = vsub.s32 32, %v6355_v19  ;;  %v6360_v60 = vsub.s32 4294967266, %v6355_v19  ;;  %v6357_v35 = vshll.u32 %v10835_v14, %v6355_v19 }
 0x37b   :  { %v6244_v5 = vsel %vm6237_vm6, %v6240_v44, %v6243_v33  ;;  %v6474_v41 = vshrl.u32 %v6443_v46, 16  ;;  %v6454_v40 = vmul.u32 %v6452_v57, %v6449_v36  ;;  %v6416_v8 = vshrl.u32 %v11029_v30, %v10831_v31 }
 0x37c   :  { %v6245_v56 = vsel %vm6235_vm7, nan, %v6244_v5  ;;  %v6358_v25 = vshrl.u32 %v6340_v49, %v6356_v32  ;;  %v6361_v0 = vadd.s32 127, %v6360_v60  ;;  %v6455_v9 = vmul.u32 %v6451_v4, %v6450_v42 }
 0x37d   :  { %v6607_v11 = vsel %vm10861_vm8, %v10552_v1, %v6245_v56  ;;  %v6476_v27 = vmul.u32 %v6474_v41, %v6449_v36  ;;  %v6477_v61 = vmul.u32 %v6473_v55, %v6450_v42  ;;  %v6453_v2 = vmul.u32 %v6451_v4, %v6449_v36 }
 0x37e   :  { %6623 = vst [vmem:[#allocation8 + $0x68] sm:$0xff] %v6607_v11  ;;  %v6359_v14 = vor.u32 %v6358_v25, %v6357_v35  ;;  %v6362_v16 = vshll.u32 %v6361_v0, 23  ;;  %v6457_v28 = vshll.u32 %v6454_v40, 16  ;;  %v6456_v10 = vmul.u32 %v6452_v57, %v6450_v42 }
 0x37f   :  { %v6475_v17 = vmul.u32 %v6473_v55, %v6449_v36  ;;  %v6478_v26 = vmul.u32 %v6474_v41, %v6450_v42  ;;  %v6479_v50 = vshll.u32 %v6476_v27, 16  ;;  %v6459_v3 = vshll.u32 %v6455_v9, 16 }
 0x380   :  { %v6363_v1 = vor.u32 4788187, %v6362_v16  ;;  %v6366_v45 = vcvt.s32.f32 %v6359_v14  ;;  %vm6461_vm0 = vc.u32 %v6453_v2, %v6457_v28  ;;  %v6463_v49 = vadd.s32 %v6457_v28, %v6453_v2 }
 0x381   :  { %v6462_v53 = vsel %vm6461_vm0, 1, %v11037_v23  ;;  %v6481_v34 = vshll.u32 %v6477_v61, 16  ;;  %vm6483_vm1 = vc.u32 %v6475_v17, %v6479_v50  ;;  %v6485_v30 = vadd.s32 %v6479_v50, %v6475_v17 }
 0x382   :  { %v6364_v24 = vand.u32 2147483647, %v6363_v1  ;;  %v6464_v58 = vadd.s32 %v6462_v53, %v6456_v10  ;;  %vm6465_vm2 = vc.u32 %v6463_v49, %v6459_v3  ;;  %v6484_v54 = vsel %vm6483_vm1, 1, %v11037_v23 }
 0x383   :  { %v6437_v43 = vsel %vm6435_vm9, %v10867_v63, 2102212464  ;;  %v6466_v29 = vsel %vm6465_vm2, 1, %v11037_v23  ;;  %v6486_v13 = vadd.s32 %v6484_v54, %v6478_v26  ;;  %vm6487_vm3 = vc.u32 %v6485_v30, %v6481_v34 }
 0x384   :  { %v6367_v39 = vmul.f32 %v6366_v45, %v6364_v24  ;;  %v6458_v33 = vshrl.u32 %v6454_v40, 16  ;;  %v6468_v19 = vadd.s32 %v6466_v29, %v6464_v58  ;;  %v6488_v15 = vsel %vm6487_vm3, 1, %v11037_v23 }
 0x385   :  { %v6436_v32 = vsel %vm6432_vm10, %v6416_v8, %v10855_v51  ;;  %v6480_v63 = vshrl.u32 %v6476_v27, 16  ;;  %v6490_v60 = vadd.s32 %v6488_v15, %v6486_v13  ;;  %v6438_v5 = vsel %vm6434_vm12, %v10857_v18, %v6437_v43 }
 0x386   :  { %v6368_v31 = vxor.u32 2147483648, %v6367_v39  ;;  %v6460_v35 = vshrl.u32 %v6455_v9, 16  ;;  %v6469_v46 = vadd.s32 %v6468_v19, %v6458_v33  ;;  %v6482_v38 = vshrl.u32 %v6477_v61, 16 }
 0x387   :  { %v6491_v56 = vadd.s32 %v6490_v60, %v6480_v63  ;;  %v6489_v7 = vadd.s32 %v6485_v30, %v6481_v34  ;;  %v6370_v11 = vsub.s32 4, %v10829_v47  ;;  %v6439_v51 = vsel %vm6433_vm13, %v6436_v32, %v6438_v5 }
 0x388   :  { %v6369_v12 = vsel %vm6248_vm15, %v6368_v31, %v6367_v39  ;;  %v6470_v0 = vadd.s32 %v6469_v46, %v6460_v35  ;;  %v6493_v4 = vmul.u32 %v10874_v22, %v6439_v51  ;;  %v6576_v22 = vperm.slane %v10186_v48, 6 }
 0x389   :  { %v6372_v44 = vsel %vm10910_vm14, %v10652_v59, %v6369_v12  ;;  %v6492_v6 = vadd.s32 %v6491_v56, %v6482_v38  ;;  %v6371_v57 = vsel %vm6248_vm15, %v6370_v11, %v10829_v47  ;;  %vm6389_vm10 = vweird.f32 %v10652_v59 }
 0x38a   :  { %v6374_v37 = vmul.f32 %v6372_v44, %v6372_v44  ;;  %vm6495_vm4 = vc.u32 %v6470_v0, %v6489_v7  ;;  %v6373_v20 = vsel %vm10910_vm14, 0, %v6371_v57  ;;  %vm6592_vm8 = vcmp.eq.s32.totalorder %v6576_v22, 1 }
 0x38b   :  { %v6496_v14 = vadd.s32 1, %v6492_v6  ;;  %v6390_v2 = vand.u32 3, %v6373_v20  ;;  %v6494_v54 = vadd.s32 %v6489_v7, %v6470_v0  ;;  %vm6402_vm12 = vcmp.lt.s32.totalorder %v10795_v62, 0 }
 0x38c   :  { %v6375_v23 = vmul.f32 -0.001358992, %v6374_v37  ;;  %v6382_v25 = vmul.f32 -0.00019511016, %v6374_v37  ;;  %vm10950_vm13 = vcmp.le.f32.partialorder %v6400_v21, 0.7853982  ;;  %vm6543_vm2 = vweird.f32 %v10795_v62 }
 0x38d   :  { %v6497_v42 = vsel %vm6495_vm4, %v6496_v14, %v6492_v6  ;;  %vm6391_vm5 = vcmp.lt.s32.totalorder %v6390_v2, 2  ;;  %vm6392_vm6 = vcmp.eq.s32.totalorder %v6390_v2, 0  ;;  %vm6395_vm7 = vcmp.eq.s32.totalorder %v6390_v2, 2 }
 0x38e   :  { %v6376_v36 = vadd.f32 0.041655596, %v6375_v23  ;;  %v6383_v55 = vadd.f32 0.008332121, %v6382_v25  ;;  %v6498_v40 = vadd.s32 %v6497_v42, %v6493_v4 }
 0x390   :  { %v6377_v16 = vmul.f32 %v6376_v36, %v6374_v37  ;;  %v6384_v18 = vmul.f32 %v6383_v55, %v6374_v37  ;;  %v6499_v27 = vadd.s32 536870912, %v6498_v40 }
 0x392   :  { %v6378_v41 = vadd.f32 -0.4999988, %v6377_v16  ;;  %v6385_v1 = vadd.f32 -0.16666654, %v6384_v18  ;;  %v6500_v45 = vshrl.u32 %v6499_v27, 30 }
 0x394   :  { %v6379_v8 = vmul.f32 %v6378_v41, %v6374_v37  ;;  %v6386_v9 = vmul.f32 %v6385_v1, %v6374_v37  ;;  %v6501_v17 = vshll.u32 %v6500_v45, 30  ;;  %v6524_v23 = vsub.s32 4, %v6500_v45 }
 0x395   :  { %v6577_v41 = vperm.slane %v10186_v48, 7 }
 0x396   :  { %v6380_v61 = vadd.f32 1.0, %v6379_v8  ;;  %v6387_v24 = vadd.f32 1.0, %v6386_v9  ;;  %v6502_v26 = vsub.s32 %v6498_v40, %v6501_v17  ;;  %v6525_v51 = vsel %vm6402_vm12, %v6524_v23, %v6500_v45 }
 0x397   :  { %v6527_v21 = vsel %vm10950_vm13, 0, %v6525_v51  ;;  %vm6593_vm1 = vcmp.eq.s32.totalorder %v6577_v41, 1 }
 0x398   :  { %v6388_v28 = vmul.f32 %v6387_v24, %v6372_v44  ;;  %v6396_v10 = vxor.u32 2147483648, %v6380_v61  ;;  %vm6503_vm9 = vcmp.lt.s32.totalorder %v6502_v26, 0  ;;  %v6504_v39 = vsub.s32 0, %v6502_v26 }
 0x399   :  { %v6544_v4 = vand.u32 3, %v6527_v21 }
 0x39a   :  { %v6393_v47 = vxor.u32 2147483648, %v6388_v28  ;;  %v6397_v50 = vsel %vm6395_vm7, %v6396_v10, %v6388_v28  ;;  %v6505_v53 = vsel %vm6503_vm9, %v6504_v39, %v6502_v26 }
 0x39b   :  { %v6506_v30 = vclz %v6505_v53  ;;  %vm6546_vm14 = vcmp.eq.s32.totalorder %v6544_v4, 0  ;;  %vm6549_vm15 = vcmp.eq.s32.totalorder %v6544_v4, 2  ;;  %vm6545_vm0 = vcmp.lt.s32.totalorder %v6544_v4, 2 }
 0x39c   :  { %v6394_v52 = vsel %vm6392_vm6, %v6380_v61, %v6393_v47 }
 0x39d   :  { %v6398_v3 = vsel %vm6391_vm5, %v6394_v52, %v6397_v50  ;;  %v6690_v31 = vadd.s32 4294967294, %v6506_v30 }
 0x39e   :  { %v6399_v49 = vsel %vm6389_vm10, nan, %v6398_v3 }
 0x39f   :  { %v6608_v34 = vsel %vm6592_vm8, %v10652_v59, %v6399_v49  ;;  %vm6691_vm11 = vcmp.lt.s32.totalorder %v6690_v31, 0 }
 0x3a0   :  { %6624 = vst [vmem:[#allocation8 + $0x70] sm:$0xff] %v6608_v34  ;;  %v6509_v58 = vsel %vm6691_vm11, 0, %v6690_v31 }
 0x3a1   :  { %v6510_v43 = vsub.s32 32, %v6509_v58  ;;  %v6514_v29 = vsub.s32 4294967266, %v6509_v58  ;;  %v6511_v13 = vshll.u32 %v6502_v26, %v6509_v58 }
 0x3a3   :  { %v6512_v12 = vshrl.u32 %v6494_v54, %v6510_v43  ;;  %v6515_v33 = vadd.s32 127, %v6514_v29 }
 0x3a5   :  { %v6513_v19 = vor.u32 %v6512_v12, %v6511_v13  ;;  %v6516_v15 = vshll.u32 %v6515_v33, 23 }
 0x3a7   :  { %v6517_v44 = vor.u32 4788187, %v6516_v15  ;;  %v6520_v63 = vcvt.s32.f32 %v6513_v19 }
 0x3a9   :  { %v6518_v32 = vand.u32 2147483647, %v6517_v44 }
 0x3ab   :  { %v6521_v60 = vmul.f32 %v6520_v63, %v6518_v32 }
 0x3ad   :  { %v6522_v37 = vxor.u32 2147483648, %v6521_v60 }
 0x3af   :  { %v6523_v5 = vsel %vm6402_vm12, %v6522_v37, %v6521_v60 }
 0x3b0   :  { %v6526_v35 = vsel %vm10950_vm13, %v10795_v62, %v6523_v5 }
 0x3b1   :  { %v6528_v46 = vmul.f32 %v6526_v35, %v6526_v35 }
 0x3b3   :  { %v6529_v38 = vmul.f32 -0.001358992, %v6528_v46  ;;  %v6536_v56 = vmul.f32 -0.00019511016, %v6528_v46 }
 0x3b5   :  { %v6530_v25 = vadd.f32 0.041655596, %v6529_v38  ;;  %v6537_v0 = vadd.f32 0.008332121, %v6536_v56 }
 0x3b7   :  { %v6531_v7 = vmul.f32 %v6530_v25, %v6528_v46  ;;  %v6538_v11 = vmul.f32 %v6537_v0, %v6528_v46 }
 0x3b9   :  { %v6532_v6 = vadd.f32 -0.4999988, %v6531_v7  ;;  %v6539_v36 = vadd.f32 -0.16666654, %v6538_v11 }
 0x3bb   :  { %v6533_v55 = vmul.f32 %v6532_v6, %v6528_v46  ;;  %v6540_v14 = vmul.f32 %v6539_v36, %v6528_v46 }
 0x3bd   :  { %v6534_v16 = vadd.f32 1.0, %v6533_v55  ;;  %v6541_v18 = vadd.f32 1.0, %v6540_v14 }
 0x3bf   :  { %v6542_v57 = vmul.f32 %v6541_v18, %v6526_v35  ;;  %v6550_v42 = vxor.u32 2147483648, %v6534_v16 }
 0x3c1   :  { %v6547_v1 = vxor.u32 2147483648, %v6542_v57  ;;  %v6551_v20 = vsel %vm6549_vm15, %v6550_v42, %v6542_v57 }
 0x3c3   :  { %v6548_v40 = vsel %vm6546_vm14, %v6534_v16, %v6547_v1 }
 0x3c4   :  { %v6552_v8 = vsel %vm6545_vm0, %v6548_v40, %v6551_v20 }
 0x3c5   :  { %v6553_v9 = vsel %vm6543_vm2, nan, %v6552_v8 }
 0x3c6   :  { %v6609_v48 = vsel %vm6593_vm1, %v10795_v62, %v6553_v9 }
 0x3c7   :  { %6625 = vst [vmem:[#allocation8 + $0x78] sm:$0xff] %v6609_v48 }
 0x3c8   :  { %6636 = dma.vmem_to_hbm [thread:$0]  %s6632_s2, 2048, %s6634_s30, [#allocation4]  }
 0x3c9   :  { %6815 = dma.done.wait [#allocation4], 2048  }
 0x3ca   :  { %6816 = vsyncadd [#allocation4], 4294965248 }
 0x3cb   :  { %6641 = vsyncpa [#allocation3], 1 }
 0x3cc   :  { %6642 = vsyncpa [#allocation6], 1 }
 0x3cd   :  { %6643 = vsyncpa [#allocation4], 1 }

</bundles_post_ra>
